<compile_context>
chip_gen: v5e
topology: v5e:2x2
jax: 0.10.0
libtpu: 0.0.40
codegen_flags: <defaults>
</compile_context>

<pallas_src>
import functools

import jax
import jax.numpy as jnp
from jax.experimental import pallas as pl
from jax.experimental.pallas import tpu as pltpu


def _featlayer_kernel(x1_ref, w1_ref, b1_ref, w2_ref, b2_ref, wo_ref, bo_ref,
                      o_ref, h1p_ref, *, H, W, k, bb):
    """Whole FeatLayer for `bb` batch elements.

    x1_ref : (bb, H*W, k*k*Cin)  bf16  conv1 im2col slab (built in the wrapper)
    w1_ref : (k*k*Cin, C)        bf16  conv1 weights (im2col layout)
    b1_ref : (1, C)              f32
    w2_ref : (k*k*C, C)          bf16  conv2 weights (im2col layout)
    b2_ref : (1, C)              f32
    wo_ref : (C, 2)              bf16  both 1x1 heads stacked
    bo_ref : (1, 2)              f32
    o_ref  : (bb, 2, H*W)        f32   lane-dense; [:, 0] = y1, [:, 1] = y2
    h1p_ref: (bb, H+2p, W+2p, C) bf16  VMEM scratch: zero-padded conv1 output
    """
    pad = k // 2
    HW = H * W
    M = bb * HW
    C = w1_ref.shape[-1]
    Wp = W + 2 * pad

    # ---- conv1 + bias + ReLU: one MXU matmul, K = k*k*Cin ----
    h1 = jnp.dot(x1_ref[...].reshape(M, -1), w1_ref[...],
                 preferred_element_type=jnp.float32)
    h1 = jnp.maximum(h1 + b1_ref[...], 0.0).astype(jnp.bfloat16)  # single cast

    # ---- conv2 halo: bf16 zero-padded copy of h1 kept entirely in VMEM ----
    # Zero only the pad border each step; the interior is fully overwritten.
    zb = functools.partial(jnp.zeros, dtype=jnp.bfloat16)
    h1p_ref[:, 0:pad, :, :] = zb((bb, pad, Wp, C))
    h1p_ref[:, pad + H:, :, :] = zb((bb, pad, Wp, C))
    h1p_ref[:, pad:pad + H, 0:pad, :] = zb((bb, H, pad, C))
    h1p_ref[:, pad:pad + H, pad + W:, :] = zb((bb, H, pad, C))
    h1p_ref[:, pad:pad + H, pad:pad + W, :] = h1.reshape(bb, H, W, C)

    # ---- conv2 + bias + ReLU: accumulate over the k*k taps.  No materialized
    #      (M, k*k*C) im2col temp, no lane concat, f32 accumulation. ----
    acc = jnp.zeros((M, C), jnp.float32)
    for dy in range(k):
        for dx in range(k):
            t = dy * k + dx
            tap = h1p_ref[:, dy:dy + H, dx:dx + W, :].reshape(M, C)
            acc = acc + jnp.dot(tap, w2_ref[t * C:(t + 1) * C, :],
                                preferred_element_type=jnp.float32)
    h2 = jnp.maximum(acc + b2_ref[...], 0.0).astype(jnp.bfloat16)
    # TODO(synk): nn.Dropout() is identity in eval mode; training-mode
    # stochastic masking is not implemented here.

    # ---- both 1x1 heads fused as a single (C, 2) matmul; lane-dense out ----
    heads = jnp.dot(h2, wo_ref[...], preferred_element_type=jnp.float32)
    heads = heads + bo_ref[...]                       # (M, 2)
    o_ref[...] = jnp.transpose(heads.reshape(bb, HW, 2), (0, 2, 1))


def _pick_batch_block(N):
    """Largest divisor of N that keeps >= 2 grid steps (v7x has 2 TCs)."""
    for bb in range(max(N // 2, 1), 0, -1):
        if N % bb == 0:
            return bb
    return 1


def feat_layer_forward(params, x_nchw):
    """FeatLayer.forward: x (N, Cin, H, W) -> (y1, y2), each (N, 1, H, W)."""
    N, Cin, H, W = x_nchw.shape
    k = params["w1"].shape[0]
    C = params["w1"].shape[-1]
    pad = k // 2
    Hp, Wp, HW, k2 = H + 2 * pad, W + 2 * pad, H * W, k * k
    bb = _pick_batch_block(N)

    # HBM-side prep: NHWC + zero pad + conv1's (tiny-Cin) im2col, all bf16.
    x = jnp.transpose(x_nchw, (0, 2, 3, 1)).astype(jnp.bfloat16)
    xp = jnp.pad(x, ((0, 0), (pad, pad), (pad, pad), (0, 0)))
    cols = [xp[:, dy:dy + H, dx:dx + W, :].reshape(N, HW, Cin)
            for dy in range(k) for dx in range(k)]
    xcol1 = jnp.concatenate(cols, axis=-1)                      # (N, HW, k2*Cin)

    w1 = params["w1"].reshape(k2 * Cin, C).astype(jnp.bfloat16)
    w2 = params["w2"].reshape(k2 * C, C).astype(jnp.bfloat16)
    wo = jnp.concatenate([params["wo"].reshape(C, 1),
                          params["wo2"].reshape(C, 1)],
                         axis=1).astype(jnp.bfloat16)           # (C, 2)
    b1 = params["b1"].reshape(1, C).astype(jnp.float32)
    b2 = params["b2"].reshape(1, C).astype(jnp.float32)
    bo = jnp.concatenate([params["bo"], params["bo2"]]).reshape(1, 2).astype(jnp.float32)

    kernel = functools.partial(_featlayer_kernel, H=H, W=W, k=k, bb=bb)
    out = pl.pallas_call(
        kernel,
        out_shape=jax.ShapeDtypeStruct((N, 2, HW), jnp.float32),
        grid_spec=pltpu.PrefetchScalarGridSpec(
            num_scalar_prefetch=0,
            grid=(N // bb,),
            in_specs=[
                pl.BlockSpec((bb, HW, k2 * Cin), lambda n: (n, 0, 0)),
                pl.BlockSpec((k2 * Cin, C), lambda n: (0, 0)),
                pl.BlockSpec((1, C), lambda n: (0, 0)),
                pl.BlockSpec((k2 * C, C), lambda n: (0, 0)),
                pl.BlockSpec((1, C), lambda n: (0, 0)),
                pl.BlockSpec((C, 2), lambda n: (0, 0)),
                pl.BlockSpec((1, 2), lambda n: (0, 0)),
            ],
            out_specs=pl.BlockSpec((bb, 2, HW), lambda n: (n, 0, 0)),
            scratch_shapes=[pltpu.VMEM((bb, Hp, Wp, C), jnp.bfloat16)],
        ),
        compiler_params=pltpu.CompilerParams(
            dimension_semantics=("parallel",)),
    )(xcol1, w1, b1, w2, b2, wo, bo)

    # (N, 2, HW) is already channel-major; just fold HW back to (H, W).
    y = out.reshape(N, 2, H, W)
    return y[:, 0:1], y[:, 1:2]


def init_featlayer_params(key, in_channel, channel, k):
    """Deterministic synthetic parameters with the same shapes as FeatLayer.

    Weights drawn in PyTorch OIHW layout, transposed to HWIO.
    """
    ks = jax.random.split(key, 8)

    def w(kk, cout, cin, ksz, scale):
        oihw = jax.random.normal(kk, (cout, cin, ksz, ksz), jnp.float32) * scale
        return jnp.transpose(oihw, (2, 3, 1, 0))  # OIHW -> HWIO

    return {
        "w1": w(ks[0], channel, in_channel, k, 0.10),
        "b1": jax.random.normal(ks[1], (channel,), jnp.float32) * 0.10,
        "w2": w(ks[2], channel, channel, k, 0.05),
        "b2": jax.random.normal(ks[3], (channel,), jnp.float32) * 0.10,
        "wo": w(ks[4], 1, channel, 1, 0.10),
        "bo": jax.random.normal(ks[5], (1,), jnp.float32) * 0.10,
        "wo2": w(ks[6], 1, channel, 1, 0.10),
        "bo2": jax.random.normal(ks[7], (1,), jnp.float32) * 0.10,
    }


# ---- pure-JAX reference (mirrors the kernel's bf16 input/weight rounding but
#      keeps f32 intermediates; the kernel additionally rounds h1/h2 to bf16,
#      an intentional intermediate-precision difference within tolerance) ----
def _ref_conv(x_nhwc, w_hwio, b, relu):
    k = w_hwio.shape[0]
    y = jax.lax.conv_general_dilated(
        x_nhwc, w_hwio, window_strides=(1, 1),
        padding=[(k // 2, k // 2), (k // 2, k // 2)],
        dimension_numbers=("NHWC", "HWIO", "NHWC"))
    y = y + b
    return jnp.maximum(y, 0.0) if relu else y


def _ref_forward(params, x_nchw):
    cast = lambda a: a.astype(jnp.bfloat16).astype(jnp.float32)
    x = cast(jnp.transpose(x_nchw, (0, 2, 3, 1)))
    y = _ref_conv(x, cast(params["w1"]), params["b1"], True)
    y = _ref_conv(y, cast(params["w2"]), params["b2"], True)
    y1 = _ref_conv(y, cast(params["wo"]), params["bo"], False)
    y2 = _ref_conv(y, cast(params["wo2"]), params["bo2"], False)
    return (jnp.transpose(y1, (0, 3, 1, 2)), jnp.transpose(y2, (0, 3, 1, 2)))


if __name__ == "__main__":
    N, Cin, H, W = 2, 4, 16, 16
    channel, k = 32, 3

    key = jax.random.PRNGKey(0)
    kx, kp = jax.random.split(key)
    x = jax.random.normal(kx, (N, Cin, H, W), jnp.float32)
    params = init_featlayer_params(kp, Cin, channel, k)

    fwd = jax.jit(feat_layer_forward)
    y1, y2 = fwd(params, x)
    y1, y2 = jax.block_until_ready((y1, y2))

    r1, r2 = _ref_forward(params, x)
    assert y1.shape == (N, 1, H, W) and y2.shape == (N, 1, H, W)
    assert jnp.allclose(y1, r1, atol=2e-2, rtol=2e-2), float(jnp.max(jnp.abs(y1 - r1)))
    assert jnp.allclose(y2, r2, atol=2e-2, rtol=2e-2), float(jnp.max(jnp.abs(y2 - r2)))

    print("KERNEL_OK")
</pallas_src>

<mosaic_0001>
module attributes {stable_mosaic.version = 11 : i64} {
  func.func @_featlayer_kernel(%arg0: i32, %arg1: memref<1x256x36xbf16, #tpu.memory_space<vmem>>, %arg2: memref<36x32xbf16, #tpu.memory_space<vmem>>, %arg3: memref<1x32xf32, #tpu.memory_space<vmem>>, %arg4: memref<288x32xbf16, #tpu.memory_space<vmem>>, %arg5: memref<1x32xf32, #tpu.memory_space<vmem>>, %arg6: memref<32x2xbf16, #tpu.memory_space<vmem>>, %arg7: memref<1x2xf32, #tpu.memory_space<vmem>>, %arg8: memref<1x2x256xf32, #tpu.memory_space<vmem>>, %arg9: memref<1x18x18x32xbf16, #tpu.memory_space<vmem>>) attributes {dimension_semantics = [#tpu.dimension_semantics<parallel>], iteration_bounds = array<i64: 2>, scalar_prefetch = 0 : i64, scratch_operands = 1 : i64, tpu.core_type = #tpu.core_type<tc>, window_params = [{transform_indices = @transform_0, window_bounds = array<i64: 1, 256, 36>}, {pipeline_mode = #tpu.pipeline_mode<synchronous>, transform_indices = @transform_1, window_bounds = array<i64: 36, 32>}, {pipeline_mode = #tpu.pipeline_mode<synchronous>, transform_indices = @transform_2, window_bounds = array<i64: 1, 32>}, {pipeline_mode = #tpu.pipeline_mode<synchronous>, transform_indices = @transform_3, window_bounds = array<i64: 288, 32>}, {pipeline_mode = #tpu.pipeline_mode<synchronous>, transform_indices = @transform_4, window_bounds = array<i64: 1, 32>}, {pipeline_mode = #tpu.pipeline_mode<synchronous>, transform_indices = @transform_5, window_bounds = array<i64: 32, 2>}, {pipeline_mode = #tpu.pipeline_mode<synchronous>, transform_indices = @transform_6, window_bounds = array<i64: 1, 2>}, {transform_indices = @transform_7, window_bounds = array<i64: 1, 2, 256>}]} {
    %c0 = arith.constant 0 : index
    %c0_0 = arith.constant 0 : index
    %c0_1 = arith.constant 0 : index
    %0 = vector.load %arg1[%c0, %c0_0, %c0_1] : memref<1x256x36xbf16, #tpu.memory_space<vmem>>, vector<1x256x36xbf16>
    %1 = vector.shape_cast %0 : vector<1x256x36xbf16> to vector<256x36xbf16>
    %c0_2 = arith.constant 0 : index
    %c0_3 = arith.constant 0 : index
    %2 = vector.load %arg2[%c0_2, %c0_3] : memref<36x32xbf16, #tpu.memory_space<vmem>>, vector<36x32xbf16>
    %cst = arith.constant dense<0.000000e+00> : vector<256x32xf32>
    %3 = tpu.matmul %1, %2, %cst {dimension_numbers = #tpu.dot_dimension_numbers<[1], [0], [0], [1], [0, 0, 1, 1], [], []>} : vector<256x36xbf16>, vector<36x32xbf16>, vector<256x32xf32> -> vector<256x32xf32>
    %c0_4 = arith.constant 0 : index
    %c0_5 = arith.constant 0 : index
    %4 = vector.load %arg3[%c0_4, %c0_5] : memref<1x32xf32, #tpu.memory_space<vmem>>, vector<1x32xf32>
    %5 = vector.broadcast %4 : vector<1x32xf32> to vector<256x32xf32>
    %6 = arith.addf %3, %5 : vector<256x32xf32>
    %cst_6 = arith.constant 0.000000e+00 : f32
    %7 = vector.broadcast %cst_6 : f32 to vector<256x32xf32>
    %8 = arith.maximumf %6, %7 : vector<256x32xf32>
    %9 = arith.truncf %8 : vector<256x32xf32> to vector<256x32xbf16>
    %cst_7 = arith.constant 0.000000e+00 : bf16
    %10 = vector.broadcast %cst_7 : bf16 to vector<1x1x18x32xbf16>
    %c0_8 = arith.constant 0 : index
    %c0_9 = arith.constant 0 : index
    %c0_10 = arith.constant 0 : index
    %c0_11 = arith.constant 0 : index
    %11 = vector.load %arg9[%c0_8, %c0_9, %c0_10, %c0_11] : memref<1x18x18x32xbf16, #tpu.memory_space<vmem>>, vector<1x1x18x32xbf16>
    tpu.vector_store %arg9[%c0_8, %c0_9, %c0_10, %c0_11], %10 {strides = array<i32>} : memref<1x18x18x32xbf16, #tpu.memory_space<vmem>>, vector<1x1x18x32xbf16>,
    %cst_12 = arith.constant 0.000000e+00 : bf16
    %12 = vector.broadcast %cst_12 : bf16 to vector<1x1x18x32xbf16>
    %c0_13 = arith.constant 0 : index
    %c17 = arith.constant 17 : index
    %c0_14 = arith.constant 0 : index
    %c0_15 = arith.constant 0 : index
    %13 = vector.load %arg9[%c0_13, %c17, %c0_14, %c0_15] : memref<1x18x18x32xbf16, #tpu.memory_space<vmem>>, vector<1x1x18x32xbf16>
    tpu.vector_store %arg9[%c0_13, %c17, %c0_14, %c0_15], %12 {strides = array<i32>} : memref<1x18x18x32xbf16, #tpu.memory_space<vmem>>, vector<1x1x18x32xbf16>,
    %cst_16 = arith.constant 0.000000e+00 : bf16
    %14 = vector.broadcast %cst_16 : bf16 to vector<1x16x1x32xbf16>
    %c0_17 = arith.constant 0 : index
    %c1 = arith.constant 1 : index
    %c0_18 = arith.constant 0 : index
    %c0_19 = arith.constant 0 : index
    %15 = vector.load %arg9[%c0_17, %c1, %c0_18, %c0_19] : memref<1x18x18x32xbf16, #tpu.memory_space<vmem>>, vector<1x16x1x32xbf16>
    tpu.vector_store %arg9[%c0_17, %c1, %c0_18, %c0_19], %14 {strides = array<i32>} : memref<1x18x18x32xbf16, #tpu.memory_space<vmem>>, vector<1x16x1x32xbf16>,
    %cst_20 = arith.constant 0.000000e+00 : bf16
    %16 = vector.broadcast %cst_20 : bf16 to vector<1x16x1x32xbf16>
    %c0_21 = arith.constant 0 : index
    %c1_22 = arith.constant 1 : index
    %c17_23 = arith.constant 17 : index
    %c0_24 = arith.constant 0 : index
    %17 = vector.load %arg9[%c0_21, %c1_22, %c17_23, %c0_24] : memref<1x18x18x32xbf16, #tpu.memory_space<vmem>>, vector<1x16x1x32xbf16>
    tpu.vector_store %arg9[%c0_21, %c1_22, %c17_23, %c0_24], %16 {strides = array<i32>} : memref<1x18x18x32xbf16, #tpu.memory_space<vmem>>, vector<1x16x1x32xbf16>,
    %18 = vector.shape_cast %9 : vector<256x32xbf16> to vector<1x16x16x32xbf16>
    %c0_25 = arith.constant 0 : index
    %c1_26 = arith.constant 1 : index
    %c1_27 = arith.constant 1 : index
    %c0_28 = arith.constant 0 : index
    %19 = vector.load %arg9[%c0_25, %c1_26, %c1_27, %c0_28] : memref<1x18x18x32xbf16, #tpu.memory_space<vmem>>, vector<1x16x16x32xbf16>
    tpu.vector_store %arg9[%c0_25, %c1_26, %c1_27, %c0_28], %18 {strides = array<i32>} : memref<1x18x18x32xbf16, #tpu.memory_space<vmem>>, vector<1x16x16x32xbf16>,
    %cst_29 = arith.constant 0.000000e+00 : f32
    %20 = vector.broadcast %cst_29 : f32 to vector<256x32xf32>
    %c0_30 = arith.constant 0 : index
    %c0_31 = arith.constant 0 : index
    %c0_32 = arith.constant 0 : index
    %c0_33 = arith.constant 0 : index
    %21 = vector.load %arg9[%c0_30, %c0_31, %c0_32, %c0_33] : memref<1x18x18x32xbf16, #tpu.memory_space<vmem>>, vector<1x16x16x32xbf16>
    %22 = vector.shape_cast %21 : vector<1x16x16x32xbf16> to vector<256x32xbf16>
    %c0_34 = arith.constant 0 : index
    %c0_35 = arith.constant 0 : index
    %23 = vector.load %arg4[%c0_34, %c0_35] : memref<288x32xbf16, #tpu.memory_space<vmem>>, vector<32x32xbf16>
    %cst_36 = arith.constant dense<0.000000e+00> : vector<256x32xf32>
    %24 = tpu.matmul %22, %23, %cst_36 {dimension_numbers = #tpu.dot_dimension_numbers<[1], [0], [0], [1], [0, 0, 1, 1], [], []>} : vector<256x32xbf16>, vector<32x32xbf16>, vector<256x32xf32> -> vector<256x32xf32>
    %25 = arith.addf %20, %24 : vector<256x32xf32>
    %c0_37 = arith.constant 0 : index
    %c0_38 = arith.constant 0 : index
    %c1_39 = arith.constant 1 : index
    %c0_40 = arith.constant 0 : index
    %26 = vector.load %arg9[%c0_37, %c0_38, %c1_39, %c0_40] : memref<1x18x18x32xbf16, #tpu.memory_space<vmem>>, vector<1x16x16x32xbf16>
    %27 = vector.shape_cast %26 : vector<1x16x16x32xbf16> to vector<256x32xbf16>
    %c32 = arith.constant 32 : index
    %c0_41 = arith.constant 0 : index
    %28 = vector.load %arg4[%c32, %c0_41] : memref<288x32xbf16, #tpu.memory_space<vmem>>, vector<32x32xbf16>
    %cst_42 = arith.constant dense<0.000000e+00> : vector<256x32xf32>
    %29 = tpu.matmul %27, %28, %cst_42 {dimension_numbers = #tpu.dot_dimension_numbers<[1], [0], [0], [1], [0, 0, 1, 1], [], []>} : vector<256x32xbf16>, vector<32x32xbf16>, vector<256x32xf32> -> vector<256x32xf32>
    %30 = arith.addf %25, %29 : vector<256x32xf32>
    %c0_43 = arith.constant 0 : index
    %c0_44 = arith.constant 0 : index
    %c2 = arith.constant 2 : index
    %c0_45 = arith.constant 0 : index
    %31 = vector.load %arg9[%c0_43, %c0_44, %c2, %c0_45] : memref<1x18x18x32xbf16, #tpu.memory_space<vmem>>, vector<1x16x16x32xbf16>
    %32 = vector.shape_cast %31 : vector<1x16x16x32xbf16> to vector<256x32xbf16>
    %c64 = arith.constant 64 : index
    %c0_46 = arith.constant 0 : index
    %33 = vector.load %arg4[%c64, %c0_46] : memref<288x32xbf16, #tpu.memory_space<vmem>>, vector<32x32xbf16>
    %cst_47 = arith.constant dense<0.000000e+00> : vector<256x32xf32>
    %34 = tpu.matmul %32, %33, %cst_47 {dimension_numbers = #tpu.dot_dimension_numbers<[1], [0], [0], [1], [0, 0, 1, 1], [], []>} : vector<256x32xbf16>, vector<32x32xbf16>, vector<256x32xf32> -> vector<256x32xf32>
    %35 = arith.addf %30, %34 : vector<256x32xf32>
    %c0_48 = arith.constant 0 : index
    %c1_49 = arith.constant 1 : index
    %c0_50 = arith.constant 0 : index
    %c0_51 = arith.constant 0 : index
    %36 = vector.load %arg9[%c0_48, %c1_49, %c0_50, %c0_51] : memref<1x18x18x32xbf16, #tpu.memory_space<vmem>>, vector<1x16x16x32xbf16>
    %37 = vector.shape_cast %36 : vector<1x16x16x32xbf16> to vector<256x32xbf16>
    %c96 = arith.constant 96 : index
    %c0_52 = arith.constant 0 : index
    %38 = vector.load %arg4[%c96, %c0_52] : memref<288x32xbf16, #tpu.memory_space<vmem>>, vector<32x32xbf16>
    %cst_53 = arith.constant dense<0.000000e+00> : vector<256x32xf32>
    %39 = tpu.matmul %37, %38, %cst_53 {dimension_numbers = #tpu.dot_dimension_numbers<[1], [0], [0], [1], [0, 0, 1, 1], [], []>} : vector<256x32xbf16>, vector<32x32xbf16>, vector<256x32xf32> -> vector<256x32xf32>
    %40 = arith.addf %35, %39 : vector<256x32xf32>
    %c0_54 = arith.constant 0 : index
    %c1_55 = arith.constant 1 : index
    %c1_56 = arith.constant 1 : index
    %c0_57 = arith.constant 0 : index
    %41 = vector.load %arg9[%c0_54, %c1_55, %c1_56, %c0_57] : memref<1x18x18x32xbf16, #tpu.memory_space<vmem>>, vector<1x16x16x32xbf16>
    %42 = vector.shape_cast %41 : vector<1x16x16x32xbf16> to vector<256x32xbf16>
    %c128 = arith.constant 128 : index
    %c0_58 = arith.constant 0 : index
    %43 = vector.load %arg4[%c128, %c0_58] : memref<288x32xbf16, #tpu.memory_space<vmem>>, vector<32x32xbf16>
    %cst_59 = arith.constant dense<0.000000e+00> : vector<256x32xf32>
    %44 = tpu.matmul %42, %43, %cst_59 {dimension_numbers = #tpu.dot_dimension_numbers<[1], [0], [0], [1], [0, 0, 1, 1], [], []>} : vector<256x32xbf16>, vector<32x32xbf16>, vector<256x32xf32> -> vector<256x32xf32>
    %45 = arith.addf %40, %44 : vector<256x32xf32>
    %c0_60 = arith.constant 0 : index
    %c1_61 = arith.constant 1 : index
    %c2_62 = arith.constant 2 : index
    %c0_63 = arith.constant 0 : index
    %46 = vector.load %arg9[%c0_60, %c1_61, %c2_62, %c0_63] : memref<1x18x18x32xbf16, #tpu.memory_space<vmem>>, vector<1x16x16x32xbf16>
    %47 = vector.shape_cast %46 : vector<1x16x16x32xbf16> to vector<256x32xbf16>
    %c160 = arith.constant 160 : index
    %c0_64 = arith.constant 0 : index
    %48 = vector.load %arg4[%c160, %c0_64] : memref<288x32xbf16, #tpu.memory_space<vmem>>, vector<32x32xbf16>
    %cst_65 = arith.constant dense<0.000000e+00> : vector<256x32xf32>
    %49 = tpu.matmul %47, %48, %cst_65 {dimension_numbers = #tpu.dot_dimension_numbers<[1], [0], [0], [1], [0, 0, 1, 1], [], []>} : vector<256x32xbf16>, vector<32x32xbf16>, vector<256x32xf32> -> vector<256x32xf32>
    %50 = arith.addf %45, %49 : vector<256x32xf32>
    %c0_66 = arith.constant 0 : index
    %c2_67 = arith.constant 2 : index
    %c0_68 = arith.constant 0 : index
    %c0_69 = arith.constant 0 : index
    %51 = vector.load %arg9[%c0_66, %c2_67, %c0_68, %c0_69] : memref<1x18x18x32xbf16, #tpu.memory_space<vmem>>, vector<1x16x16x32xbf16>
    %52 = vector.shape_cast %51 : vector<1x16x16x32xbf16> to vector<256x32xbf16>
    %c192 = arith.constant 192 : index
    %c0_70 = arith.constant 0 : index
    %53 = vector.load %arg4[%c192, %c0_70] : memref<288x32xbf16, #tpu.memory_space<vmem>>, vector<32x32xbf16>
    %cst_71 = arith.constant dense<0.000000e+00> : vector<256x32xf32>
    %54 = tpu.matmul %52, %53, %cst_71 {dimension_numbers = #tpu.dot_dimension_numbers<[1], [0], [0], [1], [0, 0, 1, 1], [], []>} : vector<256x32xbf16>, vector<32x32xbf16>, vector<256x32xf32> -> vector<256x32xf32>
    %55 = arith.addf %50, %54 : vector<256x32xf32>
    %c0_72 = arith.constant 0 : index
    %c2_73 = arith.constant 2 : index
    %c1_74 = arith.constant 1 : index
    %c0_75 = arith.constant 0 : index
    %56 = vector.load %arg9[%c0_72, %c2_73, %c1_74, %c0_75] : memref<1x18x18x32xbf16, #tpu.memory_space<vmem>>, vector<1x16x16x32xbf16>
    %57 = vector.shape_cast %56 : vector<1x16x16x32xbf16> to vector<256x32xbf16>
    %c224 = arith.constant 224 : index
    %c0_76 = arith.constant 0 : index
    %58 = vector.load %arg4[%c224, %c0_76] : memref<288x32xbf16, #tpu.memory_space<vmem>>, vector<32x32xbf16>
    %cst_77 = arith.constant dense<0.000000e+00> : vector<256x32xf32>
    %59 = tpu.matmul %57, %58, %cst_77 {dimension_numbers = #tpu.dot_dimension_numbers<[1], [0], [0], [1], [0, 0, 1, 1], [], []>} : vector<256x32xbf16>, vector<32x32xbf16>, vector<256x32xf32> -> vector<256x32xf32>
    %60 = arith.addf %55, %59 : vector<256x32xf32>
    %c0_78 = arith.constant 0 : index
    %c2_79 = arith.constant 2 : index
    %c2_80 = arith.constant 2 : index
    %c0_81 = arith.constant 0 : index
    %61 = vector.load %arg9[%c0_78, %c2_79, %c2_80, %c0_81] : memref<1x18x18x32xbf16, #tpu.memory_space<vmem>>, vector<1x16x16x32xbf16>
    %62 = vector.shape_cast %61 : vector<1x16x16x32xbf16> to vector<256x32xbf16>
    %c256 = arith.constant 256 : index
    %c0_82 = arith.constant 0 : index
    %63 = vector.load %arg4[%c256, %c0_82] : memref<288x32xbf16, #tpu.memory_space<vmem>>, vector<32x32xbf16>
    %cst_83 = arith.constant dense<0.000000e+00> : vector<256x32xf32>
    %64 = tpu.matmul %62, %63, %cst_83 {dimension_numbers = #tpu.dot_dimension_numbers<[1], [0], [0], [1], [0, 0, 1, 1], [], []>} : vector<256x32xbf16>, vector<32x32xbf16>, vector<256x32xf32> -> vector<256x32xf32>
    %65 = arith.addf %60, %64 : vector<256x32xf32>
    %c0_84 = arith.constant 0 : index
    %c0_85 = arith.constant 0 : index
    %66 = vector.load %arg5[%c0_84, %c0_85] : memref<1x32xf32, #tpu.memory_space<vmem>>, vector<1x32xf32>
    %67 = vector.broadcast %66 : vector<1x32xf32> to vector<256x32xf32>
    %68 = arith.addf %65, %67 : vector<256x32xf32>
    %cst_86 = arith.constant 0.000000e+00 : f32
    %69 = vector.broadcast %cst_86 : f32 to vector<256x32xf32>
    %70 = arith.maximumf %68, %69 : vector<256x32xf32>
    %71 = arith.truncf %70 : vector<256x32xf32> to vector<256x32xbf16>
    %c0_87 = arith.constant 0 : index
    %c0_88 = arith.constant 0 : index
    %72 = vector.load %arg6[%c0_87, %c0_88] : memref<32x2xbf16, #tpu.memory_space<vmem>>, vector<32x2xbf16>
    %cst_89 = arith.constant dense<0.000000e+00> : vector<256x2xf32>
    %73 = tpu.matmul %71, %72, %cst_89 {dimension_numbers = #tpu.dot_dimension_numbers<[1], [0], [0], [1], [0, 0, 1, 1], [], []>} : vector<256x32xbf16>, vector<32x2xbf16>, vector<256x2xf32> -> vector<256x2xf32>
    %c0_90 = arith.constant 0 : index
    %c0_91 = arith.constant 0 : index
    %74 = vector.load %arg7[%c0_90, %c0_91] : memref<1x2xf32, #tpu.memory_space<vmem>>, vector<1x2xf32>
    %75 = vector.broadcast %74 : vector<1x2xf32> to vector<256x2xf32>
    %76 = arith.addf %73, %75 : vector<256x2xf32>
    %77 = vector.shape_cast %76 : vector<256x2xf32> to vector<1x256x2xf32>
    %78 = tpu.transpose %77, [0, 2, 1] : vector<1x256x2xf32> -> vector<1x2x256xf32>
    %c0_92 = arith.constant 0 : index
    %c0_93 = arith.constant 0 : index
    %c0_94 = arith.constant 0 : index
    %79 = vector.load %arg8[%c0_92, %c0_93, %c0_94] : memref<1x2x256xf32, #tpu.memory_space<vmem>>, vector<1x2x256xf32>
    tpu.vector_store %arg8[%c0_92, %c0_93, %c0_94], %78 {strides = array<i32>} : memref<1x2x256xf32, #tpu.memory_space<vmem>>, vector<1x2x256xf32>,
    return
  }
  func.func @transform_0(%arg0: i32) -> (i32, i32, i32) {
    %c0_i32 = arith.constant 0 : i32
    %c0_i32_0 = arith.constant 0 : i32
    %c0_i32_1 = arith.constant 0 : i32
    return %arg0, %c0_i32, %c0_i32_0 : i32, i32, i32
  }
  func.func @transform_1(%arg0: i32) -> (i32, i32) {
    %c0_i32 = arith.constant 0 : i32
    %c0_i32_0 = arith.constant 0 : i32
    %c0_i32_1 = arith.constant 0 : i32
    return %c0_i32, %c0_i32_0 : i32, i32
  }
  func.func @transform_2(%arg0: i32) -> (i32, i32) {
    %c0_i32 = arith.constant 0 : i32
    %c0_i32_0 = arith.constant 0 : i32
    %c0_i32_1 = arith.constant 0 : i32
    return %c0_i32, %c0_i32_0 : i32, i32
  }
  func.func @transform_3(%arg0: i32) -> (i32, i32) {
    %c0_i32 = arith.constant 0 : i32
    %c0_i32_0 = arith.constant 0 : i32
    %c0_i32_1 = arith.constant 0 : i32
    return %c0_i32, %c0_i32_0 : i32, i32
  }
  func.func @transform_4(%arg0: i32) -> (i32, i32) {
    %c0_i32 = arith.constant 0 : i32
    %c0_i32_0 = arith.constant 0 : i32
    %c0_i32_1 = arith.constant 0 : i32
    return %c0_i32, %c0_i32_0 : i32, i32
  }
  func.func @transform_5(%arg0: i32) -> (i32, i32) {
    %c0_i32 = arith.constant 0 : i32
    %c0_i32_0 = arith.constant 0 : i32
    %c0_i32_1 = arith.constant 0 : i32
    return %c0_i32, %c0_i32_0 : i32, i32
  }
  func.func @transform_6(%arg0: i32) -> (i32, i32) {
    %c0_i32 = arith.constant 0 : i32
    %c0_i32_0 = arith.constant 0 : i32
    %c0_i32_1 = arith.constant 0 : i32
    return %c0_i32, %c0_i32_0 : i32, i32
  }
  func.func @transform_7(%arg0: i32) -> (i32, i32, i32) {
    %c0_i32 = arith.constant 0 : i32
    %c0_i32_0 = arith.constant 0 : i32
    %c0_i32_1 = arith.constant 0 : i32
    return %arg0, %c0_i32, %c0_i32_0 : i32, i32, i32
  }
}

</mosaic_0001>

<bundles_post_ra>
// kernel: feat_layer_forward.1
= control target key start
LH: loop header
LB: loop body
LE: loop exit
PB: predicated region body
PF: predicated region fallthrough
CT: control target
= control target key end

     0   :  { %s6281_s24 = smov 0   ;;  %s7833_s0 = inlined_call_operand.vmem [shape: bf16[2,256,36], index: 0, kind: input, shape index: {}]   ;;  %s7834_s1 = inlined_call_operand.vmem [shape: bf16[36,32], index: 1, kind: input, shape index: {}]   ;;  %s7835_s2 = inlined_call_operand.vmem [shape: f32[1,32], index: 2, kind: input, shape index: {}]   ;;  %s7836_s3 = inlined_call_operand.vmem [shape: bf16[288,32], index: 3, kind: input, shape index: {}]   ;;  %s7837_s4 = inlined_call_operand.vmem [shape: f32[1,32], index: 4, kind: input, shape index: {}]   ;;  %s7838_s5 = inlined_call_operand.vmem [shape: bf16[32,2], index: 5, kind: input, shape index: {}]   ;;  %s7839_s6 = inlined_call_operand.vmem [shape: f32[1,2], index: 6, kind: input, shape index: {}]   ;;  %s7840_s7 = inlined_call_operand.vmem [shape: f32[2,2,256], index: 7, kind: output, shape index: {}]  }
   0x1 LB: > { %s5544_s25 = sadd.s32 4294967295, %s6238_s24   ;;  %p5548_p0 = scmp.ge.s32.totalorder %s6238_s24, 1  ;;  %s6238_s24 = sphi %s6281_s24, %s17_s24  }
   0x2   : > { %p237_p1 = scmp.lt.s32.totalorder %s6238_s24, 3 }
   0x4   : > { %p238_p2 = pnand %p5548_p0, %p237_p1 }
   0x6   : > { %241 = sbr.rel (%p238_p2) target bundleno = 1269 (0x4f5), region = 48 }
   0xb   : > { %v316_v0 = vld [vmem:[%s7834_s1 + $0x10] sm:$0x3]  ;;  %p269_p3 = scmp.lt.s32.totalorder %s5544_s25, 1  ;;  %vm465_vm0 = vcmask 1041408   ;;  %v6142_v4 = vld [vmem:[%s7834_s1 + $0x8] sm:$0xff]  ;;  %v6141_v5 = vld [vmem:[%s7834_s1] sm:$0xff] }
   0xc   : > { %v410_v1 = vunpack.c.l.b16 %v316_v0  ;;  %vm416_vm1 = vcmask 293888   ;;  %vm625_vm2 = vcmask 253952   ;;  %vm633_vm3 = vsmask.f32 256  ;;  %v635_v14 = vld [vmem:[#allocation2 + $0xc] sm:$0x1] }
   0xd   : > { %s7888_s25 = smov (!%p269_p3, %s5544_s25), 1  ;;  %vm6323_vm4 = vmand %vm625_vm2, %vm633_vm3  ;;  %vm683_vm5 = vsmask.f32 7938  ;;  %v685_v17 = vld [vmem:[#allocation2 + $0x14] sm:$0x1]  ;;  %vm622_vm7 = vcmask 257024  }
   0xe   : > { %v413_v2 = vpack.c.b16 %v410_v1, %v410_v1  ;;  %s6123_s30 = sshll.u32 %s7888_s25, 7  ;;  %v636_v15 = vsel %vm6323_vm4, 0, %v635_v14  ;;  %vm6331_vm6 = vmand %vm625_vm2, %vm683_vm5  ;;  %v638_v20 = vld [vmem:[#allocation2 + $0x18] sm:$0x1]  ;;  %v688_v22 = vld [vmem:[#allocation2 + $0x20] sm:$0x1] }
   0xf   : > { %s6305_s12 = scalar_lea.vmem %s7833_s0, %s6123_s30  ;;  %637 = vst [vmem:[#allocation2 + $0xc] sm:$0x1] %v636_v15  ;;  %v686_v18 = vsel %vm6331_vm6, 0, %v685_v17  ;;  %v639_v21 = vsel %vm6323_vm4, 0, %v638_v20  ;;  %v6344_v23 = vld [vmem:[%s7835_s2] ss:$0 sm:$0xff]  ;;  %vm6356_vm8 = vmand %vm622_vm7, %vm683_vm5 }
  0x10   : > { %v467_v3 = vsel %vm465_vm0, %v413_v2, 0  ;;  %v6125_v6 = vld [vmem:[%s6305_s12] sm:$0xff]  ;;  %v6126_v7 = vld [vmem:[%s6305_s12 + $0x8] sm:$0xff]  ;;  %v6127_v8 = vld [vmem:[%s6305_s12 + $0x10] sm:$0xff]  ;;  %687 = vst [vmem:[#allocation2 + $0x14] sm:$0x1] %v686_v18 }
  0x11   : > { %474 = vmatpush.bf16.msra.mxu0 %v467_v3  ;;  %v6128_v9 = vld [vmem:[%s6305_s12 + $0x18] sm:$0xff]  ;;  %v6129_v10 = vld [vmem:[%s6305_s12 + $0x20] sm:$0xff]  ;;  %v6130_v11 = vld [vmem:[%s6305_s12 + $0x28] sm:$0xff]  ;;  %640 = vst [vmem:[#allocation2 + $0x18] sm:$0x1] %v639_v21  ;;  %v689_v24 = vsel %vm6331_vm6, 0, %v688_v22 }
  0x12   : > { %v6131_v12 = vld [vmem:[%s6305_s12 + $0x30] sm:$0xff]  ;;  %v6132_v19 = vld [vmem:[%s6305_s12 + $0x38] sm:$0xff]  ;;  %690 = vst [vmem:[#allocation2 + $0x20] sm:$0x1] %v689_v24  ;;  %v6133_v25 = vld [vmem:[%s6305_s12 + $0x40] sm:$0xff]  ;;  %vm2087_vm11 = vcmask 1042432  }
  0x13   : > { %v641_v29 = vld [vmem:[#allocation2 + $0x24] sm:$0x1]  ;;  %v691_v41 = vld [vmem:[#allocation2 + $0x2c] sm:$0x1]  ;;  %vm733_vm9 = vsmask.f32 4368 }
  0x14   : > { %v642_v31 = vsel %vm6323_vm4, 0, %v641_v29  ;;  %v692_v44 = vsel %vm6331_vm6, 0, %v691_v41  ;;  %v6134_v46 = vld [vmem:[%s6305_s12 + $0x48] sm:$0xff]  ;;  %vm6367_vm10 = vmor %vm633_vm3, %vm733_vm9  ;;  %v644_v57 = vld [vmem:[#allocation2 + $0x30] sm:$0x1]  ;;  %vm2088_vm12 = vcmask 1046532  }
  0x15   : > { %475 = vmatpush.bf16.msra.mxu0 %v6142_v4  ;;  %643 = vst [vmem:[#allocation2 + $0x24] sm:$0x1] %v642_v31  ;;  %v645_v61 = vsel %vm6323_vm4, 0, %v644_v57  ;;  %v6382_v63 = vld [vmem:[%s7836_s3 + $0x8] sm:$0xff]  ;;  %v6135_v15 = vld [vmem:[%s6305_s12 + $0x50] sm:$0xff]  ;;  %vm6405_vm13 = vmor %vm2087_vm11, %vm2088_vm12  ;;  %vm1672_vm14 = vcmask 261120  }
  0x16   : > { %v1057_v38 = vld [vmem:[#allocation2 + $0xc] sm:$0xf]  ;;  %693 = vst [vmem:[#allocation2 + $0x2c] sm:$0x1] %v692_v44  ;;  %6213 = vmatpush.bf16.msra.mxu2 %v6382_v63  ;;  %vm1221_vm15 = vsmask.f32 3328 }
  0x17   : > { %v1061_v52 = vld [vmem:[#allocation2 + $0x14] sm:$0x1]  ;;  %646 = vst [vmem:[#allocation2 + $0x30] sm:$0x1] %v645_v61  ;;  %vm1222_vm3 = vsmask.f32 7440 }
  0x18   : > { %v1064_v4 = vld [vmem:[#allocation2 + $0x18] sm:$0xf]  ;;  %vm6490_vm5 = vmor %vm1221_vm15, %vm1222_vm3  ;;  %s6124_s23 = sshll.u32 %s7888_s25, 2 }
  0x19   : > { %476 = vmatpush.bf16.msra.mxu0 %v6141_v5  ;;  %v6206_v37 = vld [vmem:[%s7836_s3 + $0x78] sm:$0xff]  ;;  %s278_s28 = scalar_lea.vmem %s7840_s7, %s6124_s23 }
  0x1c   : > { %5625 = vmatmul.msk.bf16.vlgmr.msra.gmra.mxu0 %vm416_vm1, %v6125_v6 }
  0x2c   : > { %5626 = vmatmul.msk.bf16.gmra.mxu0 %vm416_vm1, %v6126_v7  ;;  %v6389_v7 = vld [vmem:[%s7836_s3] sm:$0xff] }
  0x2d   : > { %6214 = vmatpush.bf16.msra.mxu2 %v6389_v7 }
  0x3c   : > { %5627 = vmatmul.msk.bf16.gmra.mxu0 %vm416_vm1, %v6127_v8  ;;  %v694_v8 = vld [vmem:[#allocation2 + $0x38] sm:$0x1] }
  0x4c   : > { %5628 = vmatmul.msk.bf16.gmra.mxu0 %vm416_vm1, %v6128_v9 }
  0x5c   : > { %5629 = vmatmul.msk.bf16.gmra.mxu0 %vm416_vm1, %v6129_v10 }
  0x6c   : > { %5630 = vmatmul.msk.bf16.gmra.mxu0 %vm416_vm1, %v6130_v11  ;;  %v695_v11 = vsel %vm6331_vm6, 0, %v694_v8 }
  0x6d   : > { %696 = vst [vmem:[#allocation2 + $0x38] sm:$0x1] %v695_v11 }
  0x7c   : > { %5631 = vmatmul.msk.bf16.gmra.mxu0 %vm416_vm1, %v6131_v12 }
  0x8c   : > { %5632 = vmatmul.msk.bf16.gmra.mxu0 %vm416_vm1, %v6132_v19  ;;  %v6402_v19 = vld [vmem:[%s7836_s3 + $0x28] sm:$0xff] }
  0x8d   : > { %6215 = vmatpush.bf16.msra.mxu3 %v6402_v19 }
  0x99   : > { %v478_v26 = vpop.f32.mrf.mxu0 }
  0x9a   : > { %v479_v27 = vadd.f32 %v6344_v23, %v478_v26 }
  0x9c   : > { %v558_v28 = vmax.f32 %v479_v27, 0.0  ;;  %5633 = vmatmul.msk.bf16.gmra.mxu0 %vm416_vm1, %v6133_v25  ;;  %v1068_v27 = vld [vmem:[#allocation2 + $0x20] sm:$0x1] }
  0x9e   : > { %v590_v30 = vpack.c.bf16 %v558_v28, %v558_v28 }
  0xa0   : > { %v736_v32 = vshrl.u32 %v590_v30, 16  ;;  %v739_v35 = vshll.u32 %v590_v30, 16 }
  0xa1   : > { %v480_v33 = vpop.f32.mrf.mxu0 }
  0xa2   : > { %v738_v34 = vrot.slane %v736_v32, 7  ;;  %v481_v36 = vadd.f32 %v6344_v23, %v480_v33  ;;  %v6162_v33 = vld [vmem:[%s7836_s3 + $0x18] sm:$0xff] }
  0xa3   : > { %6211 = vmatpush.bf16.msra.mxu1 %v6162_v33  ;;  %1727 = vmatpush.bf16.msrb.mxu0 %v6162_v33 }
  0xa4   : > { %v741_v39 = vor.u32 %v739_v35, %v738_v34  ;;  %v559_v40 = vmax.f32 %v481_v36, 0.0  ;;  %v742_v53 = vrot.slane %v738_v34, 4  ;;  %v6420_v34 = vld [vmem:[%s7836_s3 + $0x20] sm:$0xff]  ;;  %v647_v35 = vld [vmem:[#allocation2 + $0x3c] sm:$0x1] }
  0xa5   : > { %6216 = vmatpush.bf16.msra.mxu3 %v6420_v34 }
  0xa6   : > { %v1058_v42 = vsel %vm6356_vm8, %v741_v39, %v1057_v38  ;;  %v591_v43 = vpack.c.bf16 %v559_v40, %v559_v40 }
  0xa7   : > { %1059 = vst [vmem:[#allocation2 + $0xc] sm:$0xf] %v1058_v42 }
  0xa8   : > { %v744_v45 = vshrl.u32 %v591_v43, 16  ;;  %v747_v49 = vshll.u32 %v591_v43, 16  ;;  %v648_v43 = vsel %vm6323_vm4, 0, %v647_v35  ;;  %v6182_v35 = vld [vmem:[%s7836_s3 + $0x38] sm:$0xff] }
  0xa9   : > { %v483_v47 = vpop.f32.mrf.mxu0  ;;  %649 = vst [vmem:[#allocation2 + $0x3c] sm:$0x1] %v648_v43 }
  0xaa   : > { %v746_v48 = vrot.slane %v744_v45, 7  ;;  %v484_v50 = vadd.f32 %v6344_v23, %v483_v47 }
  0xac   : > { %v749_v54 = vor.u32 %v747_v49, %v746_v48  ;;  %v751_v55 = vrot.slane %v746_v48, 4  ;;  %v560_v56 = vmax.f32 %v484_v50, 0.0  ;;  %5634 = vmatmul.msk.bf16.gmra.mxu0 %vm416_vm1, %v6134_v46  ;;  %v6161_v46 = vld [vmem:[%s7836_s3 + $0x10] sm:$0xff] }
  0xad   : > { %6212 = vmatpush.bf16.msra.mxu1 %v6161_v46  ;;  %1728 = vmatpush.bf16.msrb.mxu0 %v6161_v46 }
  0xae   : > { %v750_v58 = vsel %vm6367_vm10, %v742_v53, %v749_v54  ;;  %v1062_v59 = vsel %vm6323_vm4, %v751_v55, %v1061_v52  ;;  %v592_v60 = vpack.c.bf16 %v560_v56, %v560_v56  ;;  %v2040_v17 = vld [vmem:[#allocation2 + $0xc] sm:$0xe]  ;;  %v1071_v54 = vld [vmem:[#allocation2 + $0x24] sm:$0xf] }
  0xaf   : > { %1060 = vst.msk [vmem:[#allocation2 + $0x10] sm:$0xf] %vm622_vm7, %v750_v58  ;;  %v5754_v28 = vrot.slane %v2040_v17, 9  ;;  %v697_v58 = vld [vmem:[#allocation2 + $0x44] sm:$0x1] }
  0xb0   : > { %1063 = vst [vmem:[#allocation2 + $0x14] sm:$0x1] %v1062_v59  ;;  %v753_v62 = vshrl.u32 %v592_v60, 16  ;;  %v756_v2 = vshll.u32 %v592_v60, 16  ;;  %v698_v61 = vsel %vm6331_vm6, 0, %v697_v58 }
  0xb1   : > { %v485_v0 = vpop.f32.mrf.mxu0  ;;  %1956 = vmatpush.bf16.msra.mxu0 %v6382_v63  ;;  %699 = vst [vmem:[#allocation2 + $0x44] sm:$0x1] %v698_v61  ;;  %2617 = vmatpush.bf16.msrb.mxu1 %v6182_v35 }
  0xb2   : > { %v755_v1 = vrot.slane %v753_v62, 7  ;;  %v486_v3 = vadd.f32 %v6344_v23, %v485_v0  ;;  %v6184_v0 = vld [vmem:[%s7836_s3 + $0x48] sm:$0xff] }
  0xb3   : > { %3282 = vmatpush.bf16.msrb.mxu2 %v6184_v0 }
  0xb4   : > { %v758_v5 = vor.u32 %v756_v2, %v755_v1  ;;  %v561_v6 = vmax.f32 %v486_v3, 0.0  ;;  %v759_v29 = vrot.slane %v755_v1, 4  ;;  %v6136_v1 = vld [vmem:[%s6305_s12 + $0x58] sm:$0xff] }
  0xb5   : > { %1957 = vmatpush.bf16.msra.mxu0 %v6389_v7 }
  0xb6   : > { %v1065_v9 = vsel %vm6356_vm8, %v758_v5, %v1064_v4  ;;  %v593_v10 = vpack.c.bf16 %v561_v6, %v561_v6  ;;  %v6396_v12 = vld [vmem:[#allocation2 + $0x10] sm:$0xf] }
  0xb7   : > { %1066 = vst [vmem:[#allocation2 + $0x18] sm:$0xf] %v1065_v9  ;;  %v6409_v25 = vld [vmem:[#allocation2 + $0x14] sm:$0x1]  ;;  %v2099_v26 = vrot.slane %v6396_v12, 5 }
  0xb8   : > { %v761_v14 = vshrl.u32 %v593_v10, 16  ;;  %v764_v21 = vshll.u32 %v593_v10, 16  ;;  %v2102_v39 = vrot.slane %v6409_v25, 5  ;;  %v1075_v10 = vld [vmem:[#allocation2 + $0x2c] sm:$0x1] }
  0xb9   : > { %v488_v18 = vpop.f32.mrf.mxu0  ;;  %v2100_v36 = vsel %vm6405_vm13, %v5754_v28, %v2099_v26  ;;  %v2101_v38 = vrot.slane %v2099_v26, 4 }
  0xba   : > { %v763_v20 = vrot.slane %v761_v14, 7  ;;  %v489_v22 = vadd.f32 %v6344_v23, %v488_v18  ;;  %v2208_v48 = vunpack.c.l.b16 %v2100_v36 }
  0xbb   : > { %v2103_v44 = vsel %vm6405_vm13, %v2101_v38, %v2102_v39 }
  0xbc   : > { %v766_v30 = vor.u32 %v764_v21, %v763_v20  ;;  %v768_v31 = vrot.slane %v763_v20, 4  ;;  %v562_v32 = vmax.f32 %v489_v22, 0.0  ;;  %5635 = vmatmul.msk.bf16.gmra.mxu0 %vm416_vm1, %v6135_v15  ;;  %v2209_v49 = vunpack.c.l.b16 %v2103_v44 }
  0xbe   : > { %v767_v40 = vsel %vm6367_vm10, %v759_v29, %v766_v30  ;;  %v1069_v41 = vsel %vm6323_vm4, %v768_v31, %v1068_v27  ;;  %v594_v42 = vpack.c.bf16 %v562_v32, %v562_v32  ;;  %v6440_v55 = vpack.c.b16 %v2209_v49, %v2208_v48  ;;  %v2041_v2 = vld [vmem:[#allocation2 + $0x18] sm:$0xe]  ;;  %v650_v29 = vld [vmem:[#allocation2 + $0x48] sm:$0x1] }
  0xbf   : > { %1067 = vst.msk [vmem:[#allocation2 + $0x1c] sm:$0xf] %vm622_vm7, %v767_v40  ;;  %v5755_v11 = vrot.slane %v2041_v2, 9 }
  0xc0   : > { %1070 = vst [vmem:[#allocation2 + $0x20] sm:$0x1] %v1069_v41  ;;  %v770_v45 = vshrl.u32 %v594_v42, 16  ;;  %v773_v52 = vshll.u32 %v594_v42, 16  ;;  %v651_v42 = vsel %vm6323_vm4, 0, %v650_v29 }
  0xc1   : > { %v490_v47 = vpop.f32.mrf.mxu0  ;;  %652 = vst [vmem:[#allocation2 + $0x48] sm:$0x1] %v651_v42  ;;  %v1171_v42 = vld [vmem:[#allocation2 + $0xc] sm:$0xf] }
  0xc2   : > { %v772_v50 = vrot.slane %v770_v45, 7  ;;  %v491_v53 = vadd.f32 %v6344_v23, %v490_v47  ;;  %v1078_v47 = vld [vmem:[#allocation2 + $0x30] sm:$0xf] }
  0xc4   : > { %v775_v56 = vor.u32 %v773_v52, %v772_v50  ;;  %v563_v57 = vmax.f32 %v491_v53, 0.0  ;;  %v776_v14 = vrot.slane %v772_v50, 4 }
  0xc6   : > { %v1072_v59 = vsel %vm6356_vm8, %v775_v56, %v1071_v54  ;;  %v595_v60 = vpack.c.bf16 %v563_v57, %v563_v57  ;;  %v6446_v62 = vld [vmem:[#allocation2 + $0x1c] sm:$0xf]  ;;  %v6137_v57 = vld [vmem:[%s6305_s12 + $0x60] sm:$0xff] }
  0xc7   : > { %1073 = vst [vmem:[#allocation2 + $0x24] sm:$0xf] %v1072_v59  ;;  %v2106_v4 = vrot.slane %v6446_v62, 5  ;;  %v6455_v9 = vld [vmem:[#allocation2 + $0x20] sm:$0x1] }
  0xc8   : > { %v778_v63 = vshrl.u32 %v595_v60, 16  ;;  %v781_v6 = vshll.u32 %v595_v60, 16  ;;  %v2109_v21 = vrot.slane %v6455_v9, 5 }
  0xc9   : > { %v493_v3 = vpop.f32.mrf.mxu0  ;;  %v2107_v18 = vsel %vm6405_vm13, %v5755_v11, %v2106_v4  ;;  %v2108_v20 = vrot.slane %v2106_v4, 4  ;;  %v700_v4 = vld [vmem:[#allocation2 + $0x50] sm:$0x1] }
  0xca   : > { %v780_v5 = vrot.slane %v778_v63, 7  ;;  %v494_v8 = vadd.f32 %v6344_v23, %v493_v3  ;;  %v2210_v36 = vunpack.c.l.b16 %v2107_v18  ;;  %v1082_v18 = vld [vmem:[#allocation2 + $0x38] sm:$0x1] }
  0xcb   : > { %v2110_v31 = vsel %vm6405_vm13, %v2108_v20, %v2109_v21 }
  0xcc   : > { %v783_v15 = vor.u32 %v781_v6, %v780_v5  ;;  %v785_v17 = vrot.slane %v780_v5, 4  ;;  %v564_v7 = vmax.f32 %v494_v8, 0.0  ;;  %5636 = vmatmul.msk.bf16.gmra.mxu0 %vm416_vm1, %v6136_v1  ;;  %v2211_v38 = vunpack.c.l.b16 %v2110_v31 }
  0xce   : > { %v784_v22 = vsel %vm6367_vm10, %v776_v14, %v783_v15  ;;  %v1076_v26 = vsel %vm6323_vm4, %v785_v17, %v1075_v10  ;;  %v596_v27 = vpack.c.bf16 %v564_v7, %v564_v7  ;;  %v1175_v28 = vld [vmem:[#allocation2 + $0x24] sm:$0xf]  ;;  %v6474_v46 = vpack.c.b16 %v2211_v38, %v2210_v36 }
  0xcf   : > { %1074 = vst.msk [vmem:[#allocation2 + $0x28] sm:$0xf] %vm622_vm7, %v784_v22  ;;  %v1297_v30 = vshrl.u32 %v1175_v28, 16  ;;  %v1300_v33 = vshll.u32 %v1175_v28, 16  ;;  %v2042_v48 = vld [vmem:[#allocation2 + $0x24] sm:$0xe] }
  0xd0   : > { %1077 = vst [vmem:[#allocation2 + $0x2c] sm:$0x1] %v1076_v26  ;;  %v787_v32 = vshrl.u32 %v596_v27, 16  ;;  %v790_v39 = vshll.u32 %v596_v27, 16  ;;  %v5756_v59 = vrot.slane %v2042_v48, 9  ;;  %v701_v26 = vsel %vm6331_vm6, 0, %v700_v4 }
  0xd1   : > { %v495_v40 = vpop.f32.mrf.mxu0  ;;  %v1299_v41 = vrot.slane %v1297_v30, 4  ;;  %v1302_v45 = vrot.slane %v1300_v33, 5  ;;  %702 = vst [vmem:[#allocation2 + $0x50] sm:$0x1] %v701_v26 }
  0xd2   : > { %v789_v43 = vrot.slane %v787_v32, 7  ;;  %v496_v44 = vadd.f32 %v6344_v23, %v495_v40 }
  0xd3   : > { %v1303_v52 = vor.u32 %v1302_v45, %v1299_v41  ;;  %v653_v41 = vld [vmem:[#allocation2 + $0x54] sm:$0x1] }
  0xd4   : > { %v792_v49 = vor.u32 %v790_v39, %v789_v43  ;;  %v565_v50 = vmax.f32 %v496_v44, 0.0  ;;  %v793_v63 = vrot.slane %v789_v43, 4 }
  0xd5   : > { %v1304_v2 = vrot.slane %v1303_v52, 4 }
  0xd6   : > { %v1079_v53 = vsel %vm6356_vm8, %v792_v49, %v1078_v47  ;;  %v597_v54 = vpack.c.bf16 %v565_v50, %v565_v50  ;;  %v6146_v56 = vld [vmem:[#allocation2 + $0x24] sm:$0xff]  ;;  %v654_v49 = vsel %vm6323_vm4, 0, %v653_v41 }
  0xd7   : > { %v1176_v58 = vld [vmem:[#allocation2 + $0x28] sm:$0xf]  ;;  %1080 = vst [vmem:[#allocation2 + $0x30] sm:$0xf] %v1079_v53  ;;  %v1208_v60 = vld [vmem:[#allocation2 + $0x2c] sm:$0x1]  ;;  %5740 = vmatmul.msk.bf16.vlgmr.msra.gmra.mxu2 %vm1672_vm14, %v6146_v56 }
  0xd8   : > { %v2113_v61 = vrot.slane %v1176_v58, 5  ;;  %v1306_v0 = vshll.u32 %v1176_v58, 16  ;;  %v795_v1 = vshrl.u32 %v597_v54, 16  ;;  %v1310_v3 = vshrl.u32 %v1176_v58, 16  ;;  %655 = vst [vmem:[#allocation2 + $0x54] sm:$0x1] %v654_v49 }
  0xd9   : > { %v498_v5 = vpop.f32.mrf.mxu0  ;;  %v2116_v10 = vrot.slane %v1208_v60, 5  ;;  %v798_v15 = vshll.u32 %v597_v54, 16  ;;  %v1316_v22 = vshll.u32 %v1208_v60, 16  ;;  %v1249_v54 = vshrl.u32 %v1171_v42, 16 }
  0xda   : > { %v2114_v6 = vsel %vm6405_vm13, %v5756_v59, %v2113_v61  ;;  %v2115_v8 = vrot.slane %v2113_v61, 4  ;;  %v1308_v11 = vrot.slane %v1306_v0, 5  ;;  %v797_v14 = vrot.slane %v795_v1, 7  ;;  %v1085_v61 = vld [vmem:[#allocation2 + $0x3c] sm:$0xf] }
  0xdb   : > { %v499_v17 = vadd.f32 %v6344_v23, %v498_v5  ;;  %v1312_v7 = vrot.slane %v1310_v3, 4  ;;  %v2212_v21 = vunpack.c.l.b16 %v2114_v6  ;;  %v1318_v44 = vrot.slane %v1316_v22, 5 }
  0xdc   : > { %v2117_v20 = vsel %vm6405_vm13, %v2115_v8, %v2116_v10  ;;  %v800_v27 = vor.u32 %v798_v15, %v797_v14  ;;  %v802_v28 = vrot.slane %v797_v14, 4  ;;  %5637 = vmatmul.msk.bf16.gmra.mxu0 %vm416_vm1, %v6137_v57  ;;  %v1309_v32 = vsel %vm6490_vm5, %v1304_v2, %v1308_v11 }
  0xdd   : > { %v566_v29 = vmax.f32 %v499_v17, 0.0  ;;  %v2213_v30 = vunpack.c.l.b16 %v2117_v20  ;;  %v1313_v33 = vor.u32 %v1312_v7, %v1308_v11  ;;  %v1618_v53 = vunpack.c.l.b16 %v1309_v32  ;;  %v6138_v11 = vld [vmem:[%s6305_s12 + $0x68] sm:$0xff] }
  0xde   : > { %v801_v35 = vsel %vm6367_vm10, %v793_v63, %v800_v27  ;;  %v1083_v36 = vsel %vm6323_vm4, %v802_v28, %v1082_v18  ;;  %v1177_v40 = vld [vmem:[#allocation2 + $0x30] sm:$0xf]  ;;  %v1252_v56 = vshll.u32 %v1171_v42, 16  ;;  %v6507_v5 = vrot.slane %v1249_v54, 4  ;;  %v1089_v42 = vld [vmem:[#allocation2 + $0x44] sm:$0x1] }
  0xdf   : > { %v598_v38 = vpack.c.bf16 %v566_v29, %v566_v29  ;;  %v2241_v39 = vpack.c.b16 %v2213_v30, %v2212_v21  ;;  %1081 = vst.msk [vmem:[#allocation2 + $0x34] sm:$0xf] %vm622_vm7, %v801_v35  ;;  %v1314_v43 = vrot.slane %v1313_v33, 4  ;;  %v1321_v45 = vshrl.u32 %v1177_v40, 16  ;;  %v2043_v0 = vld [vmem:[#allocation2 + $0x30] sm:$0xe] }
  0xe0   : > { %v1324_v47 = vshll.u32 %v1177_v40, 16  ;;  %1084 = vst [vmem:[#allocation2 + $0x38] sm:$0x1] %v1083_v36  ;;  %v5757_v15 = vrot.slane %v2043_v0, 9  ;;  %v6513_v17 = vrot.slane %v1252_v56, 5 }
  0xe1   : > { %v804_v48 = vshrl.u32 %v598_v38, 16  ;;  %5780 = vmatmul.msk.bf16.vlgmr.msra.gmra.mxu3 %vm1672_vm14, %v2241_v39  ;;  %v500_v50 = vpop.f32.mrf.mxu0  ;;  %v1319_v52 = vsel %vm6490_vm5, %v1314_v43, %v1318_v44  ;;  %v807_v58 = vshll.u32 %v598_v38, 16  ;;  %v1323_v63 = vrot.slane %v1321_v45, 4  ;;  %v703_v29 = vld [vmem:[#allocation2 + $0x5c] sm:$0x1] }
  0xe2   : > { %v501_v59 = vadd.f32 %v6344_v23, %v500_v50  ;;  %v1619_v60 = vunpack.c.l.b16 %v1319_v52  ;;  %v1326_v1 = vrot.slane %v1324_v47, 5  ;;  %v704_v47 = vsel %vm6331_vm6, 0, %v703_v29  ;;  %v656_v0 = vld [vmem:[#allocation2 + $0x60] sm:$0x1] }
  0xe3   : > { %v806_v57 = vrot.slane %v804_v48, 7  ;;  %705 = vst [vmem:[#allocation2 + $0x5c] sm:$0x1] %v704_v47 }
  0xe4   : > { %v567_v3 = vmax.f32 %v501_v59, 0.0  ;;  %v1647_v4 = vpack.c.b16 %v1619_v60, %v1618_v53  ;;  %v1327_v20 = vor.u32 %v1326_v1, %v1323_v63 }
  0xe5   : > { %v809_v2 = vor.u32 %v807_v58, %v806_v57  ;;  %v810_v22 = vrot.slane %v806_v57, 4 }
  0xe6   : > { %v599_v8 = vpack.c.bf16 %v567_v3, %v567_v3  ;;  %5652 = vmatmul.msk.bf16.vlgmr.msra.gmra.mxu1 %vm1672_vm14, %v1647_v4  ;;  %v6147_v10 = vld [vmem:[#allocation2 + $0x30] sm:$0xff]  ;;  %v1328_v45 = vrot.slane %v1327_v20, 4  ;;  %v657_v4 = vsel %vm6323_vm4, 0, %v656_v0 }
  0xe7   : > { %v1086_v6 = vsel %vm6356_vm8, %v809_v2, %v1085_v61  ;;  %v1178_v14 = vld [vmem:[#allocation2 + $0x34] sm:$0xf]  ;;  %v1209_v7 = vld [vmem:[#allocation2 + $0x38] sm:$0x1]  ;;  %5741 = vmatmul.msk.bf16.gmra.mxu2 %vm1672_vm14, %v6147_v10  ;;  %658 = vst [vmem:[#allocation2 + $0x60] sm:$0x1] %v657_v4 }
  0xe8   : > { %1087 = vst [vmem:[#allocation2 + $0x3c] sm:$0xf] %v1086_v6  ;;  %v2120_v18 = vrot.slane %v1178_v14, 5  ;;  %v1330_v21 = vshll.u32 %v1178_v14, 16  ;;  %v812_v26 = vshrl.u32 %v599_v8, 16  ;;  %v2123_v27 = vrot.slane %v1209_v7, 5 }
  0xe9   : > { %v1334_v28 = vshrl.u32 %v1178_v14, 16  ;;  %v503_v30 = vpop.f32.mrf.mxu0  ;;  %v1340_v36 = vshll.u32 %v1209_v7, 16  ;;  %v815_v39 = vshll.u32 %v599_v8, 16  ;;  %v1255_v6 = vor.u32 %v6513_v17, %v6507_v5  ;;  %v1092_v5 = vld [vmem:[#allocation2 + $0x48] sm:$0xf] }
  0xea   : > { %v2121_v32 = vsel %vm6405_vm13, %v5757_v15, %v2120_v18  ;;  %v2122_v33 = vrot.slane %v2120_v18, 4  ;;  %v1332_v35 = vrot.slane %v1330_v21, 5  ;;  %v814_v38 = vrot.slane %v812_v26, 7 }
  0xeb   : > { %v504_v40 = vadd.f32 %v6344_v23, %v503_v30  ;;  %v1336_v41 = vrot.slane %v1334_v28, 4  ;;  %v2214_v44 = vunpack.c.l.b16 %v2121_v32  ;;  %v1342_v56 = vrot.slane %v1340_v36, 5 }
  0xec   : > { %v2124_v43 = vsel %vm6405_vm13, %v2122_v33, %v2123_v27  ;;  %v817_v48 = vor.u32 %v815_v39, %v814_v38  ;;  %v819_v49 = vrot.slane %v814_v38, 4  ;;  %5638 = vmatmul.msk.bf16.gmra.mxu0 %vm416_vm1, %v6138_v11  ;;  %v1333_v53 = vsel %vm6490_vm5, %v1328_v45, %v1332_v35 }
  0xed   : > { %v568_v50 = vmax.f32 %v504_v40, 0.0  ;;  %v2215_v52 = vunpack.c.l.b16 %v2124_v43  ;;  %v1337_v54 = vor.u32 %v1336_v41, %v1332_v35  ;;  %v1258_v8 = vshll.u32 %v6396_v12, 16 }
  0xee   : > { %v818_v57 = vsel %vm6367_vm10, %v810_v22, %v817_v48  ;;  %v1090_v58 = vsel %vm6323_vm4, %v819_v49, %v1089_v42  ;;  %v1620_v14 = vunpack.c.l.b16 %v1333_v53  ;;  %v6240_v27 = vmov 0   ;;  %v6139_v42 = vld [vmem:[%s6305_s12 + $0x70] sm:$0xff] }
  0xef   : > { %v600_v59 = vpack.c.bf16 %v568_v50, %v568_v50  ;;  %v2242_v60 = vpack.c.b16 %v2215_v52, %v2214_v44  ;;  %v1179_v61 = vld [vmem:[#allocation2 + $0x3c] sm:$0xf]  ;;  %1088 = vst.msk [vmem:[#allocation2 + $0x40] sm:$0xf] %vm622_vm7, %v818_v57  ;;  %v1338_v63 = vrot.slane %v1337_v54, 4  ;;  %v6547_v33 = vrot.slane %v1255_v6, 4 }
  0xf0   : > { %v1345_v1 = vshrl.u32 %v1179_v61, 16  ;;  %v1348_v2 = vshll.u32 %v1179_v61, 16  ;;  %1091 = vst [vmem:[#allocation2 + $0x44] sm:$0x1] %v1090_v58  ;;  %v2044_v26 = vld [vmem:[#allocation2 + $0x3c] sm:$0xe] }
  0xf1   : > { %v821_v3 = vshrl.u32 %v600_v59, 16  ;;  %5781 = vmatmul.msk.bf16.gmra.mxu3 %vm1672_vm14, %v2242_v60  ;;  %v505_v10 = vpop.f32.mrf.mxu0  ;;  %v1343_v11 = vsel %vm6490_vm5, %v1338_v63, %v1342_v56  ;;  %v824_v20 = vshll.u32 %v600_v59, 16  ;;  %623 = vst.msk [vmem:[#allocation2] sm:$0xf] %vm622_vm7, %v6240_v27  ;;  %v5758_v32 = vrot.slane %v2044_v26, 9 }
  0xf2   : > { %v1347_v15 = vrot.slane %v1345_v1, 4  ;;  %v1350_v7 = vrot.slane %v1348_v2, 5  ;;  %v506_v21 = vadd.f32 %v6344_v23, %v505_v10  ;;  %v1621_v22 = vunpack.c.l.b16 %v1343_v11  ;;  %624 = vst.msk [vmem:[#allocation2 + $0x4] sm:$0xf] %vm622_vm7, %v6240_v27  ;;  %v706_v54 = vld [vmem:[#allocation2 + $0x68] sm:$0x1] }
  0xf3   : > { %v6539_v18 = vrot.slane %v821_v3, 7  ;;  %626 = vst.msk [vmem:[#allocation2 + $0x8] sm:$0x1] %vm625_vm2, %v6240_v27  ;;  %v6549_v35 = vrot.slane %v1258_v8, 5  ;;  %v1262_v36 = vshrl.u32 %v6396_v12, 16  ;;  %v707_v8 = vsel %vm6331_vm6, 0, %v706_v54 }
  0xf4   : > { %v1351_v17 = vor.u32 %v1350_v7, %v1347_v15  ;;  %v569_v29 = vmax.f32 %v506_v21, 0.0  ;;  %v1648_v30 = vpack.c.b16 %v1621_v22, %v1620_v14  ;;  %628 = vst.msk [vmem:[#allocation2 + $0xcc] sm:$0xf] %vm622_vm7, %v6240_v27  ;;  %v1096_v2 = vld [vmem:[#allocation2 + $0x50] sm:$0x1] }
  0xf5   : > { %v826_v28 = vor.u32 %v824_v20, %v6539_v18  ;;  %v827_v38 = vrot.slane %v6539_v18, 4  ;;  %629 = vst.msk [vmem:[#allocation2 + $0xd0] sm:$0xf] %vm622_vm7, %v6240_v27 }
  0xf6   : > { %v601_v40 = vpack.c.bf16 %v569_v29, %v569_v29  ;;  %5653 = vmatmul.msk.bf16.gmra.mxu1 %vm1672_vm14, %v1648_v30  ;;  %v6148_v41 = vld [vmem:[#allocation2 + $0x3c] sm:$0xff]  ;;  %v1352_v44 = vrot.slane %v1351_v17, 4  ;;  %630 = vst.msk [vmem:[#allocation2 + $0xd4] sm:$0x1] %vm625_vm2, %v6240_v27 }
  0xf7   : > { %v1093_v39 = vsel %vm6356_vm8, %v826_v28, %v1092_v5  ;;  %v1180_v43 = vld [vmem:[#allocation2 + $0x40] sm:$0xf]  ;;  %v1210_v45 = vld [vmem:[#allocation2 + $0x44] sm:$0x1]  ;;  %5742 = vmatmul.msk.bf16.gmra.mxu2 %vm1672_vm14, %v6148_v41  ;;  %708 = vst [vmem:[#allocation2 + $0x68] sm:$0x1] %v707_v8 }
  0xf8   : > { %1094 = vst [vmem:[#allocation2 + $0x48] sm:$0xf] %v1093_v39  ;;  %v2127_v47 = vrot.slane %v1180_v43, 5  ;;  %v1354_v48 = vshll.u32 %v1180_v43, 16  ;;  %v829_v49 = vshrl.u32 %v601_v40, 16  ;;  %v832_v50 = vshll.u32 %v601_v40, 16 }
  0xf9   : > { %v2130_v52 = vrot.slane %v1210_v45, 5  ;;  %v1358_v53 = vshrl.u32 %v1180_v43, 16  ;;  %v508_v56 = vpop.f32.mrf.mxu0  ;;  %v1364_v60 = vshll.u32 %v1210_v45, 16  ;;  %v1169_v1 = vld [vmem:[#allocation2] sm:$0xf] }
  0xfa   : > { %v2128_v57 = vsel %vm6405_vm13, %v5758_v32, %v2127_v47  ;;  %v2129_v58 = vrot.slane %v2127_v47, 4  ;;  %v1356_v59 = vrot.slane %v1354_v48, 5  ;;  %v831_v61 = vrot.slane %v829_v49, 7  ;;  %v659_v28 = vld [vmem:[#allocation2 + $0x6c] sm:$0x1] }
  0xfb   : > { %v509_v0 = vadd.f32 %v6344_v23, %v508_v56  ;;  %v1360_v63 = vrot.slane %v1358_v53, 4  ;;  %v2216_v4 = vunpack.c.l.b16 %v2128_v57  ;;  %v1366_v18 = vrot.slane %v1364_v60, 5  ;;  %v6574_v29 = vld [vmem:[#allocation2 + $0x4] sm:$0xf]  ;;  %v6577_v41 = vld [vmem:[#allocation2 + $0x8] sm:$0x1] }
  0xfc   : > { %v2131_v3 = vsel %vm6405_vm13, %v2129_v58, %v2130_v52  ;;  %v1357_v6 = vsel %vm6490_vm5, %v1352_v44, %v1356_v59  ;;  %v834_v10 = vor.u32 %v832_v50, %v831_v61  ;;  %v836_v11 = vrot.slane %v831_v61, 4  ;;  %5639 = vmatmul.msk.bf16.gmra.mxu0 %vm416_vm1, %v6139_v42  ;;  %v1099_v58 = vld [vmem:[#allocation2 + $0x54] sm:$0xf] }
  0xfd   : > { %v570_v14 = vmax.f32 %v509_v0, 0.0  ;;  %v2217_v15 = vunpack.c.l.b16 %v2131_v3  ;;  %v1361_v7 = vor.u32 %v1360_v63, %v1356_v59  ;;  %v1225_v20 = vshrl.u32 %v1169_v1, 16 }
  0xfe   : > { %v1228_v21 = vshll.u32 %v1169_v1, 16  ;;  %v835_v22 = vsel %vm6367_vm10, %v827_v38, %v834_v10  ;;  %v1097_v26 = vsel %vm6323_vm4, %v836_v11, %v1096_v2  ;;  %v1622_v32 = vunpack.c.l.b16 %v1357_v6 }
  0xff   : > { %v602_v5 = vpack.c.bf16 %v570_v14, %v570_v14  ;;  %v2243_v17 = vpack.c.b16 %v2217_v15, %v2216_v4  ;;  %v1181_v27 = vld [vmem:[#allocation2 + $0x48] sm:$0xf]  ;;  %1095 = vst.msk [vmem:[#allocation2 + $0x4c] sm:$0xf] %vm622_vm7, %v835_v22  ;;  %v1362_v30 = vrot.slane %v1361_v7, 4  ;;  %v660_v43 = vsel %vm6323_vm4, 0, %v659_v28 }
 0x100   : > { %v1369_v39 = vshrl.u32 %v1181_v27, 16  ;;  %v1372_v40 = vshll.u32 %v1181_v27, 16  ;;  %1098 = vst [vmem:[#allocation2 + $0x50] sm:$0x1] %v1097_v26  ;;  %v1227_v44 = vrot.slane %v1225_v20, 4  ;;  %v1230_v50 = vrot.slane %v1228_v21, 5 }
 0x101   : > { %v838_v42 = vshrl.u32 %v602_v5, 16  ;;  %v841_v38 = vshll.u32 %v602_v5, 16  ;;  %5782 = vmatmul.msk.bf16.gmra.mxu3 %vm1672_vm14, %v2243_v17  ;;  %v510_v45 = vpop.f32.mrf.mxu0  ;;  %v1367_v47 = vsel %vm6490_vm5, %v1362_v30, %v1366_v18  ;;  %661 = vst [vmem:[#allocation2 + $0x6c] sm:$0x1] %v660_v43  ;;  %v2045_v56 = vld [vmem:[#allocation2 + $0x48] sm:$0xe] }
 0x102   : > { %v1371_v48 = vrot.slane %v1369_v39, 4  ;;  %v1374_v49 = vrot.slane %v1372_v40, 5  ;;  %v511_v53 = vadd.f32 %v6344_v23, %v510_v45  ;;  %v1623_v54 = vunpack.c.l.b16 %v1367_v47  ;;  %v6140_v5 = vld [vmem:[%s6305_s12 + $0x78] sm:$0xff] }
 0x103   : > { %v840_v52 = vrot.slane %v838_v42, 7  ;;  %v1234_v57 = vshll.u32 %v6574_v29, 16  ;;  %v1231_v60 = vor.u32 %v1230_v50, %v1227_v44  ;;  %v1238_v61 = vshrl.u32 %v6574_v29, 16  ;;  %v1103_v47 = vld [vmem:[#allocation2 + $0x5c] sm:$0x1] }
 0x104   : > { %v1375_v59 = vor.u32 %v1374_v49, %v1371_v48  ;;  %v6589_v0 = vrot.slane %v1262_v36, 4  ;;  %v571_v1 = vmax.f32 %v511_v53, 0.0  ;;  %v1649_v2 = vpack.c.b16 %v1623_v54, %v1622_v32 }
 0x105   : > { %v843_v63 = vor.u32 %v841_v38, %v840_v52  ;;  %v1244_v3 = vshll.u32 %v6577_v41, 16  ;;  %v5759_v4 = vrot.slane %v2045_v56, 9  ;;  %v6592_v6 = vrot.slane %v1234_v57, 5 }
 0x106   : > { %v1240_v8 = vrot.slane %v1238_v61, 4  ;;  %v1268_v10 = vshll.u32 %v6409_v25, 16  ;;  %v844_v11 = vrot.slane %v840_v52, 4  ;;  %v603_v15 = vpack.c.bf16 %v571_v1, %v571_v1  ;;  %5654 = vmatmul.msk.bf16.gmra.mxu1 %vm1672_vm14, %v1649_v2  ;;  %v6149_v12 = vld [vmem:[#allocation2 + $0x48] sm:$0xff] }
 0x107   : > { %v1100_v14 = vsel %vm6356_vm8, %v843_v63, %v1099_v58  ;;  %v1182_v36 = vld [vmem:[#allocation2 + $0x4c] sm:$0xf]  ;;  %v1376_v7 = vrot.slane %v1375_v59, 4  ;;  %v1211_v18 = vld [vmem:[#allocation2 + $0x50] sm:$0x1]  ;;  %5743 = vmatmul.msk.bf16.gmra.mxu2 %vm1672_vm14, %v6149_v12  ;;  %v1232_v27 = vrot.slane %v1231_v60, 4  ;;  %v1265_v61 = vor.u32 %v6589_v0, %v6549_v35 }
 0x108   : > { %1101 = vst [vmem:[#allocation2 + $0x54] sm:$0xf] %v1100_v14  ;;  %v2134_v20 = vrot.slane %v1182_v36, 5  ;;  %v1378_v21 = vshll.u32 %v1182_v36, 16  ;;  %v1241_v22 = vor.u32 %v1240_v8, %v6592_v6  ;;  %v846_v26 = vshrl.u32 %v603_v15, 16 }
 0x109   : > { %v1382_v17 = vshrl.u32 %v1182_v36, 16  ;;  %v1246_v28 = vrot.slane %v1244_v3, 5  ;;  %v513_v30 = vpop.f32.mrf.mxu0  ;;  %v2137_v40 = vrot.slane %v1211_v18, 5  ;;  %v849_v43 = vshll.u32 %v603_v15, 16  ;;  %v709_v60 = vld [vmem:[#allocation2 + $0x74] sm:$0x1] }
 0x10a   : > { %v2135_v32 = vsel %vm6405_vm13, %v5759_v4, %v2134_v20  ;;  %v2136_v39 = vrot.slane %v2134_v20, 4  ;;  %v1380_v42 = vrot.slane %v1378_v21, 5  ;;  %v848_v38 = vrot.slane %v846_v26, 7 }
 0x10b   : > { %v514_v44 = vadd.f32 %v6344_v23, %v513_v30  ;;  %v1384_v45 = vrot.slane %v1382_v17, 4  ;;  %v2218_v49 = vunpack.c.l.b16 %v2135_v32  ;;  %v1388_v50 = vshll.u32 %v1211_v18, 16  ;;  %v1106_v17 = vld [vmem:[#allocation2 + $0x60] sm:$0xf]  ;;  %v6633_v32 = vld [vmem:[#allocation2 + $0x18] sm:$0xf] }
 0x10c   : > { %v2138_v48 = vsel %vm6405_vm13, %v2136_v39, %v2137_v40  ;;  %v1242_v52 = vrot.slane %v1241_v22, 4  ;;  %v851_v53 = vor.u32 %v849_v43, %v848_v38  ;;  %v853_v54 = vrot.slane %v848_v38, 4  ;;  %5640 = vmatmul.msk.bf16.gmra.mxu0 %vm416_vm1, %v6140_v5 }
 0x10d   : > { %v572_v56 = vmax.f32 %v514_v44, 0.0  ;;  %v2219_v57 = vunpack.c.l.b16 %v2138_v48  ;;  %v1381_v58 = vsel %vm6490_vm5, %v1376_v7, %v1380_v42  ;;  %v1385_v59 = vor.u32 %v1384_v45, %v1380_v42 }
 0x10e   : > { %v1282_v63 = vshll.u32 %v6446_v62, 16  ;;  %v852_v1 = vsel %vm6367_vm10, %v844_v11, %v851_v53  ;;  %v1104_v2 = vsel %vm6323_vm4, %v853_v54, %v1103_v47  ;;  %v1390_v15 = vrot.slane %v1388_v50, 5 }
 0x10f   : > { %v604_v3 = vpack.c.bf16 %v572_v56, %v572_v56  ;;  %v2244_v4 = vpack.c.b16 %v2219_v57, %v2218_v49  ;;  %v1183_v8 = vld [vmem:[#allocation2 + $0x54] sm:$0xf]  ;;  %1102 = vst.msk [vmem:[#allocation2 + $0x58] sm:$0xf] %vm622_vm7, %v852_v1  ;;  %v1386_v14 = vrot.slane %v1385_v59, 4  ;;  %v1237_v12 = vsel %vm6490_vm5, %v1232_v27, %v6592_v6 }
 0x110   : > { %v1286_v0 = vshrl.u32 %v6446_v62, 16  ;;  %1105 = vst [vmem:[#allocation2 + $0x5c] sm:$0x1] %v1104_v2  ;;  %v1247_v11 = vsel %vm6490_vm5, %v1242_v52, %v1246_v28  ;;  %v710_v18 = vsel %vm6331_vm6, 0, %v709_v60  ;;  %v1624_v22 = vunpack.c.l.b16 %v1381_v58  ;;  %v662_v62 = vld [vmem:[#allocation2 + $0x78] sm:$0x1] }
 0x111   : > { %v855_v36 = vshrl.u32 %v604_v3, 16  ;;  %v858_v7 = vshll.u32 %v604_v3, 16  ;;  %5783 = vmatmul.msk.bf16.gmra.mxu3 %vm1672_vm14, %v2244_v4  ;;  %v515_v20 = vpop.f32.mrf.mxu0  ;;  %v1391_v21 = vsel %vm6490_vm5, %v1386_v14, %v1390_v15  ;;  %711 = vst [vmem:[#allocation2 + $0x74] sm:$0x1] %v710_v18  ;;  %v1393_v6 = vshrl.u32 %v1183_v8, 16 }
 0x112   : > { %v1396_v26 = vshll.u32 %v1183_v8, 16  ;;  %v516_v27 = vadd.f32 %v6344_v23, %v515_v20  ;;  %v1625_v30 = vunpack.c.l.b16 %v1391_v21  ;;  %v663_v28 = vsel %vm6323_vm4, 0, %v662_v62  ;;  %v2046_v42 = vld [vmem:[#allocation2 + $0x54] sm:$0xe]  ;;  %v1110_v21 = vld [vmem:[#allocation2 + $0x68] sm:$0x1] }
 0x113   : > { %v6628_v5 = vrot.slane %v855_v36, 7  ;;  %v1612_v39 = vunpack.c.l.b16 %v1237_v12  ;;  %v1613_v40 = vunpack.c.l.b16 %v1247_v11  ;;  %v1395_v38 = vrot.slane %v1393_v6, 4  ;;  %664 = vst [vmem:[#allocation2 + $0x78] sm:$0x1] %v663_v28 }
 0x114   : > { %v1398_v43 = vrot.slane %v1396_v26, 5  ;;  %v573_v45 = vmax.f32 %v516_v27, 0.0  ;;  %v1650_v47 = vpack.c.b16 %v1625_v30, %v1624_v22  ;;  %v6638_v48 = vrot.slane %v1268_v10, 5 }
 0x115   : > { %v860_v44 = vor.u32 %v858_v7, %v6628_v5  ;;  %v6640_v49 = vrot.slane %v1265_v61, 4  ;;  %v1273_v50 = vshrl.u32 %v6633_v32, 16  ;;  %v6643_v52 = vrot.slane %v1282_v63, 5  ;;  %v6657_v7 = vld [vmem:[%s7835_s2] ss:$0 sm:$0xff] }
 0x116   : > { %v1399_v23 = vor.u32 %v1398_v43, %v1395_v38  ;;  %v605_v54 = vpack.c.bf16 %v573_v45, %v573_v45  ;;  %5655 = vmatmul.msk.bf16.gmra.mxu1 %vm1672_vm14, %v1650_v47  ;;  %v6150_v56 = vld [vmem:[#allocation2 + $0x54] sm:$0xff]  ;;  %v5760_v58 = vrot.slane %v2046_v42, 9  ;;  %v6648_v59 = vrot.slane %v1286_v0, 4  ;;  %v712_v0 = vld [vmem:[#allocation2 + $0x80] sm:$0x1] }
 0x117   : > { %v1107_v53 = vsel %vm6356_vm8, %v860_v44, %v1106_v17  ;;  %v1184_v57 = vld [vmem:[#allocation2 + $0x58] sm:$0xf]  ;;  %v861_v25 = vrot.slane %v6628_v5, 4  ;;  %v1644_v10 = vpack.c.b16 %v1613_v40, %v1612_v39  ;;  %v1212_v60 = vld [vmem:[#allocation2 + $0x5c] sm:$0x1]  ;;  %5744 = vmatmul.msk.bf16.gmra.mxu2 %vm1672_vm14, %v6150_v56  ;;  %v713_v62 = vsel %vm6331_vm6, 0, %v712_v0 }
 0x118   : > { %1108 = vst [vmem:[#allocation2 + $0x60] sm:$0xf] %v1107_v53  ;;  %v2141_v61 = vrot.slane %v1184_v57, 5  ;;  %v863_v1 = vshrl.u32 %v605_v54, 16  ;;  %v866_v63 = vshll.u32 %v605_v54, 16  ;;  %v1400_v2 = vrot.slane %v1399_v23, 4 }
 0x119   : > { %v1402_v3 = vshll.u32 %v1184_v57, 16  ;;  %v518_v4 = vpop.f32.mrf.mxu0  ;;  %v2144_v15 = vrot.slane %v1212_v60, 5  ;;  %v1406_v12 = vshrl.u32 %v1184_v57, 16  ;;  %v1412_v20 = vshll.u32 %v1212_v60, 16  ;;  %714 = vst [vmem:[#allocation2 + $0x80] sm:$0x1] %v713_v62 }
 0x11a   : > { %v2142_v8 = vsel %vm6405_vm13, %v5760_v58, %v2141_v61  ;;  %v2143_v14 = vrot.slane %v2141_v61, 4  ;;  %v865_v36 = vrot.slane %v863_v1, 7  ;;  %v519_v11 = vadd.f32 %v6657_v7, %v518_v4  ;;  %v665_v60 = vld [vmem:[#allocation2 + $0x84] sm:$0x1] }
 0x11b   : > { %v1404_v18 = vrot.slane %v1402_v3, 5  ;;  %v2220_v6 = vunpack.c.l.b16 %v2142_v8  ;;  %v1408_v26 = vrot.slane %v1406_v12, 4  ;;  %v1261_v40 = vsel %vm6490_vm5, %v6547_v33, %v6549_v35 }
 0x11c   : > { %v2145_v22 = vsel %vm6405_vm13, %v2143_v14, %v2144_v15  ;;  %v868_v5 = vor.u32 %v866_v63, %v865_v36  ;;  %v870_v17 = vrot.slane %v865_v36, 4  ;;  %v574_v27 = vmax.f32 %v519_v11, 0.0  ;;  %5649 = vmatmul.msk.bf16.vlgmr.msrb.gmra.mxu0 %vm1672_vm14, %v1644_v10 }
 0x11d   : > { %v2221_v30 = vunpack.c.l.b16 %v2145_v22  ;;  %v1405_v28 = vsel %vm6490_vm5, %v1400_v2, %v1404_v18  ;;  %v1409_v39 = vor.u32 %v1408_v26, %v1404_v18  ;;  %v1271_v42 = vsel %vm6490_vm5, %v6640_v49, %v6638_v48  ;;  %2320 = vmatpush.bf16.msrb.mxu0 %v6402_v19 }
 0x11e   : > { %v869_v38 = vsel %vm6367_vm10, %v861_v25, %v868_v5  ;;  %v1111_v43 = vsel %vm6323_vm4, %v870_v17, %v1110_v21  ;;  %v606_v44 = vpack.c.bf16 %v574_v27, %v574_v27  ;;  %v1414_v33 = vrot.slane %v1412_v20, 5 }
 0x11f   : > { %v2245_v45 = vpack.c.b16 %v2221_v30, %v2220_v6  ;;  %v1185_v47 = vld [vmem:[#allocation2 + $0x60] sm:$0xf]  ;;  %1109 = vst.msk [vmem:[#allocation2 + $0x64] sm:$0xf] %vm622_vm7, %v869_v38  ;;  %v1410_v23 = vrot.slane %v1409_v39, 4  ;;  %v1276_v53 = vshll.u32 %v6633_v32, 16  ;;  %v1289_v54 = vor.u32 %v6648_v59, %v6643_v52 }
 0x120   : > { %v1417_v35 = vshrl.u32 %v1185_v47, 16  ;;  %1112 = vst [vmem:[#allocation2 + $0x68] sm:$0x1] %v1111_v43  ;;  %v872_v48 = vshrl.u32 %v606_v44, 16  ;;  %v1420_v19 = vshll.u32 %v1185_v47, 16  ;;  %v6683_v49 = vrot.slane %v1273_v50, 4 }
 0x121   : > { %5784 = vmatmul.msk.bf16.gmra.mxu3 %vm1672_vm14, %v2245_v45  ;;  %v875_v56 = vshll.u32 %v606_v44, 16  ;;  %v520_v57 = vpop.f32.mrf.mxu0  ;;  %v1415_v58 = vsel %vm6490_vm5, %v1410_v23, %v1414_v33  ;;  %v1626_v25 = vunpack.c.l.b16 %v1405_v28  ;;  %2321 = vmatpush.bf16.msrb.mxu0 %v6420_v34  ;;  %v1113_v50 = vld [vmem:[#allocation2 + $0x6c] sm:$0xf]  ;;  %v1615_v2 = vunpack.c.l.b16 %v1271_v42  ;;  %v2047_v3 = vld [vmem:[#allocation2 + $0x60] sm:$0xe] }
 0x122   : > { %v1419_v10 = vrot.slane %v1417_v35, 4  ;;  %v874_v32 = vrot.slane %v872_v48, 7  ;;  %v521_v61 = vadd.f32 %v6657_v7, %v520_v57  ;;  %v1627_v1 = vunpack.c.l.b16 %v1415_v58  ;;  %v715_v39 = vld [vmem:[#allocation2 + $0x8c] sm:$0x1]  ;;  %v1117_v35 = vld [vmem:[#allocation2 + $0x74] sm:$0x1] }
 0x123   : > { %v1422_v63 = vrot.slane %v1420_v19, 5  ;;  %v666_v59 = vsel %vm6323_vm4, 0, %v665_v60  ;;  %v1278_v4 = vrot.slane %v1276_v53, 5  ;;  %v1614_v12 = vunpack.c.l.b16 %v1261_v40 }
 0x124   : > { %v877_v8 = vor.u32 %v875_v56, %v874_v32  ;;  %v575_v14 = vmax.f32 %v521_v61, 0.0  ;;  %v1651_v15 = vpack.c.b16 %v1627_v1, %v1626_v25  ;;  %667 = vst [vmem:[#allocation2 + $0x84] sm:$0x1] %v666_v59  ;;  %v1292_v34 = vshll.u32 %v6455_v9, 16 }
 0x125   : > { %v1423_v0 = vor.u32 %v1422_v63, %v1419_v10  ;;  %v5761_v21 = vrot.slane %v2047_v3, 9  ;;  %v6697_v22 = vrot.slane %v1289_v54, 4  ;;  %v878_v6 = vrot.slane %v874_v32, 4 }
 0x126   : > { %v1114_v36 = vsel %vm6356_vm8, %v877_v8, %v1113_v50  ;;  %v607_v11 = vpack.c.bf16 %v575_v14, %v575_v14  ;;  %5656 = vmatmul.msk.bf16.gmra.mxu1 %vm1672_vm14, %v1651_v15  ;;  %v6151_v18 = vld [vmem:[#allocation2 + $0x60] sm:$0xff]  ;;  %v1645_v26 = vpack.c.b16 %v1615_v2, %v1614_v12  ;;  %v1279_v17 = vor.u32 %v1278_v4, %v6683_v49 }
 0x127   : > { %v1186_v20 = vld [vmem:[#allocation2 + $0x64] sm:$0xf]  ;;  %1115 = vst [vmem:[#allocation2 + $0x6c] sm:$0xf] %v1114_v36  ;;  %v1213_v62 = vld [vmem:[#allocation2 + $0x68] sm:$0x1]  ;;  %5745 = vmatmul.msk.bf16.gmra.mxu2 %vm1672_vm14, %v6151_v18 }
 0x128   : > { %v2148_v5 = vrot.slane %v1186_v20, 5  ;;  %v880_v27 = vshrl.u32 %v607_v11, 16  ;;  %v883_v9 = vshll.u32 %v607_v11, 16  ;;  %v1424_v30 = vrot.slane %v1423_v0, 4  ;;  %v6183_v0 = vld [vmem:[%s7836_s3 + $0x40] sm:$0xff] }
 0x129   : > { %v1426_v28 = vshll.u32 %v1186_v20, 16  ;;  %v523_v40 = vpop.f32.mrf.mxu0  ;;  %v2151_v43 = vrot.slane %v1213_v62, 5  ;;  %v1430_v44 = vshrl.u32 %v1186_v20, 16  ;;  %v1436_v33 = vshll.u32 %v1213_v62, 16  ;;  %3283 = vmatpush.bf16.msrb.mxu2 %v6183_v0 }
 0x12a   : > { %v2149_v42 = vsel %vm6405_vm13, %v5761_v21, %v2148_v5  ;;  %v2150_v38 = vrot.slane %v2148_v5, 4  ;;  %v882_v45 = vrot.slane %v880_v27, 7  ;;  %v524_v47 = vadd.f32 %v6657_v7, %v523_v40  ;;  %v668_v21 = vld [vmem:[#allocation2 + $0x90] sm:$0x1] }
 0x12b   : > { %v1428_v23 = vrot.slane %v1426_v28, 5  ;;  %v2222_v48 = vunpack.c.l.b16 %v2149_v42  ;;  %v1432_v19 = vrot.slane %v1430_v44, 4  ;;  %v716_v49 = vsel %vm6331_vm6, 0, %v715_v39 }
 0x12c   : > { %v2152_v53 = vsel %vm6405_vm13, %v2150_v38, %v2151_v43  ;;  %v885_v54 = vor.u32 %v883_v9, %v882_v45  ;;  %v887_v56 = vrot.slane %v882_v45, 4  ;;  %v576_v57 = vmax.f32 %v524_v47, 0.0  ;;  %5650 = vmatmul.msk.bf16.gmra.mxu0 %vm1672_vm14, %v1645_v26  ;;  %717 = vst [vmem:[#allocation2 + $0x8c] sm:$0x1] %v716_v49 }
 0x12d   : > { %v2223_v58 = vunpack.c.l.b16 %v2152_v53  ;;  %v1429_v25 = vsel %vm6490_vm5, %v1424_v30, %v1428_v23  ;;  %v1433_v10 = vor.u32 %v1432_v19, %v1428_v23  ;;  %v1280_v60 = vrot.slane %v1279_v17, 4 }
 0x12e   : > { %v1294_v32 = vrot.slane %v1292_v34, 5  ;;  %v886_v61 = vsel %vm6367_vm10, %v878_v6, %v885_v54  ;;  %v1118_v1 = vsel %vm6323_vm4, %v887_v56, %v1117_v35  ;;  %v608_v63 = vpack.c.bf16 %v576_v57, %v576_v57  ;;  %v1187_v2 = vld [vmem:[#allocation2 + $0x6c] sm:$0xf]  ;;  %v6181_v54 = vld [vmem:[%s7836_s3 + $0x30] sm:$0xff] }
 0x12f   : > { %v2246_v50 = vpack.c.b16 %v2223_v58, %v2222_v48  ;;  %1116 = vst.msk [vmem:[#allocation2 + $0x70] sm:$0xf] %vm622_vm7, %v886_v61  ;;  %v1434_v3 = vrot.slane %v1433_v10, 4  ;;  %v1438_v59 = vrot.slane %v1436_v33, 5  ;;  %v1441_v4 = vshrl.u32 %v1187_v2, 16  ;;  %2618 = vmatpush.bf16.msrb.mxu1 %v6181_v54 }
 0x130   : > { %1119 = vst [vmem:[#allocation2 + $0x74] sm:$0x1] %v1118_v1  ;;  %v889_v8 = vshrl.u32 %v608_v63, 16  ;;  %v1285_v14 = vsel %vm6490_vm5, %v1280_v60, %v6643_v52  ;;  %v1295_v15 = vsel %vm6490_vm5, %v6697_v22, %v1294_v32  ;;  %v1444_v12 = vshll.u32 %v1187_v2, 16  ;;  %v1120_v22 = vld [vmem:[#allocation2 + $0x78] sm:$0xf] }
 0x131   : > { %5785 = vmatmul.msk.bf16.gmra.mxu3 %vm1672_vm14, %v2246_v50  ;;  %v892_v34 = vshll.u32 %v608_v63, 16  ;;  %v525_v36 = vpop.f32.mrf.mxu0  ;;  %v1439_v11 = vsel %vm6490_vm5, %v1434_v3, %v1438_v59  ;;  %v1628_v18 = vunpack.c.l.b16 %v1429_v25  ;;  %v1443_v20 = vrot.slane %v1441_v4, 4  ;;  %v2048_v17 = vld [vmem:[#allocation2 + $0x6c] sm:$0xe]  ;;  %v718_v60 = vld [vmem:[#allocation2 + $0x98] sm:$0x1] }
 0x132   : > { %v891_v6 = vrot.slane %v889_v8, 7  ;;  %v526_v52 = vadd.f32 %v6657_v7, %v525_v36  ;;  %v1629_v26 = vunpack.c.l.b16 %v1439_v11  ;;  %v1446_v62 = vrot.slane %v1444_v12, 5  ;;  %v1124_v50 = vld [vmem:[#allocation2 + $0x80] sm:$0x1] }
 0x133   : > { %v1617_v5 = vunpack.c.l.b16 %v1295_v15  ;;  %v669_v27 = vsel %vm6323_vm4, 0, %v668_v21  ;;  %v1616_v39 = vunpack.c.l.b16 %v1285_v14  ;;  %v5762_v45 = vrot.slane %v2048_v17, 9  ;;  %4654 = vmatpush.bf16.msra.mxu1 %v6206_v37 }
 0x134   : > { %v894_v9 = vor.u32 %v892_v34, %v891_v6  ;;  %v577_v30 = vmax.f32 %v526_v52, 0.0  ;;  %v1652_v28 = vpack.c.b16 %v1629_v26, %v1628_v18  ;;  %670 = vst [vmem:[#allocation2 + $0x90] sm:$0x1] %v669_v27  ;;  %v1447_v40 = vor.u32 %v1446_v62, %v1443_v20 }
 0x135   : > { %v895_v47 = vrot.slane %v891_v6, 4  ;;  %v1646_v23 = vpack.c.b16 %v1617_v5, %v1616_v39  ;;  %v719_v4 = vsel %vm6331_vm6, 0, %v718_v60 }
 0x136   : > { %v1121_v42 = vsel %vm6356_vm8, %v894_v9, %v1120_v22  ;;  %v609_v38 = vpack.c.bf16 %v577_v30, %v577_v30  ;;  %5657 = vmatmul.msk.bf16.gmra.mxu1 %vm1672_vm14, %v1652_v28  ;;  %v6152_v43 = vld [vmem:[#allocation2 + $0x6c] sm:$0xff]  ;;  %v1448_v19 = vrot.slane %v1447_v40, 4  ;;  %720 = vst [vmem:[#allocation2 + $0x98] sm:$0x1] %v719_v4  ;;  %v671_v28 = vld [vmem:[#allocation2 + $0x9c] sm:$0x1] }
 0x137   : > { %v1188_v44 = vld [vmem:[#allocation2 + $0x70] sm:$0xf]  ;;  %1122 = vst [vmem:[#allocation2 + $0x78] sm:$0xf] %v1121_v42  ;;  %v1214_v33 = vld [vmem:[#allocation2 + $0x74] sm:$0x1]  ;;  %5746 = vmatmul.msk.bf16.gmra.mxu2 %vm1672_vm14, %v6152_v43 }
 0x138   : > { %v2155_v35 = vrot.slane %v1188_v44, 5  ;;  %v897_v53 = vshrl.u32 %v609_v38, 16  ;;  %v900_v48 = vshll.u32 %v609_v38, 16  ;;  %v1450_v49 = vshll.u32 %v1188_v44, 16  ;;  %v1127_v43 = vld [vmem:[#allocation2 + $0x84] sm:$0xf] }
 0x139   : > { %v528_v56 = vpop.f32.mrf.mxu0  ;;  %v2158_v25 = vrot.slane %v1214_v33, 5  ;;  %v1454_v10 = vshrl.u32 %v1188_v44, 16  ;;  %v1460_v63 = vshll.u32 %v1214_v33, 16 }
 0x13a   : > { %v2156_v57 = vsel %vm6405_vm13, %v5762_v45, %v2155_v35  ;;  %v2157_v58 = vrot.slane %v2155_v35, 4  ;;  %v899_v32 = vrot.slane %v897_v53, 7  ;;  %v529_v61 = vadd.f32 %v6657_v7, %v528_v56 }
 0x13b   : > { %v1452_v1 = vrot.slane %v1450_v49, 5  ;;  %v2224_v3 = vunpack.c.l.b16 %v2156_v57  ;;  %v1456_v59 = vrot.slane %v1454_v10, 4  ;;  %v1462_v52 = vrot.slane %v1460_v63, 5  ;;  %v6143_v49 = vld [vmem:[#allocation2] sm:$0xff] }
 0x13c   : > { %v2159_v2 = vsel %vm6405_vm13, %v2157_v58, %v2158_v25  ;;  %v902_v8 = vor.u32 %v900_v48, %v899_v32  ;;  %v904_v14 = vrot.slane %v899_v32, 4  ;;  %v578_v15 = vmax.f32 %v529_v61, 0.0  ;;  %5651 = vmatmul.msk.bf16.gmra.mxu0 %vm1672_vm14, %v1646_v23 }
 0x13d   : > { %v2225_v12 = vunpack.c.l.b16 %v2159_v2  ;;  %v1453_v0 = vsel %vm6490_vm5, %v1448_v19, %v1452_v1  ;;  %v1457_v34 = vor.u32 %v1456_v59, %v1452_v1  ;;  %v672_v45 = vsel %vm6323_vm4, 0, %v671_v28  ;;  %v721_v1 = vld [vmem:[#allocation2 + $0xa4] sm:$0x1] }
 0x13e   : > { %v903_v36 = vsel %vm6367_vm10, %v895_v47, %v902_v8  ;;  %v1125_v11 = vsel %vm6323_vm4, %v904_v14, %v1124_v50  ;;  %v610_v18 = vpack.c.bf16 %v578_v15, %v578_v15  ;;  %v1189_v21 = vld [vmem:[#allocation2 + $0x78] sm:$0xf]  ;;  %v1630_v9 = vunpack.c.l.b16 %v1453_v0  ;;  %673 = vst [vmem:[#allocation2 + $0x9c] sm:$0x1] %v672_v45 }
 0x13f   : > { %v2247_v20 = vpack.c.b16 %v2225_v12, %v2224_v3  ;;  %1123 = vst.msk [vmem:[#allocation2 + $0x7c] sm:$0xf] %vm622_vm7, %v903_v36  ;;  %v1458_v6 = vrot.slane %v1457_v34, 4  ;;  %v1465_v26 = vshrl.u32 %v1189_v21, 16  ;;  %v1468_v22 = vshll.u32 %v1189_v21, 16 }
 0x140   : > { %1126 = vst [vmem:[#allocation2 + $0x80] sm:$0x1] %v1125_v11  ;;  %v906_v62 = vshrl.u32 %v610_v18, 16  ;;  %v909_v5 = vshll.u32 %v610_v18, 16  ;;  %v2049_v44 = vld [vmem:[#allocation2 + $0x78] sm:$0xe] }
 0x141   : > { %5786 = vmatmul.msk.bf16.gmra.mxu3 %vm1672_vm14, %v2247_v20  ;;  %v530_v17 = vpop.f32.mrf.mxu0  ;;  %v1463_v27 = vsel %vm6490_vm5, %v1458_v6, %v1462_v52  ;;  %v1467_v30 = vrot.slane %v1465_v26, 4  ;;  %v1470_v38 = vrot.slane %v1468_v22, 5  ;;  %v5763_v56 = vrot.slane %v2049_v44, 9  ;;  %v1131_v12 = vld [vmem:[#allocation2 + $0x8c] sm:$0x1] }
 0x142   : > { %v908_v39 = vrot.slane %v906_v62, 7  ;;  %v531_v40 = vadd.f32 %v6657_v7, %v530_v17  ;;  %v1631_v42 = vunpack.c.l.b16 %v1463_v27  ;;  %v722_v11 = vsel %vm6331_vm6, 0, %v721_v1  ;;  %v674_v44 = vld [vmem:[#allocation2 + $0xa8] sm:$0x1] }
 0x143   : > { %v1471_v35 = vor.u32 %v1470_v38, %v1467_v30  ;;  %723 = vst [vmem:[#allocation2 + $0xa4] sm:$0x1] %v722_v11 }
 0x144   : > { %v911_v47 = vor.u32 %v909_v5, %v908_v39  ;;  %v579_v23 = vmax.f32 %v531_v40, 0.0  ;;  %v1653_v33 = vpack.c.b16 %v1631_v42, %v1630_v9  ;;  %v912_v57 = vrot.slane %v908_v39, 4 }
 0x145   : > { %v1472_v32 = vrot.slane %v1471_v35, 4  ;;  %v1134_v35 = vld [vmem:[#allocation2 + $0x90] sm:$0xf] }
 0x146   : > { %v1128_v53 = vsel %vm6356_vm8, %v911_v47, %v1127_v43  ;;  %v611_v48 = vpack.c.bf16 %v579_v23, %v579_v23  ;;  %5658 = vmatmul.msk.bf16.gmra.mxu1 %vm1672_vm14, %v1653_v33  ;;  %v6153_v19 = vld [vmem:[#allocation2 + $0x78] sm:$0xff] }
 0x147   : > { %v1190_v54 = vld [vmem:[#allocation2 + $0x7c] sm:$0xf]  ;;  %1129 = vst [vmem:[#allocation2 + $0x84] sm:$0xf] %v1128_v53  ;;  %v1215_v58 = vld [vmem:[#allocation2 + $0x80] sm:$0x1]  ;;  %5747 = vmatmul.msk.bf16.gmra.mxu2 %vm1672_vm14, %v6153_v19 }
 0x148   : > { %v2162_v25 = vrot.slane %v1190_v54, 5  ;;  %v914_v10 = vshrl.u32 %v611_v48, 16  ;;  %v917_v60 = vshll.u32 %v611_v48, 16  ;;  %v1474_v61 = vshll.u32 %v1190_v54, 16 }
 0x149   : > { %v533_v63 = vpop.f32.mrf.mxu0  ;;  %v2165_v3 = vrot.slane %v1215_v58, 5  ;;  %v1478_v59 = vshrl.u32 %v1190_v54, 16  ;;  %v1484_v15 = vshll.u32 %v1215_v58, 16  ;;  %v675_v19 = vsel %vm6323_vm4, 0, %v674_v44 }
 0x14a   : > { %v2163_v50 = vsel %vm6405_vm13, %v5763_v56, %v2162_v25  ;;  %v2164_v2 = vrot.slane %v2162_v25, 4  ;;  %v916_v4 = vrot.slane %v914_v10, 7  ;;  %v534_v8 = vadd.f32 %v6657_v7, %v533_v63  ;;  %676 = vst [vmem:[#allocation2 + $0xa8] sm:$0x1] %v675_v19 }
 0x14b   : > { %v1476_v14 = vrot.slane %v1474_v61, 5  ;;  %v2226_v34 = vunpack.c.l.b16 %v2163_v50  ;;  %v1480_v36 = vrot.slane %v1478_v59, 4  ;;  %v1486_v30 = vrot.slane %v1484_v15, 5 }
 0x14c   : > { %v2166_v0 = vsel %vm6405_vm13, %v2164_v2, %v2165_v3  ;;  %v919_v18 = vor.u32 %v917_v60, %v916_v4  ;;  %v921_v20 = vrot.slane %v916_v4, 4  ;;  %v580_v21 = vmax.f32 %v534_v8, 0.0  ;;  %5737 = vmatmul.msk.bf16.vlgmr.msra.gmra.mxu0 %vm1672_vm14, %v6143_v49  ;;  %v724_v8 = vld [vmem:[#allocation2 + $0xb0] sm:$0x1] }
 0x14d   : > { %v2227_v6 = vunpack.c.l.b16 %v2166_v0  ;;  %v1477_v52 = vsel %vm6490_vm5, %v1472_v32, %v1476_v14  ;;  %v1481_v26 = vor.u32 %v1480_v36, %v1476_v14  ;;  %v2092_v58 = vrot.slane %v6574_v29, 5 }
 0x14e   : > { %v920_v62 = vsel %vm6367_vm10, %v912_v57, %v919_v18  ;;  %v1132_v22 = vsel %vm6323_vm4, %v921_v20, %v1131_v12  ;;  %v612_v5 = vpack.c.bf16 %v580_v21, %v580_v21  ;;  %v1191_v27 = vld [vmem:[#allocation2 + $0x84] sm:$0xf]  ;;  %v1632_v43 = vunpack.c.l.b16 %v1477_v52  ;;  %v6144_v18 = vld [vmem:[#allocation2 + $0xc] sm:$0xff]  ;;  %v1138_v52 = vld [vmem:[#allocation2 + $0x98] sm:$0x1] }
 0x14f   : > { %v2248_v17 = vpack.c.b16 %v2227_v6, %v2226_v34  ;;  %1130 = vst.msk [vmem:[#allocation2 + $0x88] sm:$0xf] %vm622_vm7, %v920_v62  ;;  %v1482_v9 = vrot.slane %v1481_v26, 4  ;;  %v1489_v28 = vshrl.u32 %v1191_v27, 16  ;;  %v1492_v40 = vshll.u32 %v1191_v27, 16 }
 0x150   : > { %1133 = vst [vmem:[#allocation2 + $0x8c] sm:$0x1] %v1132_v22  ;;  %v923_v39 = vshrl.u32 %v612_v5, 16  ;;  %v926_v47 = vshll.u32 %v612_v5, 16  ;;  %v2050_v53 = vld [vmem:[#allocation2 + $0x84] sm:$0xe] }
 0x151   : > { %5787 = vmatmul.msk.bf16.gmra.mxu3 %vm1672_vm14, %v2248_v17  ;;  %v535_v42 = vpop.f32.mrf.mxu0  ;;  %v1487_v38 = vsel %vm6490_vm5, %v1482_v9, %v1486_v30  ;;  %v1491_v48 = vrot.slane %v1489_v28, 4  ;;  %v1494_v57 = vrot.slane %v1492_v40, 5  ;;  %v2095_v25 = vrot.slane %v6577_v41, 5  ;;  %v2039_v6 = vld [vmem:[#allocation2] sm:$0xe] }
 0x152   : > { %v925_v45 = vrot.slane %v923_v39, 7  ;;  %v536_v23 = vadd.f32 %v6657_v7, %v535_v42  ;;  %v1633_v33 = vunpack.c.l.b16 %v1487_v38  ;;  %v5764_v1 = vrot.slane %v2050_v53, 9 }
 0x153   : > { %v1495_v29 = vor.u32 %v1494_v57, %v1491_v48  ;;  %v725_v17 = vsel %vm6331_vm6, 0, %v724_v8  ;;  %v5753_v42 = vrot.slane %v2039_v6, 9  ;;  %v2094_v38 = vrot.slane %v2092_v58, 4 }
 0x154   : > { %v928_v49 = vor.u32 %v926_v47, %v925_v45  ;;  %v581_v54 = vmax.f32 %v536_v23, 0.0  ;;  %v1654_v56 = vpack.c.b16 %v1633_v33, %v1632_v43  ;;  %v929_v63 = vrot.slane %v925_v45, 4  ;;  %726 = vst [vmem:[#allocation2 + $0xb0] sm:$0x1] %v725_v17 }
 0x155   : > { %v1496_v39 = vrot.slane %v1495_v29, 4 }
 0x156   : > { %v1135_v10 = vsel %vm6356_vm8, %v928_v49, %v1134_v35  ;;  %v613_v60 = vpack.c.bf16 %v581_v54, %v581_v54  ;;  %5659 = vmatmul.msk.bf16.gmra.mxu1 %vm1672_vm14, %v1654_v56  ;;  %v6154_v32 = vld [vmem:[#allocation2 + $0x84] sm:$0xff]  ;;  %v6186_v54 = vld [vmem:[%s7836_s3 + $0x58] sm:$0xff]  ;;  %v2093_v56 = vsel %vm6405_vm13, %v5753_v42, %v2092_v58 }
 0x157   : > { %v1192_v61 = vld [vmem:[#allocation2 + $0x88] sm:$0xf]  ;;  %1136 = vst [vmem:[#allocation2 + $0x90] sm:$0xf] %v1135_v10  ;;  %v1216_v50 = vld [vmem:[#allocation2 + $0x8c] sm:$0x1]  ;;  %5748 = vmatmul.msk.bf16.gmra.mxu2 %vm1672_vm14, %v6154_v32  ;;  %v2096_v32 = vsel %vm6405_vm13, %v2094_v38, %v2095_v25  ;;  %3691 = vmatpush.bf16.msrb.mxu3 %v6186_v54 }
 0x158   : > { %v2169_v2 = vrot.slane %v1192_v61, 5  ;;  %v931_v3 = vshrl.u32 %v613_v60, 16  ;;  %v934_v59 = vshll.u32 %v613_v60, 16  ;;  %v1498_v4 = vshll.u32 %v1192_v61, 16  ;;  %v677_v60 = vld [vmem:[#allocation2 + $0xb4] sm:$0x1] }
 0x159   : > { %v538_v14 = vpop.f32.mrf.mxu0  ;;  %v2172_v0 = vrot.slane %v1216_v50, 5  ;;  %v1502_v34 = vshrl.u32 %v1192_v61, 16  ;;  %v1508_v21 = vshll.u32 %v1216_v50, 16  ;;  %v2206_v61 = vunpack.c.l.b16 %v2093_v56 }
 0x15a   : > { %v2170_v15 = vsel %vm6405_vm13, %v5764_v1, %v2169_v2  ;;  %v2171_v12 = vrot.slane %v2169_v2, 4  ;;  %v933_v36 = vrot.slane %v931_v3, 7  ;;  %v539_v11 = vadd.f32 %v6657_v7, %v538_v14  ;;  %v1974_v26 = vpop.f32.mrf.mxu2  ;;  %v1141_v3 = vld [vmem:[#allocation2 + $0x9c] sm:$0xf] }
 0x15b   : > { %v1500_v20 = vrot.slane %v1498_v4, 5  ;;  %v2228_v22 = vunpack.c.l.b16 %v2170_v15  ;;  %v1504_v5 = vrot.slane %v1502_v34, 4  ;;  %v1510_v35 = vrot.slane %v1508_v21, 5 }
 0x15c   : > { %v2173_v62 = vsel %vm6405_vm13, %v2171_v12, %v2172_v0  ;;  %v936_v27 = vor.u32 %v934_v59, %v933_v36  ;;  %v938_v9 = vrot.slane %v933_v36, 4  ;;  %v582_v30 = vmax.f32 %v539_v11, 0.0  ;;  %5738 = vmatmul.msk.bf16.gmra.mxu0 %vm1672_vm14, %v6144_v18 }
 0x15d   : > { %v2229_v28 = vunpack.c.l.b16 %v2173_v62  ;;  %v1505_v40 = vor.u32 %v1504_v5, %v1500_v20  ;;  %v1501_v19 = vsel %vm6490_vm5, %v1496_v39, %v1500_v20  ;;  %v678_v8 = vsel %vm6323_vm4, 0, %v677_v60 }
 0x15e   : > { %v937_v43 = vsel %vm6367_vm10, %v929_v63, %v936_v27  ;;  %v1139_v44 = vsel %vm6323_vm4, %v938_v9, %v1138_v52  ;;  %v614_v45 = vpack.c.bf16 %v582_v30, %v582_v30  ;;  %v1193_v23 = vld [vmem:[#allocation2 + $0x90] sm:$0xf]  ;;  %v1634_v29 = vunpack.c.l.b16 %v1501_v19  ;;  %679 = vst [vmem:[#allocation2 + $0xb4] sm:$0x1] %v678_v8  ;;  %v727_v30 = vld [vmem:[#allocation2 + $0xbc] sm:$0x1] }
 0x15f   : > { %v2249_v47 = vpack.c.b16 %v2229_v28, %v2228_v22  ;;  %1137 = vst.msk [vmem:[#allocation2 + $0x94] sm:$0xf] %vm622_vm7, %v937_v43  ;;  %v1506_v33 = vrot.slane %v1505_v40, 4  ;;  %v1513_v53 = vshrl.u32 %v1193_v23, 16  ;;  %v1516_v49 = vshll.u32 %v1193_v23, 16 }
 0x160   : > { %1140 = vst [vmem:[#allocation2 + $0x98] sm:$0x1] %v1139_v44  ;;  %v940_v48 = vshrl.u32 %v614_v45, 16  ;;  %v943_v63 = vshll.u32 %v614_v45, 16  ;;  %v2207_v41 = vunpack.c.l.b16 %v2096_v32  ;;  %v2051_v0 = vld [vmem:[#allocation2 + $0x90] sm:$0xe] }
 0x161   : > { %5788 = vmatmul.msk.bf16.gmra.mxu3 %vm1672_vm14, %v2249_v47  ;;  %v540_v57 = vpop.f32.mrf.mxu0  ;;  %v1511_v10 = vsel %vm6490_vm5, %v1506_v33, %v1510_v35  ;;  %v1515_v4 = vrot.slane %v1513_v53, 4  ;;  %v1518_v34 = vrot.slane %v1516_v49, 5  ;;  %v6145_v45 = vld [vmem:[#allocation2 + $0x18] sm:$0xff]  ;;  %v1145_v33 = vld [vmem:[#allocation2 + $0xa4] sm:$0x1]  ;;  %v728_v54 = vsel %vm6331_vm6, 0, %v727_v30 }
 0x162   : > { %v6817_v1 = vrot.slane %v940_v48, 7  ;;  %v541_v50 = vadd.f32 %v6657_v7, %v540_v57  ;;  %v1635_v2 = vunpack.c.l.b16 %v1511_v10  ;;  %v1976_v12 = vpop.f32.mrf.mxu2  ;;  %v6823_v11 = vpack.c.b16 %v2207_v41, %v2206_v61  ;;  %729 = vst [vmem:[#allocation2 + $0xbc] sm:$0x1] %v728_v54 }
 0x163   : > { %v1745_v58 = vpop.f32.mrf.mxu1  ;;  %v1519_v27 = vor.u32 %v1518_v34, %v1515_v4 }
 0x164   : > { %v2338_v59 = vpop.f32.mrf.mxu3  ;;  %v945_v14 = vor.u32 %v943_v63, %v6817_v1  ;;  %v583_v25 = vmax.f32 %v541_v50, 0.0  ;;  %v1975_v15 = vadd.f32 %v1974_v26, %v1745_v58  ;;  %v1655_v36 = vpack.c.b16 %v1635_v2, %v1634_v29 }
 0x165   : > { %v5765_v26 = vrot.slane %v2051_v0, 9  ;;  %v946_v5 = vrot.slane %v6817_v1, 4  ;;  %v1520_v63 = vrot.slane %v1519_v27, 4 }
 0x166   : > { %v1142_v18 = vsel %vm6356_vm8, %v945_v14, %v1141_v3  ;;  %v615_v20 = vpack.c.bf16 %v583_v25, %v583_v25  ;;  %v6827_v21 = vadd.f32 %v2338_v59, %v1975_v15  ;;  %v6155_v6 = vld [vmem:[#allocation2 + $0x90] sm:$0xff]  ;;  %5660 = vmatmul.msk.bf16.gmra.mxu1 %vm1672_vm14, %v1655_v36  ;;  %v680_v36 = vld [vmem:[#allocation2 + $0xc0] sm:$0x1] }
 0x167   : > { %v1194_v52 = vld [vmem:[#allocation2 + $0x94] sm:$0xf]  ;;  %1143 = vst [vmem:[#allocation2 + $0x9c] sm:$0xf] %v1142_v18  ;;  %v1217_v62 = vld [vmem:[#allocation2 + $0x98] sm:$0x1]  ;;  %5749 = vmatmul.msk.bf16.gmra.mxu2 %vm1672_vm14, %v6155_v6 }
 0x168   : > { %v2176_v22 = vrot.slane %v1194_v52, 5  ;;  %v948_v17 = vshrl.u32 %v615_v20, 16  ;;  %v1522_v9 = vshll.u32 %v1194_v52, 16  ;;  %v951_v28 = vshll.u32 %v615_v20, 16 }
 0x169   : > { %v543_v39 = vpop.f32.mrf.mxu0  ;;  %v2179_v42 = vrot.slane %v1217_v62, 5  ;;  %v1526_v38 = vshrl.u32 %v1194_v52, 16  ;;  %v1532_v49 = vshll.u32 %v1217_v62, 16  ;;  %v1148_v62 = vld [vmem:[#allocation2 + $0xa8] sm:$0xf]  ;;  %v681_v27 = vsel %vm6323_vm4, 0, %v680_v36 }
 0x16a   : > { %v2178_v40 = vrot.slane %v2176_v22, 4  ;;  %v950_v43 = vrot.slane %v948_v17, 7  ;;  %v544_v44 = vadd.f32 %v6657_v7, %v543_v39  ;;  %v2177_v47 = vsel %vm6405_vm13, %v5765_v26, %v2176_v22  ;;  %v1979_v32 = vpop.f32.mrf.mxu2  ;;  %682 = vst [vmem:[#allocation2 + $0xc0] sm:$0x1] %v681_v27 }
 0x16b   : > { %v1524_v23 = vrot.slane %v1522_v9, 5  ;;  %v1747_v35 = vpop.f32.mrf.mxu1  ;;  %v1528_v19 = vrot.slane %v1526_v38, 4  ;;  %v2230_v61 = vunpack.c.l.b16 %v2177_v47  ;;  %v1534_v41 = vrot.slane %v1532_v49, 5 }
 0x16c   : > { %v2340_v53 = vpop.f32.mrf.mxu3  ;;  %v2180_v48 = vsel %vm6405_vm13, %v2178_v40, %v2179_v42  ;;  %v953_v56 = vor.u32 %v951_v28, %v950_v43  ;;  %v955_v57 = vrot.slane %v950_v43, 4  ;;  %v584_v10 = vmax.f32 %v544_v44, 0.0  ;;  %5739 = vmatmul.msk.bf16.gmra.mxu0 %vm1672_vm14, %v6145_v45 }
 0x16d   : > { %v1977_v60 = vadd.f32 %v1976_v12, %v1747_v35  ;;  %v2231_v1 = vunpack.c.l.b16 %v2180_v48  ;;  %v1529_v50 = vor.u32 %v1528_v19, %v1524_v23  ;;  %v1525_v25 = vsel %vm6490_vm5, %v1520_v63, %v1524_v23 }
 0x16e   : > { %v954_v2 = vsel %vm6367_vm10, %v946_v5, %v953_v56  ;;  %v1146_v3 = vsel %vm6323_vm4, %v955_v57, %v1145_v33  ;;  %v616_v58 = vpack.c.bf16 %v584_v10, %v584_v10  ;;  %v1195_v29 = vld [vmem:[#allocation2 + $0x9c] sm:$0xf]  ;;  %v1636_v5 = vunpack.c.l.b16 %v1525_v25  ;;  %v730_v56 = vld [vmem:[#allocation2 + $0xc8] sm:$0x1] }
 0x16f   : > { %v6844_v59 = vadd.f32 %v2340_v53, %v1977_v60  ;;  %1144 = vst.msk [vmem:[#allocation2 + $0xa0] sm:$0xf] %vm622_vm7, %v954_v2  ;;  %v2250_v4 = vpack.c.b16 %v2231_v1, %v2230_v61  ;;  %v1530_v8 = vrot.slane %v1529_v50, 4  ;;  %v1537_v15 = vshrl.u32 %v1195_v29, 16  ;;  %v2052_v40 = vld [vmem:[#allocation2 + $0x9c] sm:$0xe] }
 0x170   : > { %1147 = vst [vmem:[#allocation2 + $0xa4] sm:$0x1] %v1146_v3  ;;  %v957_v14 = vshrl.u32 %v616_v58, 16  ;;  %v1540_v12 = vshll.u32 %v1195_v29, 16  ;;  %v960_v20 = vshll.u32 %v616_v58, 16  ;;  %v5766_v35 = vrot.slane %v2052_v40, 9 }
 0x171   : > { %5789 = vmatmul.msk.bf16.gmra.mxu3 %vm1672_vm14, %v2250_v4  ;;  %v545_v0 = vpop.f32.mrf.mxu0  ;;  %v1535_v34 = vsel %vm6490_vm5, %v1530_v8, %v1534_v41  ;;  %v1539_v17 = vrot.slane %v1537_v15, 4  ;;  %v1152_v3 = vld [vmem:[#allocation2 + $0xb0] sm:$0x1] }
 0x172   : > { %v6852_v18 = vrot.slane %v957_v14, 7  ;;  %v546_v6 = vadd.f32 %v6657_v7, %v545_v0  ;;  %v1637_v52 = vunpack.c.l.b16 %v1535_v34  ;;  %v1981_v39 = vpop.f32.mrf.mxu2  ;;  %v1542_v42 = vrot.slane %v1540_v12, 5 }
 0x173   : > { %v1750_v26 = vpop.f32.mrf.mxu1  ;;  %v731_v14 = vsel %vm6331_vm6, 0, %v730_v56 }
 0x174   : > { %v2343_v22 = vpop.f32.mrf.mxu3  ;;  %v962_v9 = vor.u32 %v960_v20, %v6852_v18  ;;  %v585_v30 = vmax.f32 %v546_v6, 0.0  ;;  %v1980_v28 = vadd.f32 %v1979_v32, %v1750_v26  ;;  %v1656_v38 = vpack.c.b16 %v1637_v52, %v1636_v5  ;;  %732 = vst [vmem:[#allocation2 + $0xc8] sm:$0x1] %v731_v14  ;;  %v6880_v5 = vld [vmem:[#allocation2 + $0x10] sm:$0xf] }
 0x175   : > { %v963_v48 = vrot.slane %v6852_v18, 4  ;;  %v1543_v49 = vor.u32 %v1542_v42, %v1539_v17 }
 0x176   : > { %v1149_v43 = vsel %vm6356_vm8, %v962_v9, %v1148_v62  ;;  %v617_v44 = vpack.c.bf16 %v585_v30, %v585_v30  ;;  %v6860_v45 = vadd.f32 %v2343_v22, %v1980_v28  ;;  %v6156_v47 = vld [vmem:[#allocation2 + $0x9c] sm:$0xff]  ;;  %5661 = vmatmul.msk.bf16.gmra.mxu1 %vm1672_vm14, %v1656_v38  ;;  %v2732_v22 = vld [vmem:[#allocation2 + $0xc] sm:$0xf] }
 0x177   : > { %v1196_v23 = vld [vmem:[#allocation2 + $0xa0] sm:$0xf]  ;;  %1150 = vst [vmem:[#allocation2 + $0xa8] sm:$0xf] %v1149_v43  ;;  %v1218_v33 = vld [vmem:[#allocation2 + $0xa4] sm:$0x1]  ;;  %5750 = vmatmul.msk.bf16.gmra.mxu2 %vm1672_vm14, %v6156_v47 }
 0x178   : > { %v2183_v53 = vrot.slane %v1196_v23, 5  ;;  %v965_v19 = vshrl.u32 %v617_v44, 16  ;;  %v1546_v54 = vshll.u32 %v1196_v23, 16  ;;  %v968_v57 = vshll.u32 %v617_v44, 16 }
 0x179   : > { %v548_v10 = vpop.f32.mrf.mxu0  ;;  %v2186_v32 = vrot.slane %v1218_v33, 5  ;;  %v1550_v61 = vshrl.u32 %v1196_v23, 16  ;;  %v1556_v41 = vshll.u32 %v1218_v33, 16  ;;  %v1544_v18 = vrot.slane %v1543_v49, 4  ;;  %v6894_v33 = vld [vmem:[%s7835_s2] ss:$0 sm:$0xff] }
 0x17a   : > { %v2185_v60 = vrot.slane %v2183_v53, 4  ;;  %v967_v1 = vrot.slane %v965_v19, 7  ;;  %v549_v63 = vadd.f32 %v6657_v7, %v548_v10  ;;  %v2184_v50 = vsel %vm6405_vm13, %v5766_v35, %v2183_v53  ;;  %v1984_v7 = vpop.f32.mrf.mxu2 }
 0x17b   : > { %v1548_v2 = vrot.slane %v1546_v54, 5  ;;  %v1752_v58 = vpop.f32.mrf.mxu1  ;;  %v1552_v8 = vrot.slane %v1550_v61, 4  ;;  %v2232_v34 = vunpack.c.l.b16 %v2184_v50  ;;  %v1558_v27 = vrot.slane %v1556_v41, 5 }
 0x17c   : > { %v2345_v29 = vpop.f32.mrf.mxu3  ;;  %v2187_v4 = vsel %vm6405_vm13, %v2185_v60, %v2186_v32  ;;  %v970_v25 = vor.u32 %v968_v57, %v967_v1  ;;  %v972_v15 = vrot.slane %v967_v1, 4  ;;  %v586_v12 = vmax.f32 %v549_v63, 0.0  ;;  %5777 = vmatmul.msk.bf16.vlgmr.msrb.gmra.mxu0 %vm1672_vm14, %v6823_v11 }
 0x17d   : > { %v1982_v0 = vadd.f32 %v1981_v39, %v1752_v58  ;;  %v2233_v36 = vunpack.c.l.b16 %v2187_v4  ;;  %v1553_v20 = vor.u32 %v1552_v8, %v1548_v2  ;;  %v1549_v30 = vsel %vm6490_vm5, %v1544_v18, %v1548_v2  ;;  %v6204_v18 = vld [vmem:[%s7836_s3 + $0x68] sm:$0xff] }
 0x17e   : > { %v971_v6 = vsel %vm6367_vm10, %v963_v48, %v970_v25  ;;  %v1153_v16 = vsel %vm6323_vm4, %v972_v15, %v1152_v3  ;;  %v618_v52 = vpack.c.bf16 %v586_v12, %v586_v12  ;;  %v1197_v26 = vld [vmem:[#allocation2 + $0xa8] sm:$0xf]  ;;  %v2781_v38 = vshrl.u32 %v2732_v22, 16  ;;  %v1155_v48 = vld [vmem:[#allocation2 + $0xb4] sm:$0xf]  ;;  %3989 = vmatpush.bf16.msra.mxu0 %v6204_v18 }
 0x17f   : > { %v6878_v62 = vadd.f32 %v2345_v29, %v1982_v0  ;;  %1151 = vst.msk [vmem:[#allocation2 + $0xac] sm:$0xf] %vm622_vm7, %v971_v6  ;;  %v2251_v11 = vpack.c.b16 %v2233_v36, %v2232_v34  ;;  %v1554_v17 = vrot.slane %v1553_v20, 4  ;;  %v1561_v28 = vshrl.u32 %v1197_v26, 16  ;;  %v2053_v50 = vld [vmem:[#allocation2 + $0xa8] sm:$0xe] }
 0x180   : > { %1154 = vst [vmem:[#allocation2 + $0xb0] sm:$0x1] %v1153_v16  ;;  %v974_v9 = vshrl.u32 %v618_v52, 16  ;;  %v1564_v39 = vshll.u32 %v1197_v26, 16  ;;  %v2784_v43 = vshll.u32 %v2732_v22, 16  ;;  %v2790_v44 = vshll.u32 %v6880_v5, 16 }
 0x181   : > { %5790 = vmatmul.msk.bf16.gmra.mxu3 %vm1672_vm14, %v2251_v11  ;;  %v550_v40 = vpop.f32.mrf.mxu0  ;;  %v1559_v42 = vsel %vm6490_vm5, %v1554_v17, %v1558_v27  ;;  %v977_v23 = vshll.u32 %v618_v52, 16  ;;  %v1638_v54 = vunpack.c.l.b16 %v1549_v30  ;;  %v1563_v56 = vrot.slane %v1561_v28, 4  ;;  %v1159_v30 = vld [vmem:[#allocation2 + $0xbc] sm:$0x1] }
 0x182   : > { %v6889_v47 = vrot.slane %v974_v9, 7  ;;  %v551_v35 = vadd.f32 %v6894_v33, %v550_v40  ;;  %v1639_v53 = vunpack.c.l.b16 %v1559_v42  ;;  %v2794_v57 = vshrl.u32 %v6880_v5, 16  ;;  %v1986_v61 = vpop.f32.mrf.mxu2 }
 0x183   : > { %v1755_v19 = vpop.f32.mrf.mxu1  ;;  %v1566_v1 = vrot.slane %v1564_v39, 5  ;;  %v6899_v2 = vrot.slane %v2781_v38, 4  ;;  %v6901_v3 = vrot.slane %v2784_v43, 5  ;;  %v6907_v14 = vrot.slane %v2790_v44, 5 }
 0x184   : > { %v2348_v49 = vpop.f32.mrf.mxu3  ;;  %v979_v10 = vor.u32 %v977_v23, %v6889_v47  ;;  %v587_v60 = vmax.f32 %v551_v35, 0.0  ;;  %v1985_v32 = vadd.f32 %v1984_v7, %v1755_v19  ;;  %v1657_v63 = vpack.c.b16 %v1639_v53, %v1638_v54 }
 0x185   : > { %v6910_v12 = vrot.slane %v2794_v57, 4  ;;  %v5767_v7 = vrot.slane %v2053_v50, 9  ;;  %v1567_v34 = vor.u32 %v1566_v1, %v1563_v56  ;;  %v980_v9 = vrot.slane %v6889_v47, 4  ;;  %v6203_v47 = vld [vmem:[%s7836_s3 + $0x60] sm:$0xff] }
 0x186   : > { %v1156_v58 = vsel %vm6356_vm8, %v979_v10, %v1155_v48  ;;  %v619_v29 = vpack.c.bf16 %v587_v60, %v587_v60  ;;  %v6905_v4 = vadd.f32 %v2348_v49, %v1985_v32  ;;  %v6157_v8 = vld [vmem:[#allocation2 + $0xa8] sm:$0xff]  ;;  %5662 = vmatmul.msk.bf16.gmra.mxu1 %vm1672_vm14, %v1657_v63  ;;  %3990 = vmatpush.bf16.msra.mxu0 %v6203_v47 }
 0x187   : > { %v1198_v41 = vld [vmem:[#allocation2 + $0xac] sm:$0xf]  ;;  %1157 = vst [vmem:[#allocation2 + $0xb4] sm:$0xf] %v1156_v58  ;;  %v1219_v25 = vld [vmem:[#allocation2 + $0xb0] sm:$0x1]  ;;  %5751 = vmatmul.msk.bf16.gmra.mxu2 %vm1672_vm14, %v6157_v8 }
 0x188   : > { %v2190_v15 = vrot.slane %v1198_v41, 5  ;;  %v982_v0 = vshrl.u32 %v619_v29, 16  ;;  %v1570_v36 = vshll.u32 %v1198_v41, 16  ;;  %v985_v20 = vshll.u32 %v619_v29, 16 }
 0x189   : > { %v553_v6 = vpop.f32.mrf.mxu0  ;;  %v2193_v52 = vrot.slane %v1219_v25, 5  ;;  %v1574_v26 = vshrl.u32 %v1198_v41, 16  ;;  %v1580_v38 = vshll.u32 %v1219_v25, 16  ;;  %v1568_v49 = vrot.slane %v1567_v34, 4 }
 0x18a   : > { %v2192_v16 = vrot.slane %v2190_v15, 4  ;;  %v984_v22 = vrot.slane %v982_v0, 7  ;;  %v554_v11 = vadd.f32 %v6894_v33, %v553_v6  ;;  %v2191_v17 = vsel %vm6405_vm13, %v5767_v7, %v2190_v15  ;;  %v1989_v53 = vpop.f32.mrf.mxu2 }
 0x18b   : > { %v1572_v27 = vrot.slane %v1570_v36, 5  ;;  %v1757_v28 = vpop.f32.mrf.mxu1  ;;  %v1576_v42 = vrot.slane %v1574_v26, 4  ;;  %v2234_v48 = vunpack.c.l.b16 %v2191_v17  ;;  %v1582_v58 = vrot.slane %v1580_v38, 5  ;;  %v6208_v36 = vld [vmem:[%s7836_s3 + $0x88] sm:$0xff] }
 0x18c   : > { %v2350_v39 = vpop.f32.mrf.mxu3  ;;  %v2194_v40 = vsel %vm6405_vm13, %v2192_v16, %v2193_v52  ;;  %v987_v43 = vor.u32 %v985_v20, %v984_v22  ;;  %v989_v44 = vrot.slane %v984_v22, 4  ;;  %v588_v23 = vmax.f32 %v554_v11, 0.0  ;;  %5778 = vmatmul.msk.bf16.gmra.mxu0 %vm1672_vm14, %v6440_v55  ;;  %v6185_v55 = vld [vmem:[%s7836_s3 + $0x50] sm:$0xff]  ;;  %v1162_v52 = vld [vmem:[#allocation2 + $0xc0] sm:$0xf]  ;;  %5063 = vmatpush.bf16.msra.mxu2 %v6208_v36 }
 0x18d   : > { %v1987_v35 = vadd.f32 %v1986_v61, %v1757_v28  ;;  %v2235_v19 = vunpack.c.l.b16 %v2194_v40  ;;  %v1577_v54 = vor.u32 %v1576_v42, %v1572_v27  ;;  %v6933_v61 = vld [vmem:[#allocation2 + $0x14] sm:$0x1]  ;;  %v1573_v63 = vsel %vm6490_vm5, %v1568_v49, %v1572_v27  ;;  %3692 = vmatpush.bf16.msrb.mxu3 %v6185_v55 }
 0x18e   : > { %v988_v56 = vsel %vm6367_vm10, %v980_v9, %v987_v43  ;;  %v1160_v57 = vsel %vm6323_vm4, %v989_v44, %v1159_v30  ;;  %v620_v10 = vpack.c.bf16 %v588_v23, %v588_v23  ;;  %v1199_v32 = vld [vmem:[#allocation2 + $0xb4] sm:$0xf]  ;;  %v2787_v7 = vor.u32 %v6901_v3, %v6899_v2 }
 0x18f   : > { %v6931_v60 = vadd.f32 %v2350_v39, %v1987_v35  ;;  %1158 = vst.msk [vmem:[#allocation2 + $0xb8] sm:$0xf] %vm622_vm7, %v988_v56  ;;  %v2252_v1 = vpack.c.b16 %v2235_v19, %v2234_v48  ;;  %v1578_v50 = vrot.slane %v1577_v54, 4  ;;  %v1585_v41 = vshrl.u32 %v1199_v32, 16  ;;  %v2054_v30 = vld [vmem:[#allocation2 + $0xb4] sm:$0xe] }
 0x190   : > { %1161 = vst [vmem:[#allocation2 + $0xbc] sm:$0x1] %v1160_v57  ;;  %v991_v29 = vshrl.u32 %v620_v10, 16  ;;  %v994_v8 = vshll.u32 %v620_v10, 16  ;;  %v1588_v25 = vshll.u32 %v1199_v32, 16  ;;  %v2800_v34 = vshll.u32 %v6933_v61, 16 }
 0x191   : > { %5791 = vmatmul.msk.bf16.gmra.mxu3 %vm1672_vm14, %v2252_v1  ;;  %v555_v15 = vpop.f32.mrf.mxu0  ;;  %v1583_v0 = vsel %vm6490_vm5, %v1578_v50, %v1582_v58  ;;  %v2797_v16 = vor.u32 %v6910_v12, %v6907_v14  ;;  %v1640_v11 = vunpack.c.l.b16 %v1573_v63  ;;  %v1587_v17 = vrot.slane %v1585_v41, 4 }
 0x192   : > { %v6950_v18 = vrot.slane %v991_v29, 7  ;;  %v556_v20 = vadd.f32 %v6894_v33, %v555_v15  ;;  %v1641_v6 = vunpack.c.l.b16 %v1583_v0  ;;  %v1991_v9 = vpop.f32.mrf.mxu2  ;;  %v1590_v28 = vrot.slane %v1588_v25, 5  ;;  %v6973_v29 = vld [vmem:[#allocation2 + $0x1c] sm:$0xf] }
 0x193   : > { %v1760_v26 = vpop.f32.mrf.mxu1  ;;  %v6956_v40 = vrot.slane %v2787_v7, 4  ;;  %v2802_v33 = vrot.slane %v2800_v34, 5  ;;  %v2798_v23 = vrot.slane %v2797_v16, 4  ;;  %v3463_v58 = vrot.slane %v6880_v5, 5 }
 0x194   : > { %v2353_v22 = vpop.f32.mrf.mxu3  ;;  %v996_v2 = vor.u32 %v994_v8, %v6950_v18  ;;  %v589_v3 = vmax.f32 %v556_v20, 0.0  ;;  %v1990_v27 = vadd.f32 %v1989_v53, %v1760_v26  ;;  %v1658_v39 = vpack.c.b16 %v1641_v6, %v1640_v11  ;;  %v1166_v8 = vld [vmem:[#allocation2 + $0xc8] sm:$0x1] }
 0x195   : > { %v5768_v53 = vrot.slane %v2054_v30, 9  ;;  %v1591_v49 = vor.u32 %v1590_v28, %v1587_v17  ;;  %v997_v1 = vrot.slane %v6950_v18, 4  ;;  %v2814_v11 = vshll.u32 %v6973_v29, 16 }
 0x196   : > { %v1163_v12 = vsel %vm6356_vm8, %v996_v2, %v1162_v52  ;;  %v621_v42 = vpack.c.bf16 %v589_v3, %v589_v3  ;;  %v6960_v38 = vadd.f32 %v2353_v22, %v1990_v27  ;;  %v6158_v43 = vld [vmem:[#allocation2 + $0xb4] sm:$0xff]  ;;  %5663 = vmatmul.msk.bf16.gmra.mxu1 %vm1672_vm14, %v1658_v39  ;;  %v2803_v22 = vsel %vm6490_vm5, %v2798_v23, %v2802_v33 }
 0x197   : > { %v1200_v44 = vld [vmem:[#allocation2 + $0xb8] sm:$0xf]  ;;  %1164 = vst [vmem:[#allocation2 + $0xc0] sm:$0xf] %v1163_v12  ;;  %v1220_v35 = vld [vmem:[#allocation2 + $0xbc] sm:$0x1]  ;;  %5752 = vmatmul.msk.bf16.gmra.mxu2 %vm1672_vm14, %v6158_v43  ;;  %v2793_v33 = vsel %vm6490_vm5, %v6956_v40, %v6907_v14  ;;  %v3169_v12 = vunpack.c.l.b16 %v2803_v22 }
 0x198   : > { %v2197_v47 = vrot.slane %v1200_v44, 5  ;;  %v999_v48 = vshrl.u32 %v621_v42, 16  ;;  %v1002_v19 = vshll.u32 %v621_v42, 16  ;;  %v1594_v54 = vshll.u32 %v1200_v44, 16 }
 0x199   : > { %v6967_v56 = vpop.f32.mrf.mxu0  ;;  %v2200_v32 = vrot.slane %v1220_v35, 5  ;;  %v1598_v55 = vshrl.u32 %v1200_v44, 16  ;;  %v1604_v34 = vshll.u32 %v1220_v35, 16  ;;  %v1592_v52 = vrot.slane %v1591_v49, 4 }
 0x19a   : > { %v2198_v57 = vsel %vm6405_vm13, %v5768_v53, %v2197_v47  ;;  %v2199_v10 = vrot.slane %v2197_v47, 4  ;;  %v1001_v63 = vrot.slane %v999_v48, 7  ;;  %v1596_v50 = vrot.slane %v1594_v54, 5  ;;  %v1994_v18 = vpop.f32.mrf.mxu2 }
 0x19b   : > { %v1762_v41 = vpop.f32.mrf.mxu1  ;;  %v2236_v0 = vunpack.c.l.b16 %v2198_v57  ;;  %v1600_v7 = vrot.slane %v1598_v55, 4  ;;  %v1606_v28 = vrot.slane %v1604_v34, 5  ;;  %v2818_v39 = vshrl.u32 %v6973_v29, 16  ;;  %v2737_v55 = vld [vmem:[#allocation2 + $0x20] sm:$0x1] }
 0x19c   : > { %v2355_v25 = vpop.f32.mrf.mxu3  ;;  %v2201_v15 = vsel %vm6405_vm13, %v2199_v10, %v2200_v32  ;;  %v1004_v36 = vor.u32 %v1002_v19, %v1001_v63  ;;  %v1006_v20 = vrot.slane %v1001_v63, 4  ;;  %v1992_v6 = vadd.f32 %v1991_v9, %v1762_v41  ;;  %5779 = vmatmul.msk.bf16.gmra.mxu0 %vm1672_vm14, %v6474_v46  ;;  %v2735_v9 = vld [vmem:[#allocation2 + $0x18] sm:$0xf]  ;;  %v3397_v10 = vld [vmem:[#allocation2 + $0xc] sm:$0xe] }
 0x19d   : > { %v2237_v16 = vunpack.c.l.b16 %v2201_v15  ;;  %v1601_v26 = vor.u32 %v1600_v7, %v1596_v50  ;;  %v1597_v46 = vsel %vm6490_vm5, %v1592_v52, %v1596_v50  ;;  %v2805_v44 = vshrl.u32 %v2735_v9, 16 }
 0x19e   : > { %v1005_v17 = vsel %vm6367_vm10, %v997_v1, %v1004_v36  ;;  %v1167_v2 = vsel %vm6323_vm4, %v1006_v20, %v1166_v8  ;;  %v6986_v3 = vadd.f32 %v2355_v25, %v1992_v6  ;;  %v1642_v42 = vunpack.c.l.b16 %v1597_v46 }
 0x19f   : > { %v2253_v27 = vpack.c.b16 %v2237_v16, %v2236_v0  ;;  %1165 = vst.msk [vmem:[#allocation2 + $0xc4] sm:$0xf] %vm622_vm7, %v1005_v17  ;;  %v1602_v30 = vrot.slane %v1601_v26, 4  ;;  %v2808_v23 = vshll.u32 %v2735_v9, 16  ;;  %v3465_v47 = vrot.slane %v3463_v58, 4  ;;  %v6187_v0 = vld [vmem:[#allocation2 + $0x18] sm:$0xff] }
 0x1a0   : > { %1168 = vst [vmem:[#allocation2 + $0xc8] sm:$0x1] %v1167_v2  ;;  %v2816_v48 = vrot.slane %v2814_v11, 5  ;;  %v2820_v19 = vrot.slane %v2818_v39, 4  ;;  %v3168_v57 = vunpack.c.l.b16 %v2793_v33  ;;  %v3466_v32 = vrot.slane %v6933_v61, 5 }
 0x1a1   : > { %5792 = vmatmul.msk.bf16.gmra.mxu3 %vm1672_vm14, %v2253_v27  ;;  %v6993_v51 = vpop.f32.mrf.mxu0  ;;  %v1607_v13 = vsel %vm6490_vm5, %v1602_v30, %v1606_v28  ;;  %v2807_v1 = vrot.slane %v2805_v44, 4  ;;  %v2810_v63 = vrot.slane %v2808_v23, 5  ;;  %v5905_v50 = vrot.slane %v3397_v10, 9  ;;  %v7017_v26 = vld [vmem:[#allocation2 + $0x28] sm:$0xf] }
 0x1a2   : > { %v1643_v43 = vunpack.c.l.b16 %v1607_v13  ;;  %v1996_v37 = vpop.f32.mrf.mxu2  ;;  %v3200_v40 = vpack.c.b16 %v3169_v12, %v3168_v57  ;;  %v3467_v8 = vsel %vm6405_vm13, %v3465_v47, %v3466_v32  ;;  %v2821_v41 = vor.u32 %v2820_v19, %v2816_v48  ;;  %v2738_v27 = vld [vmem:[#allocation2 + $0x24] sm:$0xf]  ;;  %v3398_v47 = vld [vmem:[#allocation2 + $0x18] sm:$0xe]  ;;  %v6165_v19 = vld [vmem:[#allocation2 + $0xc] sm:$0xff] }
 0x1a3   : > { %v1765_v35 = vpop.f32.mrf.mxu1  ;;  %v3464_v61 = vsel %vm6405_vm13, %v5905_v50, %v3463_v58  ;;  %v2824_v15 = vshll.u32 %v2737_v55, 16  ;;  %v3578_v7 = vunpack.c.l.b16 %v3467_v8  ;;  %v2811_v34 = vor.u32 %v2810_v63, %v2807_v1  ;;  %v2740_v57 = vld [vmem:[#allocation2 + $0x2c] sm:$0x1]  ;;  %v6188_v8 = vld [vmem:[#allocation2 + $0x24] sm:$0xff] }
 0x1a4   : > { %v2358_v53 = vpop.f32.mrf.mxu3  ;;  %v1995_v49 = vadd.f32 %v1994_v18, %v1765_v35  ;;  %v1659_v54 = vpack.c.b16 %v1643_v43, %v1642_v42  ;;  %v2822_v6 = vrot.slane %v2821_v41, 4  ;;  %v3577_v52 = vunpack.c.l.b16 %v3464_v61 }
 0x1a5   : > { %v2826_v22 = vrot.slane %v2824_v15, 5  ;;  %v2812_v17 = vrot.slane %v2811_v34, 4  ;;  %v3470_v2 = vrot.slane %v6973_v29, 5  ;;  %v2838_v9 = vshll.u32 %v7017_v26, 16 }
 0x1a6   : > { %v7004_v14 = vadd.f32 %v2358_v53, %v1995_v49  ;;  %5664 = vmatmul.msk.bf16.gmra.mxu1 %vm1672_vm14, %v1659_v54  ;;  %v3609_v5 = vpack.c.b16 %v3578_v7, %v3577_v52  ;;  %v2842_v46 = vshrl.u32 %v7017_v26, 16  ;;  %v2829_v13 = vshrl.u32 %v2738_v27, 16 }
 0x1a7   : > { %5889 = vmatmul.msk.bf16.vlgmr.msrb.gmra.mxu2 %vm1672_vm14, %v3200_v40  ;;  %v2827_v58 = vsel %vm6490_vm5, %v2822_v6, %v2826_v22  ;;  %v2817_v28 = vsel %vm6490_vm5, %v2812_v17, %v2816_v48  ;;  %v2832_v33 = vshll.u32 %v2738_v27, 16  ;;  %v3472_v43 = vrot.slane %v3470_v2, 4  ;;  %v7042_v6 = vld [vmem:[#allocation2 + $0x34] sm:$0xf] }
 0x1a8   : > { %v3171_v39 = vunpack.c.l.b16 %v2827_v58  ;;  %v2840_v44 = vrot.slane %v2838_v9, 5  ;;  %v2844_v29 = vrot.slane %v2842_v46, 4  ;;  %v3170_v53 = vunpack.c.l.b16 %v2817_v28  ;;  %v2741_v58 = vld [vmem:[#allocation2 + $0x30] sm:$0xf] }
 0x1a9   : > { %v7010_v25 = vpop.f32.mrf.mxu0  ;;  %v3473_v49 = vrot.slane %v2737_v55, 5  ;;  %v2831_v10 = vrot.slane %v2829_v13, 4  ;;  %v2834_v48 = vrot.slane %v2832_v33, 5  ;;  %v5906_v32 = vrot.slane %v3398_v47, 9  ;;  %v6166_v47 = vld [vmem:[#allocation2 + $0x18] sm:$0xff] }
 0x1aa   : > { %v1999_v16 = vpop.f32.mrf.mxu2  ;;  %v2845_v1 = vor.u32 %v2844_v29, %v2840_v44  ;;  %v2848_v50 = vshll.u32 %v2740_v57, 16  ;;  %v3477_v17 = vrot.slane %v7017_v26, 5  ;;  %v2866_v27 = vshrl.u32 %v7042_v6, 16 }
 0x1ab   : > { %v1767_v36 = vpop.f32.mrf.mxu1  ;;  %v3474_v40 = vsel %vm6405_vm13, %v3472_v43, %v3473_v49  ;;  %v3471_v55 = vsel %vm6405_vm13, %v5906_v32, %v3470_v2  ;;  %v2835_v61 = vor.u32 %v2834_v48, %v2831_v10  ;;  %v2862_v2 = vshll.u32 %v7042_v6, 16  ;;  %v2743_v10 = vld [vmem:[#allocation2 + $0x38] sm:$0x1] }
 0x1ac   : > { %v2360_v20 = vpop.f32.mrf.mxu3  ;;  %v1997_v18 = vadd.f32 %v1996_v37, %v1767_v36  ;;  %6017 = vmatmul.msk.bf16.vlgmr.msra.gmra.mxu0 %vm1672_vm14, %v6187_v0  ;;  %v3201_v37 = vpack.c.b16 %v3171_v39, %v3170_v53  ;;  %v3580_v41 = vunpack.c.l.b16 %v3474_v40  ;;  %v2846_v7 = vrot.slane %v2845_v1, 4  ;;  %v3399_v53 = vld [vmem:[#allocation2 + $0x24] sm:$0xe] }
 0x1ad   : > { %v2836_v22 = vrot.slane %v2835_v61, 4  ;;  %v2853_v39 = vshrl.u32 %v2741_v58, 16  ;;  %v2856_v13 = vshll.u32 %v2741_v58, 16  ;;  %v2864_v43 = vrot.slane %v2862_v2, 5 }
 0x1ae   : > { %v7019_v11 = vadd.f32 %v2360_v20, %v1997_v18  ;;  %v3579_v20 = vunpack.c.l.b16 %v3471_v55  ;;  %v2850_v18 = vrot.slane %v2848_v50, 5  ;;  %v2868_v26 = vrot.slane %v2866_v27, 4  ;;  %v2744_v27 = vld [vmem:[#allocation2 + $0x3c] sm:$0xf] }
 0x1af   : > { %v2841_v46 = vsel %vm6490_vm5, %v2836_v22, %v2840_v44  ;;  %v2855_v48 = vrot.slane %v2853_v39, 4  ;;  %v2858_v44 = vrot.slane %v2856_v13, 5  ;;  %v5907_v32 = vrot.slane %v3399_v53, 9 }
 0x1b0   : > { %v3610_v52 = vpack.c.b16 %v3580_v41, %v3579_v20  ;;  %v2869_v1 = vor.u32 %v2868_v26, %v2864_v43  ;;  %v6189_v41 = vld [vmem:[#allocation2 + $0x30] sm:$0xff]  ;;  %v3484_v2 = vrot.slane %v7042_v6, 5  ;;  %v2880_v26 = vshll.u32 %v2744_v27, 16 }
 0x1b1   : > { %5929 = vmatmul.msk.bf16.vlgmr.msrb.gmra.mxu3 %vm1672_vm14, %v3609_v5  ;;  %v7027_v30 = vpop.f32.mrf.mxu0  ;;  %v2851_v5 = vsel %vm6490_vm5, %v2846_v7, %v2850_v18  ;;  %v3478_v50 = vsel %vm6405_vm13, %v5907_v32, %v3477_v17  ;;  %v3487_v32 = vrot.slane %v2743_v10, 5 }
 0x1b2   : > { %v2001_v35 = vpop.f32.mrf.mxu2  ;;  %v3173_v28 = vunpack.c.l.b16 %v2851_v5  ;;  %v3581_v18 = vunpack.c.l.b16 %v3478_v50  ;;  %v3486_v6 = vrot.slane %v3484_v2, 4 }
 0x1b3   : > { %v1770_v12 = vpop.f32.mrf.mxu1 }
 0x1b4   : > { %v2363_v42 = vpop.f32.mrf.mxu3  ;;  %v2000_v23 = vadd.f32 %v1999_v16, %v1770_v12 }
 0x1b6   : > { %v7031_v54 = vadd.f32 %v2363_v42, %v2000_v23  ;;  %5865 = vmatmul.msk.bf16.vlgmr.msrb.gmra.mxu1 %vm1672_vm14, %v6165_v19  ;;  %v3479_v42 = vrot.slane %v3477_v17, 4  ;;  %v3480_v19 = vrot.slane %v2740_v57, 5  ;;  %v2872_v57 = vshll.u32 %v2743_v10, 16 }
 0x1b7   : > { %5890 = vmatmul.msk.bf16.gmra.mxu2 %vm1672_vm14, %v3201_v37 }
 0x1b8   : > { %v3481_v40 = vsel %vm6405_vm13, %v3479_v42, %v3480_v19  ;;  %v2874_v22 = vrot.slane %v2872_v57, 5  ;;  %v2877_v42 = vshrl.u32 %v2744_v27, 16  ;;  %v3488_v57 = vsel %vm6405_vm13, %v3486_v6, %v3487_v32  ;;  %v7095_v27 = vld [vmem:[#allocation2 + $0x4c] sm:$0xf] }
 0x1b9   : > { %v7037_v63 = vpop.f32.mrf.mxu0  ;;  %v3582_v61 = vunpack.c.l.b16 %v3481_v40 }
 0x1ba   : > { %v2004_v36 = vpop.f32.mrf.mxu2 }
 0x1bb   : > { %v1772_v15 = vpop.f32.mrf.mxu1  ;;  %v3611_v17 = vpack.c.b16 %v3582_v61, %v3581_v18 }
 0x1bc   : > { %v2365_v0 = vpop.f32.mrf.mxu3  ;;  %v2002_v34 = vadd.f32 %v2001_v35, %v1772_v15  ;;  %6018 = vmatmul.msk.bf16.gmra.mxu0 %vm1672_vm14, %v6188_v8  ;;  %v3172_v35 = vunpack.c.l.b16 %v2841_v46  ;;  %v2859_v15 = vor.u32 %v2858_v44, %v2855_v48  ;;  %v3400_v48 = vld [vmem:[#allocation2 + $0x30] sm:$0xe]  ;;  %v6167_v44 = vld [vmem:[#allocation2 + $0x24] sm:$0xff] }
 0x1bd   : > { %v5908_v50 = vrot.slane %v3400_v48, 9 }
 0x1be   : > { %v7044_v16 = vadd.f32 %v2365_v0, %v2002_v34  ;;  %v3202_v37 = vpack.c.b16 %v3173_v28, %v3172_v35  ;;  %v2870_v34 = vrot.slane %v2869_v1, 4  ;;  %v2860_v58 = vrot.slane %v2859_v15, 4  ;;  %v2746_v1 = vld [vmem:[#allocation2 + $0x44] sm:$0x1] }
 0x1bf   : > { %v3485_v15 = vsel %vm6405_vm13, %v5908_v50, %v3484_v2  ;;  %v2896_v10 = vshll.u32 %v2746_v1, 16 }
 0x1c0   : > { %v2865_v13 = vsel %vm6490_vm5, %v2860_v58, %v2864_v43 }
 0x1c1   : > { %5930 = vmatmul.msk.bf16.gmra.mxu3 %vm1672_vm14, %v3610_v52  ;;  %v7052_v9 = vpop.f32.mrf.mxu0  ;;  %v7068_v52 = vld [vmem:[#allocation2 + $0x40] sm:$0xf] }
 0x1c2   : > { %v2006_v23 = vpop.f32.mrf.mxu2  ;;  %v2886_v46 = vshll.u32 %v7068_v52, 16  ;;  %v2890_v28 = vshrl.u32 %v7068_v52, 16 }
 0x1c3   : > { %v1775_v33 = vpop.f32.mrf.mxu1 }
 0x1c4   : > { %v2368_v12 = vpop.f32.mrf.mxu3  ;;  %v2005_v29 = vadd.f32 %v2004_v36, %v1775_v33  ;;  %v2888_v35 = vrot.slane %v2886_v46, 5  ;;  %v2892_v53 = vrot.slane %v2890_v28, 4  ;;  %v2898_v46 = vrot.slane %v2896_v10, 5 }
 0x1c6   : > { %v7056_v49 = vadd.f32 %v2368_v12, %v2005_v29  ;;  %5866 = vmatmul.msk.bf16.gmra.mxu1 %vm1672_vm14, %v6166_v47 }
 0x1c7   : > { %5891 = vmatmul.msk.bf16.gmra.mxu2 %vm1672_vm14, %v3202_v37  ;;  %v3174_v37 = vunpack.c.l.b16 %v2865_v13  ;;  %v3491_v13 = vrot.slane %v7068_v52, 5 }
 0x1c9   : > { %v1959_v55 = vpop.f32.mrf.mxu0  ;;  %v3493_v48 = vrot.slane %v3491_v13, 4 }
 0x1ca   : > { %v7065_v8 = vadd.f32 %v1959_v55, %v6967_v56  ;;  %v2009_v20 = vpop.f32.mrf.mxu2  ;;  %v2875_v56 = vsel %vm6490_vm5, %v2870_v34, %v2874_v22  ;;  %v2882_v55 = vrot.slane %v2880_v26, 5  ;;  %v3584_v34 = vunpack.c.l.b16 %v3488_v57  ;;  %v6168_v57 = vld [vmem:[#allocation2 + $0x30] sm:$0xff] }
 0x1cb   : > { %v1777_v0 = vpop.f32.mrf.mxu1  ;;  %v3175_v12 = vunpack.c.l.b16 %v2875_v56  ;;  %v3583_v56 = vunpack.c.l.b16 %v3485_v15  ;;  %v2914_v26 = vshrl.u32 %v7095_v27, 16  ;;  %v2749_v15 = vld [vmem:[#allocation2 + $0x50] sm:$0x1] }
 0x1cc   : > { %v2370_v7 = vpop.f32.mrf.mxu3  ;;  %v2007_v36 = vadd.f32 %v2006_v23, %v1777_v0  ;;  %6019 = vmatmul.msk.bf16.gmra.mxu0 %vm1672_vm14, %v6189_v41  ;;  %v2893_v41 = vor.u32 %v2892_v53, %v2888_v35 }
 0x1cd   : > { %v3203_v43 = vpack.c.b16 %v3175_v12, %v3174_v37  ;;  %v3612_v2 = vpack.c.b16 %v3584_v34, %v3583_v56  ;;  %v2747_v12 = vld [vmem:[#allocation2 + $0x48] sm:$0xf] }
 0x1ce   : > { %v7070_v5 = vadd.f32 %v2370_v7, %v2007_v36  ;;  %v6190_v7 = vld [vmem:[#allocation2 + $0x3c] sm:$0xff]  ;;  %v2894_v22 = vrot.slane %v2893_v41, 4  ;;  %v3494_v41 = vrot.slane %v2746_v1, 5  ;;  %v2920_v1 = vshll.u32 %v2749_v15, 16 }
 0x1d0   : > { %v3495_v34 = vsel %vm6405_vm13, %v3493_v48, %v3494_v41 }
 0x1d1   : > { %5931 = vmatmul.msk.bf16.gmra.mxu3 %vm1672_vm14, %v3611_v17  ;;  %v1961_v39 = vpop.f32.mrf.mxu0 }
 0x1d2   : > { %v7081_v33 = vadd.f32 %v1961_v39, %v6993_v51  ;;  %v2011_v19 = vpop.f32.mrf.mxu2  ;;  %v2879_v51 = vrot.slane %v2877_v42, 4  ;;  %v2910_v42 = vshll.u32 %v7095_v27, 16 }
 0x1d3   : > { %v1780_v29 = vpop.f32.mrf.mxu1 }
 0x1d4   : > { %v2373_v23 = vpop.f32.mrf.mxu3  ;;  %v2010_v47 = vadd.f32 %v2009_v20, %v1780_v29  ;;  %v2883_v36 = vor.u32 %v2882_v55, %v2879_v51  ;;  %v2912_v52 = vrot.slane %v2910_v42, 5  ;;  %v3401_v55 = vld [vmem:[#allocation2 + $0x3c] sm:$0xe]  ;;  %v7122_v42 = vld [vmem:[#allocation2 + $0x58] sm:$0xf] }
 0x1d5   : > { %v2938_v48 = vshrl.u32 %v7122_v42, 16 }
 0x1d6   : > { %v7083_v40 = vadd.f32 %v2373_v23, %v2010_v47  ;;  %5867 = vmatmul.msk.bf16.gmra.mxu1 %vm1672_vm14, %v6167_v44  ;;  %v2884_v39 = vrot.slane %v2883_v36, 4  ;;  %v2901_v47 = vshrl.u32 %v2747_v12, 16  ;;  %v2916_v44 = vrot.slane %v2914_v26, 4 }
 0x1d7   : > { %5892 = vmatmul.msk.bf16.gmra.mxu2 %vm1672_vm14, %v3203_v43  ;;  %v2940_v41 = vrot.slane %v2938_v48, 4  ;;  %v7149_v48 = vld [vmem:[#allocation2 + $0x64] sm:$0xf] }
 0x1d8   : > { %v2889_v23 = vsel %vm6490_vm5, %v2884_v39, %v2888_v35  ;;  %v2903_v35 = vrot.slane %v2901_v47, 4  ;;  %v2917_v36 = vor.u32 %v2916_v44, %v2912_v52 }
 0x1d9   : > { %v1964_v61 = vpop.f32.mrf.mxu0  ;;  %v3176_v51 = vunpack.c.l.b16 %v2889_v23 }
 0x1da   : > { %v7092_v0 = vadd.f32 %v1964_v61, %v7010_v25  ;;  %v2014_v58 = vpop.f32.mrf.mxu2  ;;  %v2899_v25 = vsel %vm6490_vm5, %v2894_v22, %v2898_v46 }
 0x1db   : > { %v1782_v20 = vpop.f32.mrf.mxu1  ;;  %v3177_v53 = vunpack.c.l.b16 %v2899_v25 }
 0x1dc   : > { %v2375_v18 = vpop.f32.mrf.mxu3  ;;  %v2012_v17 = vadd.f32 %v2011_v19, %v1782_v20  ;;  %6020 = vmatmul.msk.bf16.gmra.mxu0 %vm1672_vm14, %v6190_v7  ;;  %v2904_v19 = vshll.u32 %v2747_v12, 16  ;;  %v5909_v7 = vrot.slane %v3401_v55, 9 }
 0x1dd   : > { %v3204_v61 = vpack.c.b16 %v3177_v53, %v3176_v51  ;;  %v3498_v53 = vrot.slane %v7095_v27, 5 }
 0x1de   : > { %v7097_v28 = vadd.f32 %v2375_v18, %v2012_v17  ;;  %v2906_v10 = vrot.slane %v2904_v19, 5  ;;  %v3492_v18 = vsel %vm6405_vm13, %v5909_v7, %v3491_v13  ;;  %v6191_v17 = vld [vmem:[#allocation2 + $0x48] sm:$0xff]  ;;  %v2750_v19 = vld [vmem:[#allocation2 + $0x54] sm:$0xf] }
 0x1df   : > { %v3585_v12 = vunpack.c.l.b16 %v3492_v18  ;;  %v2925_v51 = vshrl.u32 %v2750_v19, 16  ;;  %v2928_v55 = vshll.u32 %v2750_v19, 16  ;;  %v3402_v7 = vld [vmem:[#allocation2 + $0x48] sm:$0xe]  ;;  %v3501_v18 = vrot.slane %v2749_v15, 5 }
 0x1e0   : > { %v2907_v56 = vor.u32 %v2906_v10, %v2903_v35 }
 0x1e1   : > { %5932 = vmatmul.msk.bf16.gmra.mxu3 %vm1672_vm14, %v3612_v2  ;;  %v1966_v29 = vpop.f32.mrf.mxu0  ;;  %v2918_v2 = vrot.slane %v2917_v36, 4 }
 0x1e2   : > { %v7108_v6 = vadd.f32 %v1966_v29, %v7027_v30  ;;  %v2016_v43 = vpop.f32.mrf.mxu2  ;;  %v2922_v29 = vrot.slane %v2920_v1, 5  ;;  %v2908_v13 = vrot.slane %v2907_v56, 4  ;;  %v5910_v56 = vrot.slane %v3402_v7, 9 }
 0x1e3   : > { %v1785_v32 = vpop.f32.mrf.mxu1 }
 0x1e4   : > { %v2378_v37 = vpop.f32.mrf.mxu3  ;;  %v2015_v50 = vadd.f32 %v2014_v58, %v1785_v32  ;;  %v3586_v58 = vunpack.c.l.b16 %v3495_v34  ;;  %v2923_v47 = vsel %vm6490_vm5, %v2918_v2, %v2922_v29  ;;  %v2913_v32 = vsel %vm6490_vm5, %v2908_v13, %v2912_v52 }
 0x1e5   : > { %v3179_v27 = vunpack.c.l.b16 %v2923_v47  ;;  %v3178_v10 = vunpack.c.l.b16 %v2913_v32  ;;  %v2927_v52 = vrot.slane %v2925_v51, 4 }
 0x1e6   : > { %v7110_v30 = vadd.f32 %v2378_v37, %v2015_v50  ;;  %5868 = vmatmul.msk.bf16.gmra.mxu1 %vm1672_vm14, %v6168_v57  ;;  %v3613_v23 = vpack.c.b16 %v3586_v58, %v3585_v12  ;;  %v2934_v37 = vshll.u32 %v7122_v42, 16  ;;  %v3500_v50 = vrot.slane %v3498_v53, 4 }
 0x1e7   : > { %5893 = vmatmul.msk.bf16.gmra.mxu2 %vm1672_vm14, %v3204_v61  ;;  %v3205_v1 = vpack.c.b16 %v3179_v27, %v3178_v10  ;;  %v2930_v58 = vrot.slane %v2928_v55, 5  ;;  %v3505_v55 = vrot.slane %v7122_v42, 5 }
 0x1e8   : > { %v2936_v57 = vrot.slane %v2934_v37, 5 }
 0x1e9   : > { %v1969_v20 = vpop.f32.mrf.mxu0 }
 0x1ea   : > { %v7119_v22 = vadd.f32 %v1969_v20, %v7037_v63  ;;  %v2019_v25 = vpop.f32.mrf.mxu2  ;;  %v6169_v20 = vld [vmem:[#allocation2 + $0x3c] sm:$0xff]  ;;  %v2941_v2 = vor.u32 %v2940_v41, %v2936_v57 }
 0x1eb   : > { %v1787_v39 = vpop.f32.mrf.mxu1  ;;  %v2753_v41 = vld [vmem:[#allocation2 + $0x60] sm:$0xf] }
 0x1ec   : > { %v2380_v46 = vpop.f32.mrf.mxu3  ;;  %6021 = vmatmul.msk.bf16.gmra.mxu0 %vm1672_vm14, %v6191_v17  ;;  %v2017_v26 = vadd.f32 %v2016_v43, %v1787_v39  ;;  %v2752_v17 = vld [vmem:[#allocation2 + $0x5c] sm:$0x1]  ;;  %v2942_v13 = vrot.slane %v2941_v2, 4  ;;  %v3403_v2 = vld [vmem:[#allocation2 + $0x54] sm:$0xe] }
 0x1ed   : > { %v2944_v15 = vshll.u32 %v2752_v17, 16 }
 0x1ee   : > { %v7125_v63 = vadd.f32 %v2380_v46, %v2017_v26  ;;  %v3502_v46 = vsel %vm6405_vm13, %v3500_v50, %v3501_v18  ;;  %v6192_v26 = vld [vmem:[#allocation2 + $0x54] sm:$0xff]  ;;  %v3507_v18 = vrot.slane %v3505_v55, 4 }
 0x1ef   : > { %v3588_v29 = vunpack.c.l.b16 %v3502_v46  ;;  %v2946_v27 = vrot.slane %v2944_v15, 5  ;;  %v6170_v15 = vld [vmem:[#allocation2 + $0x48] sm:$0xff] }
 0x1f1   : > { %5933 = vmatmul.msk.bf16.gmra.mxu3 %vm1672_vm14, %v3613_v23  ;;  %v1971_v44 = vpop.f32.mrf.mxu0  ;;  %v2931_v23 = vor.u32 %v2930_v58, %v2927_v52  ;;  %v2947_v50 = vsel %vm6490_vm5, %v2942_v13, %v2946_v27 }
 0x1f2   : > { %v7135_v43 = vadd.f32 %v1971_v44, %v7052_v9  ;;  %v2021_v36 = vpop.f32.mrf.mxu2  ;;  %v3181_v42 = vunpack.c.l.b16 %v2947_v50 }
 0x1f3   : > { %v1790_v61 = vpop.f32.mrf.mxu1 }
 0x1f4   : > { %v2383_v35 = vpop.f32.mrf.mxu3  ;;  %v2020_v34 = vadd.f32 %v2019_v25, %v1790_v61  ;;  %v3499_v25 = vsel %vm6405_vm13, %v5910_v56, %v3498_v53  ;;  %v2932_v53 = vrot.slane %v2931_v23, 4  ;;  %v2958_v61 = vshll.u32 %v7149_v48, 16  ;;  %v2755_v23 = vld [vmem:[#allocation2 + $0x68] sm:$0x1] }
 0x1f5   : > { %v3587_v37 = vunpack.c.l.b16 %v3499_v25 }
 0x1f6   : > { %v7137_v9 = vadd.f32 %v2383_v35, %v2020_v34  ;;  %5869 = vmatmul.msk.bf16.gmra.mxu1 %vm1672_vm14, %v6169_v20  ;;  %v2962_v35 = vshrl.u32 %v7149_v48, 16  ;;  %v2937_v7 = vsel %vm6490_vm5, %v2932_v53, %v2936_v57  ;;  %v2952_v20 = vshll.u32 %v2753_v41, 16 }
 0x1f7   : > { %5894 = vmatmul.msk.bf16.gmra.mxu2 %vm1672_vm14, %v3205_v1  ;;  %v3614_v51 = vpack.c.b16 %v3588_v29, %v3587_v37  ;;  %v2960_v1 = vrot.slane %v2958_v61, 5  ;;  %v3180_v46 = vunpack.c.l.b16 %v2937_v7  ;;  %v7176_v7 = vld [vmem:[#allocation2 + $0x70] sm:$0xf] }
 0x1f8   : > { %v2964_v52 = vrot.slane %v2962_v35, 4  ;;  %v2954_v13 = vrot.slane %v2952_v20, 5 }
 0x1f9   : > { %v2323_v39 = vpop.f32.mrf.mxu0  ;;  %v3206_v29 = vpack.c.b16 %v3181_v42, %v3180_v46  ;;  %v2982_v46 = vshll.u32 %v7176_v7, 16 }
 0x1fa   : > { %v7146_v12 = vadd.f32 %v2323_v39, %v7065_v8  ;;  %v2024_v32 = vpop.f32.mrf.mxu2  ;;  %v2965_v37 = vor.u32 %v2964_v52, %v2960_v1  ;;  %v3512_v52 = vrot.slane %v7149_v48, 5  ;;  %v6207_v48 = vld [vmem:[%s7836_s3 + $0x80] sm:$0xff] }
 0x1fb   : > { %v1792_v47 = vpop.f32.mrf.mxu1  ;;  %5064 = vmatpush.bf16.msra.mxu2 %v6207_v48 }
 0x1fc   : > { %v2385_v19 = vpop.f32.mrf.mxu3  ;;  %6022 = vmatmul.msk.bf16.gmra.mxu0 %vm1672_vm14, %v6192_v26  ;;  %v2022_v44 = vadd.f32 %v2021_v36, %v1792_v47  ;;  %v2949_v36 = vshrl.u32 %v2753_v41, 16  ;;  %v3508_v26 = vrot.slane %v2752_v17, 5  ;;  %v5911_v47 = vrot.slane %v3403_v2, 9 }
 0x1fd   : > { %v2968_v17 = vshll.u32 %v2755_v23, 16  ;;  %v2966_v41 = vrot.slane %v2965_v37, 4  ;;  %v2986_v2 = vshrl.u32 %v7176_v7, 16 }
 0x1fe   : > { %v7152_v8 = vadd.f32 %v2385_v19, %v2022_v44  ;;  %v2951_v57 = vrot.slane %v2949_v36, 4  ;;  %v3509_v19 = vsel %vm6405_vm13, %v3507_v18, %v3508_v26 }
 0x1ff   : > { %v3590_v53 = vunpack.c.l.b16 %v3509_v19  ;;  %v2970_v20 = vrot.slane %v2968_v17, 5  ;;  %v2988_v19 = vrot.slane %v2986_v2, 4  ;;  %v3404_v17 = vld [vmem:[#allocation2 + $0x60] sm:$0xe] }
 0x200   : > { %v2955_v50 = vor.u32 %v2954_v13, %v2951_v57  ;;  %v3514_v13 = vrot.slane %v3512_v52, 4 }
 0x201   : > { %5934 = vmatmul.msk.bf16.gmra.mxu3 %vm1672_vm14, %v3614_v51  ;;  %v2325_v10 = vpop.f32.mrf.mxu0  ;;  %v6193_v51 = vld [vmem:[#allocation2 + $0x60] sm:$0xff] }
 0x202   : > { %v7162_v34 = vadd.f32 %v2325_v10, %v7081_v33  ;;  %v2026_v25 = vpop.f32.mrf.mxu2 }
 0x203   : > { %v1795_v58 = vpop.f32.mrf.mxu1 }
 0x204   : > { %v2388_v56 = vpop.f32.mrf.mxu3  ;;  %v2025_v39 = vadd.f32 %v2024_v32, %v1795_v58  ;;  %v3506_v32 = vsel %vm6405_vm13, %v5911_v47, %v3505_v55  ;;  %v2956_v55 = vrot.slane %v2955_v50, 4  ;;  %v2971_v58 = vsel %vm6490_vm5, %v2966_v41, %v2970_v20 }
 0x205   : > { %v3589_v10 = vunpack.c.l.b16 %v3506_v32  ;;  %v3183_v26 = vunpack.c.l.b16 %v2971_v58  ;;  %v2984_v47 = vrot.slane %v2982_v46, 5  ;;  %v3515_v50 = vrot.slane %v2755_v23, 5  ;;  %v6205_v58 = vld [vmem:[%s7836_s3 + $0x70] sm:$0xff] }
 0x206   : > { %v7164_v33 = vadd.f32 %v2388_v56, %v2025_v39  ;;  %5870 = vmatmul.msk.bf16.gmra.mxu1 %vm1672_vm14, %v6170_v15  ;;  %v2756_v56 = vld [vmem:[#allocation2 + $0x6c] sm:$0xf] }
 0x207   : > { %5895 = vmatmul.msk.bf16.gmra.mxu2 %vm1672_vm14, %v3206_v29  ;;  %v3615_v18 = vpack.c.b16 %v3590_v53, %v3589_v10  ;;  %v2973_v29 = vshrl.u32 %v2756_v56, 16  ;;  %v2976_v57 = vshll.u32 %v2756_v56, 16  ;;  %v6171_v53 = vld [vmem:[#allocation2 + $0x54] sm:$0xff]  ;;  %v3516_v20 = vsel %vm6405_vm13, %v3514_v13, %v3515_v50  ;;  %v6194_v46 = vld [vmem:[#allocation2 + $0x6c] sm:$0xff]  ;;  %4655 = vmatpush.bf16.msra.mxu1 %v6205_v58 }
 0x208   : > { %v3592_v2 = vunpack.c.l.b16 %v3516_v20 }
 0x209   : > { %v2328_v44 = vpop.f32.mrf.mxu0 }
 0x20a   : > { %v7173_v27 = vadd.f32 %v2328_v44, %v7092_v0  ;;  %v2029_v36 = vpop.f32.mrf.mxu2 }
 0x20b   : > { %v1797_v61 = vpop.f32.mrf.mxu1 }
 0x20c   : > { %v2390_v35 = vpop.f32.mrf.mxu3  ;;  %6023 = vmatmul.msk.bf16.gmra.mxu0 %vm1672_vm14, %v6193_v51  ;;  %v2027_v42 = vadd.f32 %v2026_v25, %v1797_v61  ;;  %v2961_v25 = vsel %vm6490_vm5, %v2956_v55, %v2960_v1  ;;  %v2758_v61 = vld [vmem:[#allocation2 + $0x74] sm:$0x1] }
 0x20d   : > { %v3182_v32 = vunpack.c.l.b16 %v2961_v25  ;;  %v2992_v23 = vshll.u32 %v2758_v61, 16 }
 0x20e   : > { %v7179_v0 = vadd.f32 %v2390_v35, %v2027_v42  ;;  %v2975_v35 = vrot.slane %v2973_v29, 4  ;;  %v5912_v42 = vrot.slane %v3404_v17, 9 }
 0x20f   : > { %v3207_v41 = vpack.c.b16 %v3183_v26, %v3182_v32 }
 0x211   : > { %5935 = vmatmul.msk.bf16.gmra.mxu3 %vm1672_vm14, %v3615_v18  ;;  %v2330_v39 = vpop.f32.mrf.mxu0  ;;  %v2989_v18 = vor.u32 %v2988_v19, %v2984_v47  ;;  %v2994_v19 = vrot.slane %v2992_v23, 5 }
 0x212   : > { %v7192_v15 = vadd.f32 %v2330_v39, %v7108_v6  ;;  %v2031_v1 = vpop.f32.mrf.mxu2  ;;  %v2978_v6 = vrot.slane %v2976_v57, 5  ;;  %v7209_v57 = vld [vmem:[#allocation2 + $0x7c] sm:$0xf] }
 0x213   : > { %v1800_v37 = vpop.f32.mrf.mxu1  ;;  %v2990_v25 = vrot.slane %v2989_v18, 4  ;;  %v3010_v50 = vshrl.u32 %v7209_v57, 16 }
 0x214   : > { %v2393_v44 = vpop.f32.mrf.mxu3  ;;  %v2030_v51 = vadd.f32 %v2029_v36, %v1800_v37  ;;  %v3513_v36 = vsel %vm6405_vm13, %v5912_v42, %v3512_v52  ;;  %v2979_v39 = vor.u32 %v2978_v6, %v2975_v35 }
 0x215   : > { %v3591_v29 = vunpack.c.l.b16 %v3513_v36  ;;  %v2995_v17 = vsel %vm6490_vm5, %v2990_v25, %v2994_v19  ;;  %v6172_v25 = vld [vmem:[#allocation2 + $0x60] sm:$0xff] }
 0x216   : > { %v7194_v10 = vadd.f32 %v2393_v44, %v2030_v51  ;;  %5871 = vmatmul.msk.bf16.gmra.mxu1 %vm1672_vm14, %v6171_v53  ;;  %v2980_v44 = vrot.slane %v2979_v39, 4  ;;  %v2759_v51 = vld [vmem:[#allocation2 + $0x78] sm:$0xf]  ;;  %v3006_v53 = vshll.u32 %v7209_v57, 16 }
 0x217   : > { %5896 = vmatmul.msk.bf16.gmra.mxu2 %vm1672_vm14, %v3207_v41  ;;  %v3616_v37 = vpack.c.b16 %v3592_v2, %v3591_v29  ;;  %v2997_v6 = vshrl.u32 %v2759_v51, 16  ;;  %v3000_v42 = vshll.u32 %v2759_v51, 16  ;;  %v2761_v29 = vld [vmem:[#allocation2 + $0x80] sm:$0x1]  ;;  %v6195_v51 = vld [vmem:[#allocation2 + $0x78] sm:$0xff] }
 0x218   : > { %v3008_v18 = vrot.slane %v3006_v53, 5 }
 0x219   : > { %v2333_v55 = vpop.f32.mrf.mxu0 }
 0x21a   : > { %v7206_v56 = vadd.f32 %v2333_v55, %v7119_v22  ;;  %v2034_v13 = vpop.f32.mrf.mxu2  ;;  %v3519_v22 = vrot.slane %v7176_v7, 5  ;;  %v3185_v7 = vunpack.c.l.b16 %v2995_v17  ;;  %v3012_v55 = vrot.slane %v3010_v50, 4 }
 0x21b   : > { %v1802_v48 = vpop.f32.mrf.mxu1  ;;  %v3016_v17 = vshll.u32 %v2761_v29, 16 }
 0x21c   : > { %v2395_v26 = vpop.f32.mrf.mxu3  ;;  %6024 = vmatmul.msk.bf16.gmra.mxu0 %vm1672_vm14, %v6194_v46  ;;  %v2032_v52 = vadd.f32 %v2031_v1, %v1802_v48  ;;  %v2985_v1 = vsel %vm6490_vm5, %v2980_v44, %v2984_v47  ;;  %v3521_v20 = vrot.slane %v3519_v22, 4  ;;  %v3405_v46 = vld [vmem:[#allocation2 + $0x6c] sm:$0xe]  ;;  %v3522_v48 = vrot.slane %v2758_v61, 5 }
 0x21d   : > { %v3184_v58 = vunpack.c.l.b16 %v2985_v1  ;;  %v2999_v47 = vrot.slane %v2997_v6, 4  ;;  %v5913_v19 = vrot.slane %v3405_v46, 9  ;;  %v3013_v44 = vor.u32 %v3012_v55, %v3008_v18  ;;  %v6210_v61 = vld [vmem:[%s7838_s5 + $0x8] sm:$0xff] }
 0x21e   : > { %v7212_v32 = vadd.f32 %v2395_v26, %v2032_v52  ;;  %v3002_v52 = vrot.slane %v3000_v42, 5  ;;  %5336 = vmatpush.bf16.msra.mxu3 %v6210_v61  ;;  %v7236_v42 = vld [vmem:[#allocation2 + $0x88] sm:$0xf] }
 0x21f   : > { %v3208_v26 = vpack.c.b16 %v3185_v7, %v3184_v58  ;;  %v3526_v58 = vrot.slane %v7209_v57, 5 }
 0x220   : > { %v3003_v50 = vor.u32 %v3002_v52, %v2999_v47 }
 0x221   : > { %5936 = vmatmul.msk.bf16.gmra.mxu3 %vm1672_vm14, %v3616_v37  ;;  %v2335_v41 = vpop.f32.mrf.mxu0  ;;  %v3523_v37 = vsel %vm6405_vm13, %v3521_v20, %v3522_v48  ;;  %v3030_v48 = vshll.u32 %v7236_v42, 16 }
 0x222   : > { %v7222_v35 = vadd.f32 %v2335_v41, %v7135_v43  ;;  %v2036_v39 = vpop.f32.mrf.mxu2  ;;  %v3594_v53 = vunpack.c.l.b16 %v3523_v37  ;;  %v3014_v41 = vrot.slane %v3013_v44, 4  ;;  %v3528_v37 = vrot.slane %v3526_v58, 4 }
 0x223   : > { %v1805_v36 = vpop.f32.mrf.mxu1  ;;  %v3032_v57 = vrot.slane %v3030_v48, 5  ;;  %v6196_v48 = vld [vmem:[#allocation2 + $0x84] sm:$0xff] }
 0x224   : > { %v2398_v23 = vpop.f32.mrf.mxu3  ;;  %v2035_v2 = vadd.f32 %v2034_v13, %v1805_v36  ;;  %v3520_v13 = vsel %vm6405_vm13, %v5913_v19, %v3519_v22  ;;  %v3018_v22 = vrot.slane %v3016_v17, 5 }
 0x225   : > { %v3593_v6 = vunpack.c.l.b16 %v3520_v13 }
 0x226   : > { %v7224_v43 = vadd.f32 %v2398_v23, %v2035_v2  ;;  %5872 = vmatmul.msk.bf16.gmra.mxu1 %vm1672_vm14, %v6172_v25  ;;  %v3004_v23 = vrot.slane %v3003_v50, 4  ;;  %v3019_v2 = vsel %vm6490_vm5, %v3014_v41, %v3018_v22  ;;  %v2762_v25 = vld [vmem:[#allocation2 + $0x84] sm:$0xf]  ;;  %v6173_v50 = vld [vmem:[#allocation2 + $0x6c] sm:$0xff] }
 0x227   : > { %5897 = vmatmul.msk.bf16.gmra.mxu2 %vm1672_vm14, %v3208_v26  ;;  %v3617_v36 = vpack.c.b16 %v3594_v53, %v3593_v6  ;;  %v3034_v26 = vshrl.u32 %v7236_v42, 16  ;;  %v3187_v47 = vunpack.c.l.b16 %v3019_v2  ;;  %v3021_v52 = vshrl.u32 %v2762_v25, 16  ;;  %v2764_v6 = vld [vmem:[#allocation2 + $0x8c] sm:$0x1] }
 0x228   : > { %v3024_v19 = vshll.u32 %v2762_v25, 16 }
 0x229   : > { %v3036_v44 = vrot.slane %v3034_v26, 4 }
 0x22a   : > { %v3285_v55 = vpop.f32.mrf.mxu2  ;;  %v3026_v22 = vrot.slane %v3024_v19, 5 }
 0x22b   : > { %v1807_v1 = vpop.f32.mrf.mxu1  ;;  %v3037_v2 = vor.u32 %v3036_v44, %v3032_v57 }
 0x22c   : > { %v2400_v7 = vpop.f32.mrf.mxu3  ;;  %6025 = vmatmul.msk.bf16.gmra.mxu0 %vm1672_vm14, %v6195_v51  ;;  %v2037_v20 = vadd.f32 %v2036_v39, %v1807_v1  ;;  %v3009_v39 = vsel %vm6490_vm5, %v3004_v23, %v3008_v18  ;;  %v3406_v51 = vld [vmem:[#allocation2 + $0x78] sm:$0xe]  ;;  %v3529_v1 = vrot.slane %v2761_v29, 5  ;;  %v3040_v29 = vshll.u32 %v2764_v6, 16 }
 0x22d   : > { %v3186_v61 = vunpack.c.l.b16 %v3009_v39 }
 0x22e   : > { %v7239_v46 = vadd.f32 %v2400_v7, %v2037_v20  ;;  %v3023_v20 = vrot.slane %v3021_v52, 4  ;;  %v3530_v23 = vsel %vm6405_vm13, %v3528_v37, %v3529_v1  ;;  %v2765_v1 = vld [vmem:[#allocation2 + $0x90] sm:$0xf] }
 0x22f   : > { %v3209_v7 = vpack.c.b16 %v3187_v47, %v3186_v61  ;;  %v3596_v26 = vunpack.c.l.b16 %v3530_v23  ;;  %v3038_v47 = vrot.slane %v3037_v2, 4  ;;  %v3048_v23 = vshll.u32 %v2765_v1, 16 }
 0x230   : > { %v3027_v39 = vor.u32 %v3026_v22, %v3023_v20 }
 0x231   : > { %5937 = vmatmul.msk.bf16.gmra.mxu3 %vm1672_vm14, %v3617_v36  ;;  %v5914_v36 = vrot.slane %v3406_v51, 9 }
 0x232   : > { %v3287_v41 = vpop.f32.mrf.mxu2  ;;  %v3028_v51 = vrot.slane %v3027_v39, 4 }
 0x233   : > { %v2620_v13 = vpop.f32.mrf.mxu1 }
 0x234   : > { %v3694_v17 = vpop.f32.mrf.mxu3  ;;  %v2700_v53 = vadd.f32 %v2620_v13, %v7146_v12  ;;  %v3527_v12 = vsel %vm6405_vm13, %v5914_v36, %v3526_v58  ;;  %v7258_v13 = vld [vmem:[#allocation2 + $0x94] sm:$0xf]  ;;  %v3533_v58 = vrot.slane %v7236_v42, 5  ;;  %v3045_v36 = vshrl.u32 %v2765_v1, 16 }
 0x235   : > { %v3595_v19 = vunpack.c.l.b16 %v3527_v12  ;;  %v3058_v20 = vshrl.u32 %v7258_v13, 16 }
 0x236   : > { %v3365_v18 = vadd.f32 %v3285_v55, %v2700_v53  ;;  %5873 = vmatmul.msk.bf16.gmra.mxu1 %vm1672_vm14, %v6173_v50  ;;  %v3535_v42 = vrot.slane %v3533_v58, 4 }
 0x237   : > { %5898 = vmatmul.msk.bf16.gmra.mxu2 %vm1672_vm14, %v3209_v7  ;;  %v3618_v61 = vpack.c.b16 %v3596_v26, %v3595_v19  ;;  %v3054_v7 = vshll.u32 %v7258_v13, 16  ;;  %v3060_v2 = vrot.slane %v3058_v20, 4  ;;  %v3407_v26 = vld [vmem:[#allocation2 + $0x84] sm:$0xe] }
 0x238   : > { %v7253_v25 = vadd.f32 %v3694_v17, %v3365_v18  ;;  %v3042_v17 = vrot.slane %v3040_v29, 5 }
 0x23a   : > { %v3290_v44 = vpop.f32.mrf.mxu2  ;;  %v3043_v50 = vsel %vm6490_vm5, %v3038_v47, %v3042_v17  ;;  %v6174_v47 = vld [vmem:[#allocation2 + $0x78] sm:$0xff]  ;;  %v3047_v17 = vrot.slane %v3045_v36, 4 }
 0x23b   : > { %v2622_v55 = vpop.f32.mrf.mxu1  ;;  %v3189_v18 = vunpack.c.l.b16 %v3043_v50 }
 0x23c   : > { %v3696_v52 = vpop.f32.mrf.mxu3  ;;  %6026 = vmatmul.msk.bf16.gmra.mxu0 %vm1672_vm14, %v6196_v48  ;;  %v2701_v37 = vadd.f32 %v2622_v55, %v7162_v34  ;;  %v3033_v34 = vsel %vm6490_vm5, %v3028_v51, %v3032_v57  ;;  %v5915_v51 = vrot.slane %v3407_v26, 9 }
 0x23d   : > { %v3188_v48 = vunpack.c.l.b16 %v3033_v34 }
 0x23e   : > { %v3366_v53 = vadd.f32 %v3287_v41, %v2701_v37  ;;  %v3056_v41 = vrot.slane %v3054_v7, 5  ;;  %v2767_v37 = vld [vmem:[#allocation2 + $0x98] sm:$0x1]  ;;  %v6197_v7 = vld [vmem:[#allocation2 + $0x90] sm:$0xff] }
 0x23f   : > { %v3210_v19 = vpack.c.b16 %v3189_v18, %v3188_v48 }
 0x240   : > { %v7266_v22 = vadd.f32 %v3696_v52, %v3366_v53  ;;  %v3536_v52 = vrot.slane %v2764_v6, 5  ;;  %v3061_v50 = vor.u32 %v3060_v2, %v3056_v41  ;;  %v3064_v6 = vshll.u32 %v2767_v37, 16 }
 0x241   : > { %5938 = vmatmul.msk.bf16.gmra.mxu3 %vm1672_vm14, %v3618_v61  ;;  %v3050_v61 = vrot.slane %v3048_v23, 5 }
 0x242   : > { %v3292_v55 = vpop.f32.mrf.mxu2  ;;  %v3537_v53 = vsel %vm6405_vm13, %v3535_v42, %v3536_v52  ;;  %v3062_v18 = vrot.slane %v3061_v50, 4  ;;  %v2768_v52 = vld [vmem:[#allocation2 + $0x9c] sm:$0xf] }
 0x243   : > { %v2625_v12 = vpop.f32.mrf.mxu1  ;;  %v3598_v20 = vunpack.c.l.b16 %v3537_v53  ;;  %v3051_v34 = vor.u32 %v3050_v61, %v3047_v17  ;;  %v3072_v53 = vshll.u32 %v2768_v52, 16 }
 0x244   : > { %v3699_v29 = vpop.f32.mrf.mxu3  ;;  %v2702_v39 = vadd.f32 %v2625_v12, %v7173_v27  ;;  %v3534_v27 = vsel %vm6405_vm13, %v5915_v51, %v3533_v58  ;;  %v7281_v12 = vld [vmem:[#allocation2 + $0xa0] sm:$0xf]  ;;  %v3540_v58 = vrot.slane %v7258_v13, 5  ;;  %v3069_v51 = vshrl.u32 %v2768_v52, 16 }
 0x245   : > { %v3597_v23 = vunpack.c.l.b16 %v3534_v27  ;;  %v3052_v26 = vrot.slane %v3051_v34, 4  ;;  %v3082_v17 = vshrl.u32 %v7281_v12, 16  ;;  %v7294_v34 = vpop.f32.mrf.mxu0 }
 0x246   : > { %v3367_v57 = vadd.f32 %v3290_v44, %v2702_v39  ;;  %5874 = vmatmul.msk.bf16.gmra.mxu1 %vm1672_vm14, %v6174_v47  ;;  %v3542_v13 = vrot.slane %v3540_v58, 4 }
 0x247   : > { %5899 = vmatmul.msk.bf16.gmra.mxu2 %vm1672_vm14, %v3210_v19  ;;  %v3619_v48 = vpack.c.b16 %v3598_v20, %v3597_v23  ;;  %v3078_v19 = vshll.u32 %v7281_v12, 16  ;;  %v3084_v50 = vrot.slane %v3082_v17, 4  ;;  %v3408_v20 = vld [vmem:[#allocation2 + $0x90] sm:$0xe]  ;;  %v3543_v23 = vrot.slane %v2767_v37, 5  ;;  %v6198_v17 = vld [vmem:[#allocation2 + $0x9c] sm:$0xff] }
 0x248   : > { %v7276_v1 = vadd.f32 %v3699_v29, %v3367_v57  ;;  %v3066_v29 = vrot.slane %v3064_v6, 5 }
 0x24a   : > { %v3295_v2 = vpop.f32.mrf.mxu2  ;;  %v3067_v47 = vsel %vm6490_vm5, %v3062_v18, %v3066_v29  ;;  %v2770_v29 = vld [vmem:[#allocation2 + $0xa4] sm:$0x1] }
 0x24b   : > { %v2627_v44 = vpop.f32.mrf.mxu1  ;;  %v3191_v57 = vunpack.c.l.b16 %v3067_v47  ;;  %v3544_v47 = vsel %vm6405_vm13, %v3542_v13, %v3543_v23  ;;  %v3088_v37 = vshll.u32 %v2770_v29, 16 }
 0x24c   : > { %v3701_v36 = vpop.f32.mrf.mxu3  ;;  %6027 = vmatmul.msk.bf16.gmra.mxu0 %vm1672_vm14, %v6197_v7  ;;  %v2703_v42 = vadd.f32 %v2627_v44, %v7192_v15  ;;  %v3057_v15 = vsel %vm6490_vm5, %v3052_v26, %v3056_v41  ;;  %v6175_v44 = vld [vmem:[#allocation2 + $0x84] sm:$0xff]  ;;  %v3071_v41 = vrot.slane %v3069_v51, 4 }
 0x24d   : > { %v3190_v7 = vunpack.c.l.b16 %v3057_v15  ;;  %v3600_v15 = vunpack.c.l.b16 %v3544_v47 }
 0x24e   : > { %v3368_v39 = vadd.f32 %v3292_v55, %v2703_v42  ;;  %v3080_v55 = vrot.slane %v3078_v19, 5 }
 0x24f   : > { %v3211_v42 = vpack.c.b16 %v3191_v57, %v3190_v7  ;;  %v7306_v7 = vld [vmem:[#allocation2 + $0xac] sm:$0xf] }
 0x250   : > { %v7289_v61 = vadd.f32 %v3701_v36, %v3368_v39  ;;  %v5916_v39 = vrot.slane %v3408_v20, 9  ;;  %v3085_v52 = vor.u32 %v3084_v50, %v3080_v55 }
 0x251   : > { %5939 = vmatmul.msk.bf16.gmra.mxu3 %vm1672_vm14, %v3619_v48  ;;  %v3074_v48 = vrot.slane %v3072_v53, 5 }
 0x252   : > { %v3297_v36 = vpop.f32.mrf.mxu2  ;;  %v3086_v51 = vrot.slane %v3085_v52, 4  ;;  %v3409_v52 = vld [vmem:[#allocation2 + $0x9c] sm:$0xe] }
 0x253   : > { %v2630_v27 = vpop.f32.mrf.mxu1  ;;  %v3075_v57 = vor.u32 %v3074_v48, %v3071_v41  ;;  %v3102_v41 = vshll.u32 %v7306_v7, 16  ;;  %v3106_v48 = vshrl.u32 %v7306_v7, 16 }
 0x254   : > { %v3704_v6 = vpop.f32.mrf.mxu3  ;;  %v2704_v18 = vadd.f32 %v2630_v27, %v7206_v56  ;;  %v3541_v56 = vsel %vm6405_vm13, %v5916_v39, %v3540_v58  ;;  %v3547_v58 = vrot.slane %v7281_v12, 5 }
 0x255   : > { %v3599_v27 = vunpack.c.l.b16 %v3541_v56 }
 0x256   : > { %v3369_v26 = vadd.f32 %v3295_v2, %v2704_v18  ;;  %5875 = vmatmul.msk.bf16.gmra.mxu1 %vm1672_vm14, %v6175_v44  ;;  %v3076_v18 = vrot.slane %v3075_v57, 4  ;;  %v7310_v44 = vpop.f32.mrf.mxu0  ;;  %v3549_v12 = vrot.slane %v3547_v58, 4 }
 0x257   : > { %5900 = vmatmul.msk.bf16.gmra.mxu2 %vm1672_vm14, %v3211_v42  ;;  %v3620_v20 = vpack.c.b16 %v3600_v15, %v3599_v27 }
 0x258   : > { %v7301_v19 = vadd.f32 %v3704_v6, %v3369_v26  ;;  %v3090_v6 = vrot.slane %v3088_v37, 5  ;;  %v2771_v26 = vld [vmem:[#allocation2 + $0xa8] sm:$0xf]  ;;  %v3104_v37 = vrot.slane %v3102_v41, 5 }
 0x259   : > { %v3093_v56 = vshrl.u32 %v2771_v26, 16 }
 0x25a   : > { %v3300_v50 = vpop.f32.mrf.mxu2  ;;  %v3091_v42 = vsel %vm6490_vm5, %v3086_v51, %v3090_v6 }
 0x25b   : > { %v2632_v2 = vpop.f32.mrf.mxu1  ;;  %v3193_v47 = vunpack.c.l.b16 %v3091_v42  ;;  %v3095_v42 = vrot.slane %v3093_v56, 4 }
 0x25c   : > { %v3706_v53 = vpop.f32.mrf.mxu3  ;;  %6028 = vmatmul.msk.bf16.gmra.mxu0 %vm1672_vm14, %v6198_v17  ;;  %v2705_v13 = vadd.f32 %v2632_v2, %v7222_v35  ;;  %v3081_v35 = vsel %vm6490_vm5, %v3076_v18, %v3080_v55  ;;  %v3108_v17 = vrot.slane %v3106_v48, 4  ;;  %v3550_v2 = vrot.slane %v2770_v29, 5  ;;  %v2773_v18 = vld [vmem:[#allocation2 + $0xb0] sm:$0x1] }
 0x25d   : > { %v3192_v51 = vunpack.c.l.b16 %v3081_v35  ;;  %v3112_v35 = vshll.u32 %v2773_v18, 16 }
 0x25e   : > { %v3370_v23 = vadd.f32 %v3297_v36, %v2705_v13  ;;  %v3096_v36 = vshll.u32 %v2771_v26, 16  ;;  %v3551_v55 = vsel %vm6405_vm13, %v3549_v12, %v3550_v2  ;;  %v3109_v48 = vor.u32 %v3108_v17, %v3104_v37  ;;  %v7326_v26 = vpop.f32.mrf.mxu0 }
 0x25f   : > { %v3212_v6 = vpack.c.b16 %v3193_v47, %v3192_v51  ;;  %v6199_v47 = vld [vmem:[#allocation2 + $0xa8] sm:$0xff] }
 0x260   : > { %v7316_v39 = vadd.f32 %v3706_v53, %v3370_v23  ;;  %v6176_v53 = vld [vmem:[#allocation2 + $0x90] sm:$0xff]  ;;  %v3098_v41 = vrot.slane %v3096_v36, 5 }
 0x261   : > { %5940 = vmatmul.msk.bf16.gmra.mxu3 %vm1672_vm14, %v3620_v20  ;;  %v5917_v20 = vrot.slane %v3409_v52, 9  ;;  %v3602_v52 = vunpack.c.l.b16 %v3551_v55 }
 0x262   : > { %v3302_v13 = vpop.f32.mrf.mxu2  ;;  %v3099_v12 = vor.u32 %v3098_v41, %v3095_v42  ;;  %v3554_v42 = vrot.slane %v7306_v7, 5 }
 0x263   : > { %v2635_v15 = vpop.f32.mrf.mxu1 }
 0x264   : > { %v3709_v57 = vpop.f32.mrf.mxu3  ;;  %v2706_v27 = vadd.f32 %v2635_v15, %v6827_v21  ;;  %v3548_v21 = vsel %vm6405_vm13, %v5917_v20, %v3547_v58  ;;  %v3110_v15 = vrot.slane %v3109_v48, 4  ;;  %v3100_v55 = vrot.slane %v3099_v12, 4 }
 0x265   : > { %v3601_v36 = vunpack.c.l.b16 %v3548_v21 }
 0x266   : > { %v3371_v23 = vadd.f32 %v3300_v50, %v2706_v27  ;;  %5876 = vmatmul.msk.bf16.gmra.mxu1 %vm1672_vm14, %v6176_v53  ;;  %v7332_v50 = vld [vmem:[#allocation2 + $0xb8] sm:$0xf]  ;;  %v2774_v53 = vld [vmem:[#allocation2 + $0xb4] sm:$0xf] }
 0x267   : > { %5901 = vmatmul.msk.bf16.gmra.mxu2 %vm1672_vm14, %v3212_v6  ;;  %v3621_v27 = vpack.c.b16 %v3602_v52, %v3601_v36  ;;  %v3126_v58 = vshll.u32 %v7332_v50, 16  ;;  %v3130_v6 = vshrl.u32 %v7332_v50, 16  ;;  %v3117_v48 = vshrl.u32 %v2774_v53, 16 }
 0x268   : > { %v7328_v29 = vadd.f32 %v3709_v57, %v3371_v23  ;;  %v3114_v57 = vrot.slane %v3112_v35, 5  ;;  %v3120_v35 = vshll.u32 %v2774_v53, 16 }
 0x269   : > { %v3132_v52 = vrot.slane %v3130_v6, 4 }
 0x26a   : > { %7853 = vst [vmem:[#allocation3_spill] sm:$0xff] %v7328_v29  ;;  %v3305_v2 = vpop.f32.mrf.mxu2  ;;  %v3115_v23 = vsel %vm6490_vm5, %v3110_v15, %v3114_v57 }
 0x26b   : > { %v2637_v51 = vpop.f32.mrf.mxu1  ;;  %v3195_v21 = vunpack.c.l.b16 %v3115_v23  ;;  %v3122_v23 = vrot.slane %v3120_v35, 5 }
 0x26c   : > { %v3711_v56 = vpop.f32.mrf.mxu3  ;;  %6029 = vmatmul.msk.bf16.gmra.mxu0 %vm1672_vm14, %v6199_v47  ;;  %v2707_v17 = vadd.f32 %v2637_v51, %v6844_v59  ;;  %v3105_v59 = vsel %vm6490_vm5, %v3100_v55, %v3104_v37  ;;  %v3128_v47 = vrot.slane %v3126_v58, 5  ;;  %v7346_v51 = vpop.f32.mrf.mxu0  ;;  %v3119_v55 = vrot.slane %v3117_v48, 4 }
 0x26d   : > { %v3194_v15 = vunpack.c.l.b16 %v3105_v59 }
 0x26e   : > { %v3372_v20 = vadd.f32 %v3302_v13, %v2707_v17  ;;  %v3556_v13 = vrot.slane %v3554_v42, 4  ;;  %v3410_v17 = vld [vmem:[#allocation2 + $0xa8] sm:$0xe]  ;;  %v3133_v53 = vor.u32 %v3132_v52, %v3128_v47  ;;  %v3123_v35 = vor.u32 %v3122_v23, %v3119_v55 }
 0x26f   : > { %v3213_v37 = vpack.c.b16 %v3195_v21, %v3194_v15  ;;  %v5918_v6 = vrot.slane %v3410_v17, 9  ;;  %v6200_v21 = vld [vmem:[#allocation2 + $0xb4] sm:$0xff] }
 0x270   : > { %v7341_v41 = vadd.f32 %v3711_v56, %v3372_v20  ;;  %v6177_v56 = vld [vmem:[#allocation2 + $0x9c] sm:$0xff]  ;;  %v3134_v52 = vrot.slane %v3133_v53, 4 }
 0x271   : > { %5941 = vmatmul.msk.bf16.gmra.mxu3 %vm1672_vm14, %v3621_v27  ;;  %v3557_v27 = vrot.slane %v2773_v18, 5  ;;  %v7349_v20 = vld [vmem:[#allocation2 + $0xbc] sm:$0x1]  ;;  %v3555_v18 = vsel %vm6405_vm13, %v5918_v6, %v3554_v42 }
 0x272   : > { %7854 = vst [vmem:[#allocation4_spill] sm:$0xff] %v7341_v41  ;;  %v3307_v57 = vpop.f32.mrf.mxu2  ;;  %v3603_v15 = vunpack.c.l.b16 %v3555_v18 }
 0x273   : > { %v2640_v12 = vpop.f32.mrf.mxu1  ;;  %v3558_v41 = vsel %vm6405_vm13, %v3556_v13, %v3557_v27  ;;  %v7366_v27 = vld [vmem:[#allocation2 + $0xc4] sm:$0xf] }
 0x274   : > { %v3714_v36 = vpop.f32.mrf.mxu3  ;;  %v2708_v7 = vadd.f32 %v2640_v12, %v6860_v45  ;;  %v3136_v45 = vshll.u32 %v7349_v20, 16  ;;  %v3604_v48 = vunpack.c.l.b16 %v3558_v41  ;;  %v7363_v17 = vpop.f32.mrf.mxu0  ;;  %v3154_v6 = vshrl.u32 %v7366_v27, 16 }
 0x276   : > { %v3373_v58 = vadd.f32 %v3305_v2, %v2708_v7  ;;  %5877 = vmatmul.msk.bf16.gmra.mxu1 %vm1672_vm14, %v6177_v56  ;;  %v3138_v13 = vrot.slane %v3136_v45, 5  ;;  %v2777_v56 = vld [vmem:[#allocation2 + $0xc0] sm:$0xf]  ;;  %v3622_v42 = vpack.c.b16 %v3604_v48, %v3603_v15  ;;  %v3561_v45 = vrot.slane %v7332_v50, 5  ;;  %v3411_v50 = vld [vmem:[#allocation2 + $0xb4] sm:$0xe] }
 0x277   : > { %5902 = vmatmul.msk.bf16.gmra.mxu2 %vm1672_vm14, %v3213_v37  ;;  %v3124_v37 = vrot.slane %v3123_v35, 4  ;;  %v3141_v55 = vshrl.u32 %v2777_v56, 16  ;;  %v3144_v53 = vshll.u32 %v2777_v56, 16 }
 0x278   : > { %v7356_v59 = vadd.f32 %v3714_v36, %v3373_v58  ;;  %v3139_v41 = vsel %vm6490_vm5, %v3134_v52, %v3138_v13  ;;  %v3150_v58 = vshll.u32 %v7366_v27, 16  ;;  %v3156_v52 = vrot.slane %v3154_v6, 4  ;;  %v6201_v6 = vld [vmem:[#allocation2 + $0xc0] sm:$0xff] }
 0x279   : > { %v3197_v18 = vunpack.c.l.b16 %v3139_v41  ;;  %v3146_v48 = vrot.slane %v3144_v53, 5  ;;  %v3563_v13 = vrot.slane %v3561_v45, 4  ;;  %v5919_v53 = vrot.slane %v3411_v50, 9 }
 0x27a   : > { %7855 = vst [vmem:[#allocation5_spill] sm:$0xff] %v7356_v59  ;;  %v3310_v36 = vpop.f32.mrf.mxu2  ;;  %v3152_v35 = vrot.slane %v3150_v58, 5 }
 0x27b   : > { %v2642_v2 = vpop.f32.mrf.mxu1 }
 0x27c   : > { %v7360_v12 = vpop.f32.mrf.mxu3  ;;  %6030 = vmatmul.msk.bf16.gmra.mxu0 %vm1672_vm14, %v6200_v21  ;;  %v2709_v7 = vadd.f32 %v2642_v2, %v6878_v62  ;;  %v3129_v62 = vsel %vm6490_vm5, %v3124_v37, %v3128_v47  ;;  %v3143_v21 = vrot.slane %v3141_v55, 4  ;;  %v7380_v29 = vpop.f32.mrf.mxu0  ;;  %v3157_v41 = vor.u32 %v3156_v52, %v3152_v35 }
 0x27d   : > { %7856 = vst [vmem:[#allocation6_spill] sm:$0xff] %v7360_v12  ;;  %v3196_v15 = vunpack.c.l.b16 %v3129_v62  ;;  %v6178_v12 = vld [vmem:[#allocation2 + $0xa8] sm:$0xff] }
 0x27e   : > { %v7370_v23 = vadd.f32 %v3307_v57, %v2709_v7  ;;  %v2779_v7 = vld [vmem:[#allocation2 + $0xc8] sm:$0x1]  ;;  %v3147_v37 = vor.u32 %v3146_v48, %v3143_v21 }
 0x27f   : > { %v3214_v59 = vpack.c.b16 %v3197_v18, %v3196_v15  ;;  %v3160_v55 = vshll.u32 %v2779_v7, 16 }
 0x280   : > { %7857 = vst [vmem:[#allocation7_spill] sm:$0xff] %v7370_v23  ;;  %v3148_v18 = vrot.slane %v3147_v37, 4 }
 0x281   : > { %5942 = vmatmul.msk.bf16.gmra.mxu3 %vm1672_vm14, %v3622_v42  ;;  %v3564_v42 = vrot.slane %v7349_v20, 5  ;;  %v3562_v20 = vsel %vm6405_vm13, %v5919_v53, %v3561_v45  ;;  %v3571_v53 = vrot.slane %v2779_v7, 5 }
 0x282   : > { %v3312_v23 = vpop.f32.mrf.mxu2  ;;  %v3605_v52 = vunpack.c.l.b16 %v3562_v20 }
 0x283   : > { %v2645_v2 = vpop.f32.mrf.mxu1 }
 0x284   : > { %v3719_v57 = vpop.f32.mrf.mxu3  ;;  %v2710_v56 = vadd.f32 %v2645_v2, %v6905_v4  ;;  %v3565_v4 = vsel %vm6405_vm13, %v3563_v13, %v3564_v42  ;;  %v3162_v2 = vrot.slane %v3160_v55, 5  ;;  %v3153_v13 = vsel %vm6490_vm5, %v3148_v18, %v3152_v35  ;;  %v7401_v50 = vpop.f32.mrf.mxu0  ;;  %v3412_v42 = vld [vmem:[#allocation2 + $0xc0] sm:$0xe] }
 0x285   : > { %v3606_v62 = vunpack.c.l.b16 %v3565_v4  ;;  %v4105_v4 = vld [vmem:[#allocation2 + $0x1c] sm:$0xf] }
 0x286   : > { %v3375_v47 = vadd.f32 %v3310_v36, %v2710_v56  ;;  %5878 = vmatmul.msk.bf16.gmra.mxu1 %vm1672_vm14, %v6178_v12  ;;  %v3158_v36 = vrot.slane %v3157_v41, 4  ;;  %v3568_v56 = vrot.slane %v7366_v27, 5  ;;  %v4835_v27 = vrot.slane %v4105_v4, 5 }
 0x287   : > { %5903 = vmatmul.msk.bf16.gmra.mxu2 %vm1672_vm14, %v3214_v59 }
 0x288   : > { %v7386_v58 = vadd.f32 %v3719_v57, %v3375_v47  ;;  %v3623_v57 = vpack.c.b16 %v3606_v62, %v3605_v52  ;;  %v3163_v45 = vsel %vm6490_vm5, %v3158_v36, %v3162_v2  ;;  %v3198_v47 = vunpack.c.l.b16 %v3153_v13 }
 0x289   : > { %v3570_v55 = vrot.slane %v3568_v56, 4 }
 0x28a   : > { %v3315_v48 = vpop.f32.mrf.mxu2 }
 0x28b   : > { %v2647_v12 = vpop.f32.mrf.mxu1  ;;  %v3572_v2 = vsel %vm6405_vm13, %v3570_v55, %v3571_v53 }
 0x28c   : > { %v7390_v21 = vpop.f32.mrf.mxu3  ;;  %6031 = vmatmul.msk.bf16.gmra.mxu0 %vm1672_vm14, %v6201_v6  ;;  %v2711_v59 = vadd.f32 %v2647_v12, %v6931_v60  ;;  %v3199_v60 = vunpack.c.l.b16 %v3163_v45  ;;  %v6179_v6 = vld [vmem:[#allocation2 + $0xb4] sm:$0xff]  ;;  %v6202_v12 = vld [vmem:[#allocation2 + $0xcc] sm:$0xff] }
 0x28e   : > { %v7394_v15 = vadd.f32 %v3312_v23, %v2711_v59  ;;  %v5920_v23 = vrot.slane %v3412_v42, 9  ;;  %v3215_v62 = vpack.c.b16 %v3199_v60, %v3198_v47  ;;  %v4106_v59 = vld [vmem:[#allocation2 + $0x20] sm:$0x1]  ;;  %v4769_v42 = vld [vmem:[#allocation2 + $0x18] sm:$0xe] }
 0x28f   : > { %v4838_v60 = vrot.slane %v4106_v59, 5 }
 0x290   : > { %v3569_v36 = vsel %vm6405_vm13, %v5920_v23, %v3568_v56  ;;  %v4162_v23 = vshll.u32 %v4105_v4, 16 }
 0x291   : > { %5943 = vmatmul.msk.bf16.gmra.mxu3 %vm1672_vm14, %v3623_v57  ;;  %v3607_v52 = vunpack.c.l.b16 %v3569_v36  ;;  %v3608_v57 = vunpack.c.l.b16 %v3572_v2 }
 0x292   : > { %v3317_v20 = vpop.f32.mrf.mxu2  ;;  %v4164_v2 = vrot.slane %v4162_v23, 5 }
 0x293   : > { %v2650_v37 = vpop.f32.mrf.mxu1  ;;  %v3624_v53 = vpack.c.b16 %v3608_v57, %v3607_v52  ;;  %v6180_v57 = vld [vmem:[#allocation2 + $0xc0] sm:$0xff] }
 0x294   : > { %v3724_v41 = vpop.f32.mrf.mxu3  ;;  %v2712_v35 = vadd.f32 %v2650_v37, %v6960_v38  ;;  %v7413_v38 = vpop.f32.mrf.mxu0  ;;  %v4104_v37 = vld [vmem:[#allocation2 + $0x18] sm:$0xf] }
 0x296   : > { %v3377_v18 = vadd.f32 %v3315_v48, %v2712_v35  ;;  %5879 = vmatmul.msk.bf16.gmra.mxu1 %vm1672_vm14, %v6179_v6  ;;  %v4837_v48 = vrot.slane %v4835_v27, 4  ;;  %v6057_v35 = vrot.slane %v4769_v42, 9 }
 0x297   : > { %5904 = vmatmul.msk.bf16.gmra.mxu2 %vm1672_vm14, %v3215_v62 }
 0x298   : > { %v7411_v7 = vadd.f32 %v3724_v41, %v3377_v18  ;;  %v4166_v41 = vshrl.u32 %v4105_v4, 16  ;;  %v4839_v6 = vsel %vm6405_vm13, %v4837_v48, %v4838_v60  ;;  %v4836_v62 = vsel %vm6405_vm13, %v6057_v35, %v4835_v27 }
 0x299   : > { %v4153_v18 = vshrl.u32 %v4104_v37, 16  ;;  %v4950_v36 = vunpack.c.l.b16 %v4839_v6  ;;  %v4949_v4 = vunpack.c.l.b16 %v4836_v62  ;;  %v4109_v6 = vld [vmem:[#allocation2 + $0x2c] sm:$0x1] }
 0x29a   : > { %7858 = vst [vmem:[#allocation8_spill] sm:$0xff] %v7411_v7  ;;  %v3320_v47 = vpop.f32.mrf.mxu2 }
 0x29b   : > { %v2652_v13 = vpop.f32.mrf.mxu1  ;;  %v4155_v48 = vrot.slane %v4153_v18, 4 }
 0x29c   : > { %v7415_v45 = vpop.f32.mrf.mxu3  ;;  %6032 = vmatmul.msk.bf16.gmra.mxu0 %vm1672_vm14, %v6202_v12  ;;  %v2713_v56 = vadd.f32 %v2652_v13, %v6986_v3  ;;  %v4156_v3 = vshll.u32 %v4104_v37, 16  ;;  %v4168_v12 = vrot.slane %v4166_v41, 4  ;;  %v4172_v37 = vshll.u32 %v4106_v59, 16  ;;  %v6209_v41 = vld [vmem:[%s7838_s5] sm:$0xff] }
 0x29d   : > { %7859 = vst [vmem:[#allocation9_spill] sm:$0xff] %v7415_v45  ;;  %5337 = vmatpush.bf16.msra.mxu3 %v6209_v41  ;;  %v4845_v59 = vrot.slane %v4109_v6, 5 }
 0x29e   : > { %v7419_v55 = vadd.f32 %v3317_v20, %v2713_v56  ;;  %v4108_v20 = vld [vmem:[#allocation2 + $0x28] sm:$0xf]  ;;  %v4981_v56 = vpack.c.b16 %v4950_v36, %v4949_v4  ;;  %v4158_v60 = vrot.slane %v4156_v3, 5  ;;  %v4770_v3 = vld [vmem:[#allocation2 + $0x24] sm:$0xe] }
 0x29f   : > { %v4842_v27 = vrot.slane %v4108_v20, 5  ;;  %v4107_v4 = vld [vmem:[#allocation2 + $0x24] sm:$0xf] }
 0x2a0   : > { %7860 = vst [vmem:[#allocation10_spill] sm:$0xff] %v7419_v55  ;;  %v4177_v41 = vshrl.u32 %v4107_v4, 16 }
 0x2a1   : > { %5944 = vmatmul.msk.bf16.gmra.mxu3 %vm1672_vm14, %v3624_v53  ;;  %v4169_v53 = vor.u32 %v4168_v12, %v4164_v2  ;;  %v4844_v62 = vrot.slane %v4842_v27, 4 }
 0x2a2   : > { %v3322_v42 = vpop.f32.mrf.mxu2 }
 0x2a3   : > { %v2655_v13 = vpop.f32.mrf.mxu1  ;;  %v4170_v35 = vrot.slane %v4169_v53, 4 }
 0x2a4   : > { %v3729_v45 = vpop.f32.mrf.mxu3  ;;  %v2714_v52 = vadd.f32 %v2655_v13, %v7004_v14  ;;  %v4159_v14 = vor.u32 %v4158_v60, %v4155_v48  ;;  %v6058_v48 = vrot.slane %v4770_v3, 9  ;;  %v4846_v60 = vsel %vm6405_vm13, %v4844_v62, %v4845_v59 }
 0x2a6   : > { %v3379_v55 = vadd.f32 %v3320_v47, %v2714_v52  ;;  %5880 = vmatmul.msk.bf16.gmra.mxu1 %vm1672_vm14, %v6180_v57  ;;  %v4174_v47 = vrot.slane %v4172_v37, 5  ;;  %v4186_v52 = vshll.u32 %v4108_v20, 16  ;;  %v4190_v57 = vshrl.u32 %v4108_v20, 16  ;;  %v4111_v20 = vld [vmem:[#allocation2 + $0x34] sm:$0xf] }
 0x2a7   : > { %6081 = vmatmul.msk.bf16.vlgmr.msra.gmra.mxu2 %vm1672_vm14, %v4981_v56  ;;  %v4849_v7 = vrot.slane %v4111_v20, 5 }
 0x2a8   : > { %v7429_v23 = vadd.f32 %v3729_v45, %v3379_v55  ;;  %v4160_v45 = vrot.slane %v4159_v14, 4  ;;  %v4175_v55 = vsel %vm6490_vm5, %v4170_v35, %v4174_v47  ;;  %v4180_v14 = vshll.u32 %v4107_v4, 16 }
 0x2a9   : > { %v4541_v37 = vunpack.c.l.b16 %v4175_v55  ;;  %v4188_v35 = vrot.slane %v4186_v52, 5  ;;  %v4192_v47 = vrot.slane %v4190_v57, 4  ;;  %v4196_v4 = vshll.u32 %v4109_v6, 16 }
 0x2aa   : > { %7861 = vst [vmem:[#allocation11_spill] sm:$0xff] %v7429_v23  ;;  %v3325_v13 = vpop.f32.mrf.mxu2  ;;  %v4165_v53 = vsel %vm6490_vm5, %v4160_v45, %v4164_v2  ;;  %v4179_v23 = vrot.slane %v4177_v41, 4  ;;  %v4182_v2 = vrot.slane %v4180_v14, 5 }
 0x2ab   : > { %v2657_v18 = vpop.f32.mrf.mxu1  ;;  %v4193_v55 = vor.u32 %v4192_v47, %v4188_v35  ;;  %v4214_v47 = vshrl.u32 %v4111_v20, 16 }
 0x2ac   : > { %v7434_v36 = vpop.f32.mrf.mxu3  ;;  %v2715_v12 = vadd.f32 %v2657_v18, %v7019_v11  ;;  %v4843_v11 = vsel %vm6405_vm13, %v6058_v48, %v4842_v27  ;;  %v4952_v18 = vunpack.c.l.b16 %v4846_v60  ;;  %v4183_v57 = vor.u32 %v4182_v2, %v4179_v23  ;;  %v4112_v48 = vld [vmem:[#allocation2 + $0x38] sm:$0x1] }
 0x2ad   : > { %7862 = vst [vmem:[#allocation12_spill] sm:$0xff] %v7434_v36  ;;  %v4540_v36 = vunpack.c.l.b16 %v4165_v53  ;;  %v4951_v3 = vunpack.c.l.b16 %v4843_v11  ;;  %v4194_v60 = vrot.slane %v4193_v55, 4  ;;  %v4851_v53 = vrot.slane %v4849_v7, 4 }
 0x2ae   : > { %v7439_v56 = vadd.f32 %v3322_v42, %v2715_v12  ;;  %v4852_v41 = vrot.slane %v4112_v48, 5  ;;  %v4210_v23 = vshll.u32 %v4111_v20, 16 }
 0x2af   : > { %v4572_v59 = vpack.c.b16 %v4541_v37, %v4540_v36  ;;  %v4982_v45 = vpack.c.b16 %v4952_v18, %v4951_v3  ;;  %v4198_v36 = vrot.slane %v4196_v4, 5  ;;  %v4771_v37 = vld [vmem:[#allocation2 + $0x30] sm:$0xe] }
 0x2b0   : > { %7863 = vst [vmem:[#allocation13_spill] sm:$0xff] %v7439_v56  ;;  %v4853_v6 = vsel %vm6405_vm13, %v4851_v53, %v4852_v41  ;;  %v4110_v3 = vld [vmem:[#allocation2 + $0x30] sm:$0xf]  ;;  %v4212_v4 = vrot.slane %v4210_v23, 5 }
 0x2b1   : > { %v4199_v18 = vsel %vm6490_vm5, %v4194_v60, %v4198_v36  ;;  %v4201_v55 = vshrl.u32 %v4110_v3, 16 }
 0x2b2   : > { %v3327_v62 = vpop.f32.mrf.mxu2  ;;  %v4543_v2 = vunpack.c.l.b16 %v4199_v18 }
 0x2b3   : > { %v2660_v42 = vpop.f32.mrf.mxu1 }
 0x2b4   : > { %v3734_v12 = vpop.f32.mrf.mxu3  ;;  %v2716_v56 = vadd.f32 %v2660_v42, %v7031_v54 }
 0x2b6   : > { %v3381_v27 = vadd.f32 %v3325_v13, %v2716_v56  ;;  %6041 = vmatmul.msk.bf16.vlgmr.msra.gmra.mxu1 %vm1672_vm14, %v4572_v59  ;;  %v4184_v56 = vrot.slane %v4183_v57, 4  ;;  %v4216_v57 = vrot.slane %v4214_v47, 4 }
 0x2b7   : > { %6082 = vmatmul.msk.bf16.gmra.mxu2 %vm1672_vm14, %v4982_v45  ;;  %v4954_v45 = vunpack.c.l.b16 %v4853_v6  ;;  %v4220_v6 = vshll.u32 %v4112_v48, 16  ;;  %v4113_v48 = vld [vmem:[#allocation2 + $0x3c] sm:$0xf] }
 0x2b8   : > { %v7450_v52 = vadd.f32 %v3734_v12, %v3381_v27  ;;  %v6059_v12 = vrot.slane %v4771_v37, 9  ;;  %v4189_v59 = vsel %vm6490_vm5, %v4184_v56, %v4188_v35  ;;  %v4204_v27 = vshll.u32 %v4110_v3, 16  ;;  %v4115_v3 = vld [vmem:[#allocation2 + $0x44] sm:$0x1] }
 0x2b9   : > { %v4542_v60 = vunpack.c.l.b16 %v4189_v59  ;;  %v4203_v35 = vrot.slane %v4201_v55, 4  ;;  %v4217_v18 = vor.u32 %v4216_v57, %v4212_v4 }
 0x2ba   : > { %v3330_v13 = vpop.f32.mrf.mxu2  ;;  %v4206_v56 = vrot.slane %v4204_v27, 5  ;;  %v4859_v27 = vrot.slane %v4115_v3, 5 }
 0x2bb   : > { %v2662_v54 = vpop.f32.mrf.mxu1  ;;  %v4573_v41 = vpack.c.b16 %v4543_v2, %v4542_v60  ;;  %v4222_v2 = vrot.slane %v4220_v6, 5 }
 0x2bc   : > { %v7452_v11 = vpop.f32.mrf.mxu3  ;;  %v2717_v14 = vadd.f32 %v2662_v54, %v7044_v16  ;;  %v4850_v16 = vsel %vm6405_vm13, %v6059_v12, %v4849_v7  ;;  %v4207_v47 = vor.u32 %v4206_v56, %v4203_v35  ;;  %v4218_v12 = vrot.slane %v4217_v18, 4 }
 0x2bd   : > { %7864 = vst [vmem:[#allocation14_spill] sm:$0xff] %v7452_v11  ;;  %v4953_v20 = vunpack.c.l.b16 %v4850_v16  ;;  %v4225_v35 = vshrl.u32 %v4113_v48, 16  ;;  %v4228_v18 = vshll.u32 %v4113_v48, 16  ;;  %v4244_v48 = vshll.u32 %v4115_v3, 16  ;;  %v4116_v3 = vld [vmem:[#allocation2 + $0x48] sm:$0xf] }
 0x2be   : > { %v7459_v42 = vadd.f32 %v3327_v62, %v2717_v14  ;;  %v4114_v62 = vld [vmem:[#allocation2 + $0x40] sm:$0xf]  ;;  %v4208_v57 = vrot.slane %v4207_v47, 4  ;;  %v4223_v60 = vsel %vm6490_vm5, %v4218_v12, %v4222_v2  ;;  %v4117_v2 = vld [vmem:[#allocation2 + $0x4c] sm:$0xf] }
 0x2bf   : > { %v4983_v14 = vpack.c.b16 %v4954_v45, %v4953_v20  ;;  %v4856_v7 = vrot.slane %v4114_v62, 5  ;;  %v4772_v45 = vld [vmem:[#allocation2 + $0x3c] sm:$0xe] }
 0x2c0   : > { %v6060_v20 = vrot.slane %v4772_v45, 9 }
 0x2c1   : > { %v4858_v59 = vrot.slane %v4856_v7, 4 }
 0x2c2   : > { %v3332_v37 = vpop.f32.mrf.mxu2 }
 0x2c3   : > { %v2665_v53 = vpop.f32.mrf.mxu1 }
 0x2c4   : > { %v3739_v54 = vpop.f32.mrf.mxu3  ;;  %v2718_v36 = vadd.f32 %v2665_v53, %v7056_v49  ;;  %v4238_v53 = vshrl.u32 %v4114_v62, 16 }
 0x2c6   : > { %v3383_v11 = vadd.f32 %v3330_v13, %v2718_v36  ;;  %6042 = vmatmul.msk.bf16.gmra.mxu1 %vm1672_vm14, %v4573_v41  ;;  %v4860_v36 = vsel %vm6405_vm13, %v4858_v59, %v4859_v27  ;;  %v4213_v41 = vsel %vm6490_vm5, %v4208_v57, %v4212_v4  ;;  %v4240_v47 = vrot.slane %v4238_v53, 4 }
 0x2c7   : > { %6083 = vmatmul.msk.bf16.gmra.mxu2 %vm1672_vm14, %v4983_v14  ;;  %v4545_v14 = vunpack.c.l.b16 %v4223_v60  ;;  %v4956_v56 = vunpack.c.l.b16 %v4860_v36  ;;  %v4544_v12 = vunpack.c.l.b16 %v4213_v41  ;;  %v4227_v4 = vrot.slane %v4225_v35, 4  ;;  %v4118_v36 = vld [vmem:[#allocation2 + $0x50] sm:$0x1]  ;;  %v4773_v35 = vld [vmem:[#allocation2 + $0x48] sm:$0xe] }
 0x2c8   : > { %v7468_v23 = vadd.f32 %v3739_v54, %v3383_v11  ;;  %v4234_v11 = vshll.u32 %v4114_v62, 16  ;;  %v4230_v57 = vrot.slane %v4228_v18, 5  ;;  %v4866_v18 = vrot.slane %v4118_v36, 5 }
 0x2ca   : > { %v3335_v13 = vpop.f32.mrf.mxu2  ;;  %v4236_v6 = vrot.slane %v4234_v11, 5  ;;  %v4231_v53 = vor.u32 %v4230_v57, %v4227_v4  ;;  %v4249_v4 = vshrl.u32 %v4116_v3, 16 }
 0x2cb   : > { %v2667_v49 = vpop.f32.mrf.mxu1 }
 0x2cc   : > { %v7470_v16 = vpop.f32.mrf.mxu3  ;;  %v2719_v55 = vadd.f32 %v2667_v49, %v7070_v5  ;;  %v4857_v5 = vsel %vm6405_vm13, %v6060_v20, %v4856_v7  ;;  %v4241_v60 = vor.u32 %v4240_v47, %v4236_v6  ;;  %v4863_v7 = vrot.slane %v4117_v2, 5 }
 0x2cd   : > { %7865 = vst [vmem:[#allocation15_spill] sm:$0xff] %v7470_v16  ;;  %v4955_v49 = vunpack.c.l.b16 %v4857_v5  ;;  %v4232_v47 = vrot.slane %v4231_v53, 4 }
 0x2ce   : > { %v7475_v54 = vadd.f32 %v3332_v37, %v2719_v55  ;;  %v4574_v55 = vpack.c.b16 %v4545_v14, %v4544_v12  ;;  %v4242_v20 = vrot.slane %v4241_v60, 4  ;;  %v4865_v41 = vrot.slane %v4863_v7, 4 }
 0x2cf   : > { %v4984_v27 = vpack.c.b16 %v4956_v56, %v4955_v49  ;;  %v4246_v14 = vrot.slane %v4244_v48, 5  ;;  %v6061_v49 = vrot.slane %v4773_v35, 9  ;;  %v4252_v60 = vshll.u32 %v4116_v3, 16 }
 0x2d0   : > { %v4268_v3 = vshll.u32 %v4118_v36, 16  ;;  %v4119_v36 = vld [vmem:[#allocation2 + $0x54] sm:$0xf] }
 0x2d1   : > { %v4247_v12 = vsel %vm6490_vm5, %v4242_v20, %v4246_v14  ;;  %v4120_v14 = vld [vmem:[#allocation2 + $0x58] sm:$0xf] }
 0x2d2   : > { %v3337_v59 = vpop.f32.mrf.mxu2 }
 0x2d3   : > { %v2670_v62 = vpop.f32.mrf.mxu1 }
 0x2d4   : > { %v3744_v37 = vpop.f32.mrf.mxu3  ;;  %v2720_v45 = vadd.f32 %v2670_v62, %v7083_v40  ;;  %v4262_v62 = vshrl.u32 %v4117_v2, 16 }
 0x2d6   : > { %v3385_v16 = vadd.f32 %v3335_v13, %v2720_v45  ;;  %6043 = vmatmul.msk.bf16.gmra.mxu1 %vm1672_vm14, %v4574_v55  ;;  %v4867_v45 = vsel %vm6405_vm13, %v4865_v41, %v4866_v18  ;;  %v4237_v55 = vsel %vm6490_vm5, %v4232_v47, %v4236_v6  ;;  %v4264_v53 = vrot.slane %v4262_v62, 4 }
 0x2d7   : > { %6084 = vmatmul.msk.bf16.gmra.mxu2 %vm1672_vm14, %v4984_v27  ;;  %v4547_v27 = vunpack.c.l.b16 %v4247_v12  ;;  %v4958_v57 = vunpack.c.l.b16 %v4867_v45  ;;  %v4546_v20 = vunpack.c.l.b16 %v4237_v55  ;;  %v4251_v6 = vrot.slane %v4249_v4, 4  ;;  %v4121_v45 = vld [vmem:[#allocation2 + $0x5c] sm:$0x1]  ;;  %v4774_v4 = vld [vmem:[#allocation2 + $0x54] sm:$0xe] }
 0x2d8   : > { %v7486_v11 = vadd.f32 %v3744_v37, %v3385_v16  ;;  %v4258_v16 = vshll.u32 %v4117_v2, 16  ;;  %v4254_v47 = vrot.slane %v4252_v60, 5  ;;  %v4873_v60 = vrot.slane %v4121_v45, 5 }
 0x2da   : > { %v3340_v13 = vpop.f32.mrf.mxu2  ;;  %v4260_v48 = vrot.slane %v4258_v16, 5  ;;  %v4255_v62 = vor.u32 %v4254_v47, %v4251_v6  ;;  %v4273_v6 = vshrl.u32 %v4119_v36, 16 }
 0x2db   : > { %v2672_v40 = vpop.f32.mrf.mxu1 }
 0x2dc   : > { %v7488_v5 = vpop.f32.mrf.mxu3  ;;  %v2721_v56 = vadd.f32 %v2672_v40, %v7097_v28  ;;  %v4864_v28 = vsel %vm6405_vm13, %v6061_v49, %v4863_v7  ;;  %v4265_v12 = vor.u32 %v4264_v53, %v4260_v48  ;;  %v4870_v7 = vrot.slane %v4120_v14, 5 }
 0x2dd   : > { %7866 = vst [vmem:[#allocation16_spill] sm:$0xff] %v7488_v5  ;;  %v4957_v40 = vunpack.c.l.b16 %v4864_v28  ;;  %v4256_v53 = vrot.slane %v4255_v62, 4 }
 0x2de   : > { %v7493_v37 = vadd.f32 %v3337_v59, %v2721_v56  ;;  %v4575_v56 = vpack.c.b16 %v4547_v27, %v4546_v20  ;;  %v4266_v49 = vrot.slane %v4265_v12, 4  ;;  %v4872_v55 = vrot.slane %v4870_v7, 4 }
 0x2df   : > { %v4985_v18 = vpack.c.b16 %v4958_v57, %v4957_v40  ;;  %v4270_v27 = vrot.slane %v4268_v3, 5  ;;  %v6062_v40 = vrot.slane %v4774_v4, 9  ;;  %v4276_v12 = vshll.u32 %v4119_v36, 16 }
 0x2e0   : > { %v4292_v36 = vshll.u32 %v4121_v45, 16  ;;  %v4122_v45 = vld [vmem:[#allocation2 + $0x60] sm:$0xf] }
 0x2e1   : > { %v4271_v20 = vsel %vm6490_vm5, %v4266_v49, %v4270_v27  ;;  %v4123_v27 = vld [vmem:[#allocation2 + $0x64] sm:$0xf] }
 0x2e2   : > { %v3342_v41 = vpop.f32.mrf.mxu2 }
 0x2e3   : > { %v2675_v2 = vpop.f32.mrf.mxu1 }
 0x2e4   : > { %v3749_v59 = vpop.f32.mrf.mxu3  ;;  %v2722_v35 = vadd.f32 %v2675_v2, %v7110_v30  ;;  %v4286_v2 = vshrl.u32 %v4120_v14, 16 }
 0x2e6   : > { %v3387_v5 = vadd.f32 %v3340_v13, %v2722_v35  ;;  %6044 = vmatmul.msk.bf16.gmra.mxu1 %vm1672_vm14, %v4575_v56  ;;  %v4874_v35 = vsel %vm6405_vm13, %v4872_v55, %v4873_v60  ;;  %v4261_v56 = vsel %vm6490_vm5, %v4256_v53, %v4260_v48  ;;  %v4288_v62 = vrot.slane %v4286_v2, 4 }
 0x2e7   : > { %6085 = vmatmul.msk.bf16.gmra.mxu2 %vm1672_vm14, %v4985_v18  ;;  %v4549_v18 = vunpack.c.l.b16 %v4271_v20  ;;  %v4960_v47 = vunpack.c.l.b16 %v4874_v35  ;;  %v4548_v49 = vunpack.c.l.b16 %v4261_v56  ;;  %v4275_v48 = vrot.slane %v4273_v6, 4  ;;  %v4124_v35 = vld [vmem:[#allocation2 + $0x68] sm:$0x1]  ;;  %v4775_v6 = vld [vmem:[#allocation2 + $0x60] sm:$0xe] }
 0x2e8   : > { %v7504_v16 = vadd.f32 %v3749_v59, %v3387_v5  ;;  %v4282_v5 = vshll.u32 %v4120_v14, 16  ;;  %v4278_v53 = vrot.slane %v4276_v12, 5  ;;  %v4880_v12 = vrot.slane %v4124_v35, 5 }
 0x2ea   : > { %v3345_v13 = vpop.f32.mrf.mxu2  ;;  %v4284_v3 = vrot.slane %v4282_v5, 5  ;;  %v4279_v2 = vor.u32 %v4278_v53, %v4275_v48  ;;  %v4297_v48 = vshrl.u32 %v4122_v45, 16 }
 0x2eb   : > { %v2677_v30 = vpop.f32.mrf.mxu1 }
 0x2ec   : > { %v7506_v28 = vpop.f32.mrf.mxu3  ;;  %v2723_v57 = vadd.f32 %v2677_v30, %v7125_v63  ;;  %v4871_v63 = vsel %vm6405_vm13, %v6062_v40, %v4870_v7  ;;  %v4289_v20 = vor.u32 %v4288_v62, %v4284_v3  ;;  %v4877_v7 = vrot.slane %v4123_v27, 5 }
 0x2ed   : > { %7867 = vst [vmem:[#allocation17_spill] sm:$0xff] %v7506_v28  ;;  %v4959_v30 = vunpack.c.l.b16 %v4871_v63  ;;  %v4280_v62 = vrot.slane %v4279_v2, 4 }
 0x2ee   : > { %v7511_v59 = vadd.f32 %v3342_v41, %v2723_v57  ;;  %v4576_v57 = vpack.c.b16 %v4549_v18, %v4548_v49  ;;  %v4290_v40 = vrot.slane %v4289_v20, 4  ;;  %v4879_v56 = vrot.slane %v4877_v7, 4 }
 0x2ef   : > { %v4986_v60 = vpack.c.b16 %v4960_v47, %v4959_v30  ;;  %v4294_v18 = vrot.slane %v4292_v36, 5  ;;  %v6063_v30 = vrot.slane %v4775_v6, 9  ;;  %v4300_v20 = vshll.u32 %v4122_v45, 16 }
 0x2f0   : > { %v4316_v45 = vshll.u32 %v4124_v35, 16  ;;  %v4125_v35 = vld [vmem:[#allocation2 + $0x6c] sm:$0xf] }
 0x2f1   : > { %v4295_v49 = vsel %vm6490_vm5, %v4290_v40, %v4294_v18  ;;  %v4126_v18 = vld [vmem:[#allocation2 + $0x70] sm:$0xf] }
 0x2f2   : > { %v3347_v55 = vpop.f32.mrf.mxu2 }
 0x2f3   : > { %v2680_v14 = vpop.f32.mrf.mxu1 }
 0x2f4   : > { %v3754_v41 = vpop.f32.mrf.mxu3  ;;  %v2724_v4 = vadd.f32 %v2680_v14, %v7137_v9  ;;  %v4310_v14 = vshrl.u32 %v4123_v27, 16 }
 0x2f6   : > { %v3389_v28 = vadd.f32 %v3345_v13, %v2724_v4  ;;  %6045 = vmatmul.msk.bf16.gmra.mxu1 %vm1672_vm14, %v4576_v57  ;;  %v4881_v4 = vsel %vm6405_vm13, %v4879_v56, %v4880_v12  ;;  %v4285_v57 = vsel %vm6490_vm5, %v4280_v62, %v4284_v3  ;;  %v4312_v2 = vrot.slane %v4310_v14, 4 }
 0x2f7   : > { %6086 = vmatmul.msk.bf16.gmra.mxu2 %vm1672_vm14, %v4986_v60  ;;  %v4551_v60 = vunpack.c.l.b16 %v4295_v49  ;;  %v4962_v53 = vunpack.c.l.b16 %v4881_v4  ;;  %v4550_v40 = vunpack.c.l.b16 %v4285_v57  ;;  %v4299_v3 = vrot.slane %v4297_v48, 4  ;;  %v4127_v4 = vld [vmem:[#allocation2 + $0x74] sm:$0x1]  ;;  %v4776_v48 = vld [vmem:[#allocation2 + $0x6c] sm:$0xe] }
 0x2f8   : > { %v7522_v5 = vadd.f32 %v3754_v41, %v3389_v28  ;;  %v4306_v28 = vshll.u32 %v4123_v27, 16  ;;  %v4302_v62 = vrot.slane %v4300_v20, 5  ;;  %v4887_v20 = vrot.slane %v4127_v4, 5 }
 0x2fa   : > { %v3350_v13 = vpop.f32.mrf.mxu2  ;;  %v4308_v36 = vrot.slane %v4306_v28, 5  ;;  %v4303_v14 = vor.u32 %v4302_v62, %v4299_v3  ;;  %v4321_v3 = vshrl.u32 %v4125_v35, 16 }
 0x2fb   : > { %v2682_v9 = vpop.f32.mrf.mxu1 }
 0x2fc   : > { %v7524_v63 = vpop.f32.mrf.mxu3  ;;  %v2725_v47 = vadd.f32 %v2682_v9, %v7152_v8  ;;  %v4878_v8 = vsel %vm6405_vm13, %v6063_v30, %v4877_v7  ;;  %v4313_v49 = vor.u32 %v4312_v2, %v4308_v36  ;;  %v4884_v7 = vrot.slane %v4126_v18, 5 }
 0x2fd   : > { %7868 = vst [vmem:[#allocation18_spill] sm:$0xff] %v7524_v63  ;;  %v4961_v9 = vunpack.c.l.b16 %v4878_v8  ;;  %v4304_v2 = vrot.slane %v4303_v14, 4 }
 0x2fe   : > { %v7529_v41 = vadd.f32 %v3347_v55, %v2725_v47  ;;  %v4577_v47 = vpack.c.b16 %v4551_v60, %v4550_v40  ;;  %v4314_v30 = vrot.slane %v4313_v49, 4  ;;  %v4886_v57 = vrot.slane %v4884_v7, 4 }
 0x2ff   : > { %v4987_v12 = vpack.c.b16 %v4962_v53, %v4961_v9  ;;  %v4318_v60 = vrot.slane %v4316_v45, 5  ;;  %v6064_v9 = vrot.slane %v4776_v48, 9  ;;  %v4324_v49 = vshll.u32 %v4125_v35, 16 }
 0x300   : > { %v4340_v35 = vshll.u32 %v4127_v4, 16  ;;  %v4128_v4 = vld [vmem:[#allocation2 + $0x78] sm:$0xf] }
 0x301   : > { %v4319_v40 = vsel %vm6490_vm5, %v4314_v30, %v4318_v60  ;;  %v4129_v60 = vld [vmem:[#allocation2 + $0x7c] sm:$0xf] }
 0x302   : > { %v3352_v56 = vpop.f32.mrf.mxu2 }
 0x303   : > { %v2685_v27 = vpop.f32.mrf.mxu1 }
 0x304   : > { %v3759_v55 = vpop.f32.mrf.mxu3  ;;  %v2726_v6 = vadd.f32 %v2685_v27, %v7164_v33  ;;  %v4334_v27 = vshrl.u32 %v4126_v18, 16 }
 0x306   : > { %v3391_v63 = vadd.f32 %v3350_v13, %v2726_v6  ;;  %6046 = vmatmul.msk.bf16.gmra.mxu1 %vm1672_vm14, %v4577_v47  ;;  %v4888_v6 = vsel %vm6405_vm13, %v4886_v57, %v4887_v20  ;;  %v4309_v47 = vsel %vm6490_vm5, %v4304_v2, %v4308_v36  ;;  %v4336_v14 = vrot.slane %v4334_v27, 4 }
 0x307   : > { %6087 = vmatmul.msk.bf16.gmra.mxu2 %vm1672_vm14, %v4987_v12  ;;  %v4553_v12 = vunpack.c.l.b16 %v4319_v40  ;;  %v4964_v62 = vunpack.c.l.b16 %v4888_v6  ;;  %v4552_v30 = vunpack.c.l.b16 %v4309_v47  ;;  %v4323_v36 = vrot.slane %v4321_v3, 4  ;;  %v4130_v6 = vld [vmem:[#allocation2 + $0x80] sm:$0x1] }
 0x308   : > { %v7540_v28 = vadd.f32 %v3759_v55, %v3391_v63  ;;  %v4330_v63 = vshll.u32 %v4126_v18, 16  ;;  %v4326_v2 = vrot.slane %v4324_v49, 5  ;;  %v4894_v49 = vrot.slane %v4130_v6, 5 }
 0x30a   : > { %v3355_v13 = vpop.f32.mrf.mxu2  ;;  %v4332_v45 = vrot.slane %v4330_v63, 5  ;;  %v4327_v27 = vor.u32 %v4326_v2, %v4323_v36  ;;  %v4345_v36 = vshrl.u32 %v4128_v4, 16 }
 0x30b   : > { %v2687_v33 = vpop.f32.mrf.mxu1 }
 0x30c   : > { %v7542_v8 = vpop.f32.mrf.mxu3  ;;  %v2727_v53 = vadd.f32 %v2687_v33, %v7179_v0  ;;  %v4885_v0 = vsel %vm6405_vm13, %v6064_v9, %v4884_v7  ;;  %v4337_v40 = vor.u32 %v4336_v14, %v4332_v45  ;;  %v4891_v7 = vrot.slane %v4129_v60, 5 }
 0x30d   : > { %7869 = vst [vmem:[#allocation19_spill] sm:$0xff] %v7542_v8  ;;  %v4963_v33 = vunpack.c.l.b16 %v4885_v0  ;;  %v4342_v0 = vrot.slane %v4340_v35, 5  ;;  %v4328_v14 = vrot.slane %v4327_v27, 4 }
 0x30e   : > { %v7547_v55 = vadd.f32 %v3352_v56, %v2727_v53  ;;  %v4578_v53 = vpack.c.b16 %v4553_v12, %v4552_v30  ;;  %v4338_v9 = vrot.slane %v4337_v40, 4  ;;  %v4893_v47 = vrot.slane %v4891_v7, 4  ;;  %v4777_v12 = vld [vmem:[#allocation2 + $0x78] sm:$0xe] }
 0x30f   : > { %v4988_v20 = vpack.c.b16 %v4964_v62, %v4963_v33  ;;  %v6065_v33 = vrot.slane %v4777_v12, 9  ;;  %v4348_v40 = vshll.u32 %v4128_v4, 16  ;;  %v4364_v4 = vshll.u32 %v4130_v6, 16 }
 0x310   : > { %v4343_v30 = vsel %vm6490_vm5, %v4338_v9, %v4342_v0 }
 0x312   : > { %v3357_v57 = vpop.f32.mrf.mxu2 }
 0x313   : > { %v2690_v18 = vpop.f32.mrf.mxu1 }
 0x314   : > { %v3764_v56 = vpop.f32.mrf.mxu3  ;;  %v2728_v48 = vadd.f32 %v2690_v18, %v7194_v10  ;;  %v4358_v18 = vshrl.u32 %v4129_v60, 16 }
 0x316   : > { %v3393_v8 = vadd.f32 %v3355_v13, %v2728_v48  ;;  %6047 = vmatmul.msk.bf16.gmra.mxu1 %vm1672_vm14, %v4578_v53  ;;  %v4895_v48 = vsel %vm6405_vm13, %v4893_v47, %v4894_v49  ;;  %v4555_v53 = vunpack.c.l.b16 %v4343_v30  ;;  %v4360_v27 = vrot.slane %v4358_v18, 4 }
 0x317   : > { %6088 = vmatmul.msk.bf16.gmra.mxu2 %vm1672_vm14, %v4988_v20  ;;  %v4892_v20 = vsel %vm6405_vm13, %v6065_v33, %v4891_v7  ;;  %v4966_v2 = vunpack.c.l.b16 %v4895_v48  ;;  %v4347_v49 = vrot.slane %v4345_v36, 4 }
 0x318   : > { %v7558_v63 = vadd.f32 %v3764_v56, %v3393_v8  ;;  %v4354_v8 = vshll.u32 %v4129_v60, 16 }
 0x31a   : > { %v3360_v62 = vpop.f32.mrf.mxu2  ;;  %v4356_v35 = vrot.slane %v4354_v8, 5 }
 0x31b   : > { %v2692_v10 = vpop.f32.mrf.mxu1 }
 0x31c   : > { %v2729_v3 = vadd.f32 %v2692_v10, %v7212_v32  ;;  %v7561_v13 = vpop.f32.mrf.mxu3  ;;  %v4333_v32 = vsel %vm6490_vm5, %v4328_v14, %v4332_v45  ;;  %v4132_v10 = vld [vmem:[#allocation2 + $0x88] sm:$0xf]  ;;  %v4350_v45 = vrot.slane %v4348_v40, 5  ;;  %v4361_v14 = vor.u32 %v4360_v27, %v4356_v35 }
 0x31d   : > { %v4554_v9 = vunpack.c.l.b16 %v4333_v32  ;;  %v4898_v7 = vrot.slane %v4132_v10, 5  ;;  %v4133_v32 = vld [vmem:[#allocation2 + $0x8c] sm:$0x1]  ;;  %v4382_v6 = vshrl.u32 %v4132_v10, 16 }
 0x31e   : > { %v7565_v56 = vadd.f32 %v3357_v57, %v2729_v3  ;;  %v4965_v57 = vunpack.c.l.b16 %v4892_v20  ;;  %v4351_v18 = vor.u32 %v4350_v45, %v4347_v49  ;;  %v4362_v48 = vrot.slane %v4361_v14, 4 }
 0x31f   : > { %v4579_v47 = vpack.c.b16 %v4555_v53, %v4554_v9  ;;  %v4366_v53 = vrot.slane %v4364_v4, 5 }
 0x320   : > { %v4989_v3 = vpack.c.b16 %v4966_v2, %v4965_v57  ;;  %v4778_v2 = vld [vmem:[#allocation2 + $0x84] sm:$0xe]  ;;  %v4352_v27 = vrot.slane %v4351_v18, 4  ;;  %v4378_v57 = vshll.u32 %v4132_v10, 16  ;;  %v4384_v18 = vrot.slane %v4382_v6, 4 }
 0x321   : > { %v4367_v9 = vsel %vm6490_vm5, %v4362_v48, %v4366_v53  ;;  %v4072_v53 = vadd.f32 %v7294_v34, %v7253_v25  ;;  %v7596_v25 = vld [vmem:[%s7837_s4] ss:$0 sm:$0xff]  ;;  %v4073_v34 = vadd.f32 %v7310_v44, %v7266_v22 }
 0x322   : > { %v3362_v12 = vpop.f32.mrf.mxu2  ;;  %v4357_v49 = vsel %vm6490_vm5, %v4352_v27, %v4356_v35  ;;  %v4557_v45 = vunpack.c.l.b16 %v4367_v9  ;;  %v4380_v4 = vrot.slane %v4378_v57, 5 }
 0x323   : > { %v2695_v60 = vpop.f32.mrf.mxu1  ;;  %v4556_v48 = vunpack.c.l.b16 %v4357_v49 }
 0x324   : > { %v2730_v0 = vadd.f32 %v2695_v60, %v7224_v43  ;;  %v3769_v33 = vpop.f32.mrf.mxu3  ;;  %v4900_v43 = vrot.slane %v4898_v7, 4  ;;  %v4131_v60 = vld [vmem:[#allocation2 + $0x84] sm:$0xf]  ;;  %v4385_v27 = vor.u32 %v4384_v18, %v4380_v4 }
 0x325   : > { %v4369_v14 = vshrl.u32 %v4131_v60, 16 }
 0x326   : > { %v3395_v30 = vadd.f32 %v3360_v62, %v2730_v0  ;;  %6048 = vmatmul.msk.bf16.gmra.mxu1 %vm1672_vm14, %v4579_v47  ;;  %v4901_v62 = vrot.slane %v4133_v32, 5  ;;  %v6066_v47 = vrot.slane %v4778_v2, 9  ;;  %v4386_v6 = vrot.slane %v4385_v27, 4 }
 0x327   : > { %6089 = vmatmul.msk.bf16.gmra.mxu2 %vm1672_vm14, %v4989_v3  ;;  %v4371_v35 = vrot.slane %v4369_v14, 4  ;;  %v4779_v14 = vld [vmem:[#allocation2 + $0x90] sm:$0xe] }
 0x328   : > { %v7576_v8 = vadd.f32 %v3769_v33, %v3395_v30  ;;  %v4902_v3 = vsel %vm6405_vm13, %v4900_v43, %v4901_v62  ;;  %v4372_v33 = vshll.u32 %v4131_v60, 16  ;;  %v4580_v43 = vpack.c.b16 %v4557_v45, %v4556_v48 }
 0x329   : > { %v4968_v30 = vunpack.c.l.b16 %v4902_v3  ;;  %v4388_v60 = vshll.u32 %v4133_v32, 16 }
 0x32a   : > { %v5066_v40 = vpop.f32.mrf.mxu2  ;;  %v4374_v62 = vrot.slane %v4372_v33, 5 }
 0x32b   : > { %v2697_v20 = vpop.f32.mrf.mxu1 }
 0x32c   : > { %v2731_v36 = vadd.f32 %v2697_v20, %v7239_v46  ;;  %v4899_v46 = vsel %vm6405_vm13, %v6066_v47, %v4898_v7  ;;  %v4135_v20 = vld [vmem:[#allocation2 + $0x94] sm:$0xf]  ;;  %v4375_v57 = vor.u32 %v4374_v62, %v4371_v35  ;;  %v4136_v47 = vld [vmem:[#allocation2 + $0x98] sm:$0x1] }
 0x32d   : > { %v4905_v7 = vrot.slane %v4135_v20, 5  ;;  %v4908_v18 = vrot.slane %v4136_v47, 5 }
 0x32e   : > { %v7581_v0 = vadd.f32 %v3362_v12, %v2731_v36  ;;  %v4967_v12 = vunpack.c.l.b16 %v4899_v46  ;;  %v4390_v46 = vrot.slane %v4388_v60, 5  ;;  %v4376_v32 = vrot.slane %v4375_v57, 4 }
 0x32f   : > { %v4907_v49 = vrot.slane %v4905_v7, 4 }
 0x330   : > { %v4990_v36 = vpack.c.b16 %v4968_v30, %v4967_v12  ;;  %v4391_v48 = vsel %vm6490_vm5, %v4386_v6, %v4390_v46  ;;  %v4406_v12 = vshrl.u32 %v4135_v20, 16  ;;  %v4381_v44 = vsel %vm6490_vm5, %v4376_v32, %v4380_v4 }
 0x331   : > { %v4909_v22 = vsel %vm6405_vm13, %v4907_v49, %v4908_v18  ;;  %v4559_v62 = vunpack.c.l.b16 %v4391_v48 }
 0x332   : > { %v5068_v2 = vpop.f32.mrf.mxu2  ;;  %v4970_v60 = vunpack.c.l.b16 %v4909_v22  ;;  %v4408_v6 = vrot.slane %v4406_v12, 4 }
 0x333   : > { %v4657_v10 = vpop.f32.mrf.mxu1 }
 0x334   : > { %v4737_v9 = vadd.f32 %v4657_v10, %v4072_v53  ;;  %v4402_v10 = vshll.u32 %v4135_v20, 16 }
 0x336   : > { %6049 = vmatmul.msk.bf16.gmra.mxu1 %vm1672_vm14, %v4580_v43  ;;  %v5146_v3 = vadd.f32 %v5066_v40, %v4737_v9  ;;  %v4134_v40 = vld [vmem:[#allocation2 + $0x90] sm:$0xf]  ;;  %v4404_v20 = vrot.slane %v4402_v10, 5 }
 0x337   : > { %6090 = vmatmul.msk.bf16.gmra.mxu2 %vm1672_vm14, %v4990_v36  ;;  %v6067_v36 = vrot.slane %v4779_v14, 9  ;;  %v4393_v9 = vshrl.u32 %v4134_v40, 16  ;;  %v4396_v57 = vshll.u32 %v4134_v40, 16  ;;  %v4138_v14 = vld [vmem:[#allocation2 + $0xa0] sm:$0xf] }
 0x338   : > { %v5182_v53 = vadd.f32 %v7596_v25, %v5146_v3  ;;  %v4409_v40 = vor.u32 %v4408_v6, %v4404_v20  ;;  %v4912_v12 = vrot.slane %v4138_v14, 5 }
 0x339   : > { %v4906_v27 = vsel %vm6405_vm13, %v6067_v36, %v4905_v7  ;;  %v4395_v48 = vrot.slane %v4393_v9, 4  ;;  %v4780_v9 = vld [vmem:[#allocation2 + $0x9c] sm:$0xe] }
 0x33a   : > { %v5071_v33 = vpop.f32.mrf.mxu2  ;;  %v5214_v3 = vmax.f32 %v5182_v53, 0.0  ;;  %v4969_v46 = vunpack.c.l.b16 %v4906_v27  ;;  %v4412_v53 = vshll.u32 %v4136_v47, 16  ;;  %v4410_v22 = vrot.slane %v4409_v40, 4 }
 0x33b   : > { %v4659_v45 = vpop.f32.mrf.mxu1 }
 0x33c   : > { %v4738_v30 = vadd.f32 %v4659_v45, %v4073_v34  ;;  %v4558_v34 = vunpack.c.l.b16 %v4381_v44  ;;  %v7610_v45 = vpop.f32.mrf.mxu0  ;;  %v4991_v7 = vpack.c.b16 %v4970_v60, %v4969_v46  ;;  %v4139_v44 = vld [vmem:[#allocation2 + $0xa4] sm:$0x1]  ;;  %v4414_v27 = vrot.slane %v4412_v53, 5 }
 0x33d   : > { %v4915_v6 = vrot.slane %v4139_v44, 5  ;;  %v4430_v46 = vshrl.u32 %v4138_v14, 16 }
 0x33e   : > { %v5147_v43 = vadd.f32 %v5068_v2, %v4738_v30  ;;  %v4074_v30 = vadd.f32 %v7326_v26, %v7276_v1  ;;  %v4581_v18 = vpack.c.b16 %v4559_v62, %v4558_v34  ;;  %v4075_v1 = vadd.f32 %v7346_v51, %v7289_v61  ;;  %v4137_v34 = vld [vmem:[#allocation2 + $0x9c] sm:$0xf] }
 0x33f   : > { %v4914_v26 = vrot.slane %v4912_v12, 4  ;;  %v4415_v47 = vsel %vm6490_vm5, %v4410_v22, %v4414_v27  ;;  %v6068_v61 = vrot.slane %v4780_v9, 9  ;;  %v4432_v53 = vrot.slane %v4430_v46, 4 }
 0x340   : > { %v5183_v35 = vadd.f32 %v7596_v25, %v5147_v43  ;;  %v4398_v43 = vrot.slane %v4396_v57, 5  ;;  %v4436_v46 = vshll.u32 %v4139_v44, 16 }
 0x341   : > { %v4916_v51 = vsel %vm6405_vm13, %v4914_v26, %v4915_v6  ;;  %v4141_v26 = vld [vmem:[#allocation2 + $0xac] sm:$0xf] }
 0x342   : > { %v5215_v2 = vmax.f32 %v5183_v35, 0.0  ;;  %v5073_v32 = vpop.f32.mrf.mxu2  ;;  %v4399_v36 = vor.u32 %v4398_v43, %v4395_v48  ;;  %v4913_v48 = vsel %vm6405_vm13, %v6068_v61, %v4912_v12  ;;  %v4417_v43 = vshrl.u32 %v4137_v34, 16 }
 0x343   : > { %v4662_v49 = vpop.f32.mrf.mxu1  ;;  %v4972_v40 = vunpack.c.l.b16 %v4916_v51  ;;  %v4077_v61 = vadd.f32 %v7380_v29, %v7316_v39  ;;  %v4450_v44 = vshll.u32 %v4141_v26, 16 }
 0x344   : > { %v5246_v4 = vpack.c.bf16 %v5215_v2, %v5214_v3  ;;  %v4739_v10 = vadd.f32 %v4662_v49, %v4074_v30  ;;  %v7619_v3 = vpop.f32.mrf.mxu0  ;;  %v4400_v2 = vrot.slane %v4399_v36, 4  ;;  %v4426_v49 = vshll.u32 %v4138_v14, 16 }
 0x345   : > { %v4419_v6 = vrot.slane %v4417_v43, 4 }
 0x346   : > { %6050 = vmatmul.msk.bf16.gmra.mxu1 %vm1672_vm14, %v4581_v18  ;;  %6105 = vmatmul.msk.bf16.vlgmr.msra.gmra.mxu3 %vm1672_vm14, %v5246_v4  ;;  %v5148_v35 = vadd.f32 %v5071_v33, %v4739_v10  ;;  %v4405_v30 = vsel %vm6490_vm5, %v4400_v2, %v4404_v20  ;;  %v4420_v10 = vshll.u32 %v4137_v34, 16  ;;  %v4428_v14 = vrot.slane %v4426_v49, 5 }
 0x347   : > { %6091 = vmatmul.msk.bf16.gmra.mxu2 %vm1672_vm14, %v4991_v7  ;;  %v4561_v7 = vunpack.c.l.b16 %v4415_v47  ;;  %v4560_v22 = vunpack.c.l.b16 %v4405_v30  ;;  %v4076_v20 = vadd.f32 %v7363_v17, %v7301_v19  ;;  %v4919_v34 = vrot.slane %v4141_v26, 5  ;;  %v4142_v17 = vld [vmem:[#allocation2 + $0xb0] sm:$0x1] }
 0x348   : > { %v5184_v33 = vadd.f32 %v7596_v25, %v5148_v35  ;;  %v4422_v12 = vrot.slane %v4420_v10, 5  ;;  %v4433_v2 = vor.u32 %v4432_v53, %v4428_v14 }
 0x349   : > { %v4921_v51 = vrot.slane %v4919_v34, 4 }
 0x34a   : > { %v5076_v57 = vpop.f32.mrf.mxu2  ;;  %v5216_v36 = vmax.f32 %v5184_v33, 0.0  ;;  %v4423_v33 = vor.u32 %v4422_v12, %v4419_v6  ;;  %v4434_v19 = vrot.slane %v4433_v2, 4  ;;  %v4452_v12 = vrot.slane %v4450_v44, 5 }
 0x34b   : > { %v4664_v62 = vpop.f32.mrf.mxu1 }
 0x34c   : > { %v4740_v60 = vadd.f32 %v4664_v62, %v4075_v1  ;;  %v4971_v1 = vunpack.c.l.b16 %v4913_v48  ;;  %v4582_v62 = vpack.c.b16 %v4561_v7, %v4560_v22  ;;  %v7635_v49 = vpop.f32.mrf.mxu0  ;;  %v4781_v7 = vld [vmem:[#allocation2 + $0xa8] sm:$0xe]  ;;  %v4424_v10 = vrot.slane %v4423_v33, 4 }
 0x34e   : > { %v5149_v4 = vadd.f32 %v5073_v32, %v4740_v60  ;;  %v4992_v60 = vpack.c.b16 %v4972_v40, %v4971_v1  ;;  %v4922_v40 = vrot.slane %v4142_v17, 5  ;;  %v4429_v29 = vsel %vm6490_vm5, %v4424_v10, %v4428_v14  ;;  %v7870_v14 = vld [vmem:[#allocation3_spill] sm:$0xff] }
 0x350   : > { %v5185_v18 = vadd.f32 %v7596_v25, %v5149_v4  ;;  %v4923_v39 = vsel %vm6405_vm13, %v4921_v51, %v4922_v40 }
 0x352   : > { %v5217_v32 = vmax.f32 %v5185_v18, 0.0  ;;  %v5078_v27 = vpop.f32.mrf.mxu2  ;;  %v4438_v18 = vrot.slane %v4436_v46, 5  ;;  %v4562_v46 = vunpack.c.l.b16 %v4429_v29 }
 0x353   : > { %v4667_v35 = vpop.f32.mrf.mxu1 }
 0x354   : > { %v5247_v9 = vpack.c.bf16 %v5217_v32, %v5216_v36  ;;  %v4741_v47 = vadd.f32 %v4667_v35, %v4076_v20  ;;  %v4439_v53 = vsel %vm6490_vm5, %v4434_v19, %v4438_v18  ;;  %v4140_v36 = vld [vmem:[#allocation2 + $0xa8] sm:$0xf]  ;;  %v4454_v32 = vshrl.u32 %v4141_v26, 16 }
 0x355   : > { %v6069_v35 = vrot.slane %v4781_v7, 9  ;;  %v4563_v20 = vunpack.c.l.b16 %v4439_v53  ;;  %v4974_v26 = vunpack.c.l.b16 %v4923_v39  ;;  %v4444_v6 = vshll.u32 %v4140_v36, 16 }
 0x356   : > { %6051 = vmatmul.msk.bf16.gmra.mxu1 %vm1672_vm14, %v4582_v62  ;;  %6106 = vmatmul.msk.bf16.gmra.mxu3 %vm1672_vm14, %v5247_v9  ;;  %v5150_v4 = vadd.f32 %v5076_v57, %v4741_v47  ;;  %v4441_v9 = vshrl.u32 %v4140_v36, 16  ;;  %v4460_v36 = vshll.u32 %v4142_v17, 16 }
 0x357   : > { %6092 = vmatmul.msk.bf16.gmra.mxu2 %vm1672_vm14, %v4992_v60  ;;  %v4920_v62 = vsel %vm6405_vm13, %v6069_v35, %v4919_v34  ;;  %v7650_v60 = vpop.f32.mrf.mxu0  ;;  %v4583_v51 = vpack.c.b16 %v4563_v20, %v4562_v46 }
 0x358   : > { %v5186_v22 = vadd.f32 %v7596_v25, %v5150_v4  ;;  %v4973_v19 = vunpack.c.l.b16 %v4920_v62  ;;  %v4144_v4 = vld [vmem:[#allocation2 + $0xb8] sm:$0xf]  ;;  %v4443_v7 = vrot.slane %v4441_v9, 4  ;;  %v4462_v20 = vrot.slane %v4460_v36, 5  ;;  %v4782_v62 = vld [vmem:[#allocation2 + $0xb4] sm:$0xe] }
 0x359   : > { %v4926_v53 = vrot.slane %v4144_v4, 5  ;;  %v4478_v46 = vshrl.u32 %v4144_v4, 16 }
 0x35a   : > { %v5081_v43 = vpop.f32.mrf.mxu2  ;;  %v5218_v2 = vmax.f32 %v5186_v22, 0.0  ;;  %v4993_v34 = vpack.c.b16 %v4974_v26, %v4973_v19  ;;  %v4145_v22 = vld [vmem:[#allocation2 + $0xbc] sm:$0x1] }
 0x35b   : > { %v4669_v30 = vpop.f32.mrf.mxu1  ;;  %v4928_v39 = vrot.slane %v4926_v53, 4 }
 0x35c   : > { %v4742_v48 = vadd.f32 %v4669_v30, %v4077_v61  ;;  %v4078_v61 = vadd.f32 %v7401_v50, %v7870_v14 }
 0x35e   : > { %v5151_v57 = vadd.f32 %v5078_v27, %v4742_v48  ;;  %v4456_v27 = vrot.slane %v4454_v32, 4  ;;  %v4446_v48 = vrot.slane %v4444_v6, 5  ;;  %v4929_v6 = vrot.slane %v4145_v22, 5 }
 0x35f   : > { %v7659_v29 = vpop.f32.mrf.mxu0 }
 0x360   : > { %v5187_v1 = vadd.f32 %v7596_v25, %v5151_v57  ;;  %v4457_v40 = vor.u32 %v4456_v27, %v4452_v12  ;;  %v4447_v44 = vor.u32 %v4446_v48, %v4443_v7  ;;  %v7871_v57 = vld [vmem:[#allocation4_spill] sm:$0xff]  ;;  %v4930_v19 = vsel %vm6405_vm13, %v4928_v39, %v4929_v6 }
 0x361   : > { %v4079_v35 = vadd.f32 %v7413_v38, %v7871_v57  ;;  %v6070_v38 = vrot.slane %v4782_v62, 9  ;;  %v4976_v7 = vunpack.c.l.b16 %v4930_v19  ;;  %v7874_v62 = vld [vmem:[#allocation6_spill] sm:$0xff] }
 0x362   : > { %v5219_v47 = vmax.f32 %v5187_v1, 0.0  ;;  %v5083_v30 = vpop.f32.mrf.mxu2  ;;  %v4458_v32 = vrot.slane %v4457_v40, 4  ;;  %v4448_v27 = vrot.slane %v4447_v44, 4  ;;  %v4480_v40 = vrot.slane %v4478_v46, 4 }
 0x363   : > { %v4672_v33 = vpop.f32.mrf.mxu1 }
 0x364   : > { %v5248_v18 = vpack.c.bf16 %v5219_v47, %v5218_v2  ;;  %v4743_v10 = vadd.f32 %v4672_v33, %v4078_v61  ;;  %v4463_v17 = vsel %vm6490_vm5, %v4458_v32, %v4462_v20  ;;  %v4143_v2 = vld [vmem:[#allocation2 + $0xb4] sm:$0xf]  ;;  %v4474_v47 = vshll.u32 %v4144_v4, 16  ;;  %v7873_v20 = vld [vmem:[#allocation7_spill] sm:$0xff] }
 0x365   : > { %v4453_v14 = vsel %vm6490_vm5, %v4448_v27, %v4452_v12  ;;  %v4468_v48 = vshll.u32 %v4143_v2, 16 }
 0x366   : > { %6052 = vmatmul.msk.bf16.gmra.mxu1 %vm1672_vm14, %v4583_v51  ;;  %6107 = vmatmul.msk.bf16.gmra.mxu3 %vm1672_vm14, %v5248_v18  ;;  %v5152_v50 = vadd.f32 %v5081_v43, %v4743_v10  ;;  %v4565_v51 = vunpack.c.l.b16 %v4463_v17  ;;  %v4927_v18 = vsel %vm6405_vm13, %v6070_v38, %v4926_v53  ;;  %v4476_v4 = vrot.slane %v4474_v47, 5 }
 0x367   : > { %6093 = vmatmul.msk.bf16.gmra.mxu2 %vm1672_vm14, %v4993_v34  ;;  %v4465_v34 = vshrl.u32 %v4143_v2, 16  ;;  %v4564_v36 = vunpack.c.l.b16 %v4453_v14  ;;  %v4975_v32 = vunpack.c.l.b16 %v4927_v18  ;;  %v3783_v53 = vadd.f32 %v7874_v62, %v7873_v20  ;;  %v4147_v2 = vld [vmem:[#allocation2 + $0xc4] sm:$0xf] }
 0x368   : > { %v5188_v43 = vadd.f32 %v7596_v25, %v5152_v50  ;;  %v7872_v50 = vld [vmem:[#allocation5_spill] sm:$0xff]  ;;  %v4470_v27 = vrot.slane %v4468_v48, 5  ;;  %v4481_v17 = vor.u32 %v4480_v40, %v4476_v4  ;;  %v4933_v46 = vrot.slane %v4147_v2, 5 }
 0x369   : > { %v4080_v57 = vadd.f32 %v7610_v45, %v7872_v50  ;;  %v4584_v12 = vpack.c.b16 %v4565_v51, %v4564_v36  ;;  %v4994_v6 = vpack.c.b16 %v4976_v7, %v4975_v32  ;;  %v4484_v45 = vshll.u32 %v4145_v22, 16 }
 0x36a   : > { %v5086_v26 = vpop.f32.mrf.mxu2  ;;  %v5220_v10 = vmax.f32 %v5188_v43, 0.0  ;;  %v4148_v43 = vld [vmem:[#allocation2 + $0xc8] sm:$0x1]  ;;  %v4081_v38 = vadd.f32 %v7619_v3, %v3783_v53  ;;  %v4482_v14 = vrot.slane %v4481_v17, 4  ;;  %v4498_v50 = vshll.u32 %v4147_v2, 16 }
 0x36b   : > { %v4674_v1 = vpop.f32.mrf.mxu1  ;;  %v4936_v7 = vrot.slane %v4148_v43, 5  ;;  %v4486_v40 = vrot.slane %v4484_v45, 5 }
 0x36c   : > { %v4744_v9 = vadd.f32 %v4674_v1, %v4079_v35  ;;  %v4467_v1 = vrot.slane %v4465_v34, 4  ;;  %v4935_v34 = vrot.slane %v4933_v46, 4 }
 0x36d   : > { %v4487_v22 = vsel %vm6490_vm5, %v4482_v14, %v4486_v40  ;;  %v4082_v14 = vadd.f32 %v7635_v49, %v7386_v58 }
 0x36e   : > { %v5153_v33 = vadd.f32 %v5083_v30, %v4744_v9  ;;  %v7675_v9 = vpop.f32.mrf.mxu0  ;;  %v4471_v19 = vor.u32 %v4470_v27, %v4467_v1  ;;  %v4567_v53 = vunpack.c.l.b16 %v4487_v22 }
 0x370   : > { %v5189_v61 = vadd.f32 %v7596_v25, %v5153_v33  ;;  %v4783_v33 = vld [vmem:[#allocation2 + $0xc0] sm:$0xe]  ;;  %v4472_v32 = vrot.slane %v4471_v19, 4 }
 0x371   : > { %v6071_v18 = vrot.slane %v4783_v33, 9 }
 0x372   : > { %v5221_v30 = vmax.f32 %v5189_v61, 0.0  ;;  %v5088_v35 = vpop.f32.mrf.mxu2  ;;  %v4146_v61 = vld [vmem:[#allocation2 + $0xc0] sm:$0xf]  ;;  %v4477_v20 = vsel %vm6490_vm5, %v4472_v32, %v4476_v4 }
 0x373   : > { %v4677_v44 = vpop.f32.mrf.mxu1  ;;  %v4489_v36 = vshrl.u32 %v4146_v61, 16 }
 0x374   : > { %v5249_v39 = vpack.c.bf16 %v5221_v30, %v5220_v10  ;;  %v4745_v47 = vadd.f32 %v4677_v44, %v4080_v57  ;;  %v4492_v44 = vshll.u32 %v4146_v61, 16  ;;  %v4502_v57 = vshrl.u32 %v4147_v2, 16 }
 0x376   : > { %6053 = vmatmul.msk.bf16.gmra.mxu1 %vm1672_vm14, %v4584_v12  ;;  %6108 = vmatmul.msk.bf16.gmra.mxu3 %vm1672_vm14, %v5249_v39  ;;  %v5154_v51 = vadd.f32 %v5086_v26, %v4745_v47  ;;  %v4934_v26 = vsel %vm6405_vm13, %v6071_v18, %v4933_v46  ;;  %v4937_v39 = vsel %vm6405_vm13, %v4935_v34, %v4936_v7  ;;  %v7688_v1 = vpop.f32.mrf.mxu0  ;;  %v4494_v27 = vrot.slane %v4492_v44, 5  ;;  %v4150_v18 = vld [vmem:[#allocation2 + $0xd0] sm:$0xf]  ;;  %v4151_v34 = vld [vmem:[#allocation2 + $0xd4] sm:$0x1] }
 0x377   : > { %6094 = vmatmul.msk.bf16.gmra.mxu2 %vm1672_vm14, %v4994_v6  ;;  %v4491_v6 = vrot.slane %v4489_v36, 4  ;;  %v4977_v17 = vunpack.c.l.b16 %v4934_v26  ;;  %v4978_v2 = vunpack.c.l.b16 %v4937_v39  ;;  %v4500_v47 = vrot.slane %v4498_v50, 5  ;;  %v4784_v7 = vld [vmem:[#allocation2 + $0xcc] sm:$0xe] }
 0x378   : > { %v5190_v3 = vadd.f32 %v7596_v25, %v5154_v51  ;;  %v4566_v46 = vunpack.c.l.b16 %v4477_v20  ;;  %v4940_v36 = vrot.slane %v4150_v18, 5  ;;  %v3785_v44 = vadd.f32 %v7390_v21, %v7394_v15  ;;  %v4149_v39 = vld [vmem:[#allocation2 + $0xcc] sm:$0xf] }
 0x379   : > { %v4495_v4 = vor.u32 %v4494_v27, %v4491_v6  ;;  %v6072_v22 = vrot.slane %v4784_v7, 9  ;;  %v4943_v58 = vrot.slane %v4151_v34, 5  ;;  %v4522_v6 = vshll.u32 %v4150_v18, 16 }
 0x37a   : > { %v5091_v30 = vpop.f32.mrf.mxu2  ;;  %v5222_v45 = vmax.f32 %v5190_v3, 0.0  ;;  %v4585_v61 = vpack.c.b16 %v4567_v53, %v4566_v46  ;;  %v4942_v49 = vrot.slane %v4940_v36, 4  ;;  %v4083_v26 = vadd.f32 %v7650_v60, %v3785_v44 }
 0x37b   : > { %v4679_v48 = vpop.f32.mrf.mxu1  ;;  %v4941_v21 = vsel %vm6405_vm13, %v6072_v22, %v4940_v36  ;;  %v4516_v53 = vshll.u32 %v4149_v39, 16  ;;  %v4526_v27 = vshrl.u32 %v4150_v18, 16 }
 0x37c   : > { %v4746_v10 = vadd.f32 %v4679_v48, %v4081_v38  ;;  %v4995_v48 = vpack.c.b16 %v4978_v2, %v4977_v17  ;;  %v4944_v15 = vsel %vm6405_vm13, %v4942_v49, %v4943_v58 }
 0x37d   : > { %v4980_v24 = vunpack.c.l.b16 %v4944_v15 }
 0x37e   : > { %v5155_v12 = vadd.f32 %v5088_v35, %v4746_v10  ;;  %v4504_v35 = vrot.slane %v4502_v57, 4  ;;  %v4508_v10 = vshll.u32 %v4148_v43, 16  ;;  %v7700_v50 = vpop.f32.mrf.mxu0  ;;  %v4496_v57 = vrot.slane %v4495_v4, 4 }
 0x380   : > { %v5191_v62 = vadd.f32 %v7596_v25, %v5155_v12  ;;  %v4505_v40 = vor.u32 %v4504_v35, %v4500_v47  ;;  %v4510_v12 = vrot.slane %v4508_v10, 5  ;;  %v4501_v35 = vsel %vm6490_vm5, %v4496_v57, %v4500_v47 }
 0x381   : > { %v4568_v4 = vunpack.c.l.b16 %v4501_v35 }
 0x382   : > { %v5223_v33 = vmax.f32 %v5191_v62, 0.0  ;;  %v5093_v51 = vpop.f32.mrf.mxu2  ;;  %v4506_v3 = vrot.slane %v4505_v40, 4  ;;  %v4513_v62 = vshrl.u32 %v4149_v39, 16 }
 0x383   : > { %v4682_v38 = vpop.f32.mrf.mxu1 }
 0x384   : > { %v5250_v19 = vpack.c.bf16 %v5223_v33, %v5222_v45  ;;  %v4747_v32 = vadd.f32 %v4682_v38, %v4082_v14  ;;  %v4511_v60 = vsel %vm6490_vm5, %v4506_v3, %v4510_v12  ;;  %v4979_v33 = vunpack.c.l.b16 %v4941_v21  ;;  %v7876_v3 = vld [vmem:[#allocation10_spill] sm:$0xff]  ;;  %v7877_v12 = vld [vmem:[#allocation9_spill] sm:$0xff] }
 0x385   : > { %v4515_v46 = vrot.slane %v4513_v62, 4  ;;  %v4518_v38 = vrot.slane %v4516_v53, 5  ;;  %v4528_v14 = vrot.slane %v4526_v27, 4  ;;  %v4569_v18 = vunpack.c.l.b16 %v4511_v60 }
 0x386   : > { %6054 = vmatmul.msk.bf16.gmra.mxu1 %vm1672_vm14, %v4585_v61  ;;  %6109 = vmatmul.msk.bf16.gmra.mxu3 %vm1672_vm14, %v5250_v19  ;;  %v5156_v43 = vadd.f32 %v5091_v30, %v4747_v32  ;;  %v4524_v19 = vrot.slane %v4522_v6, 5  ;;  %v4032_v40 = vpop.f32.mrf.mxu0  ;;  %v4996_v10 = vpack.c.b16 %v4980_v24, %v4979_v33  ;;  %v4532_v32 = vshll.u32 %v4151_v34, 16 }
 0x387   : > { %6095 = vmatmul.msk.bf16.gmra.mxu2 %vm1672_vm14, %v4995_v48  ;;  %v4519_v36 = vor.u32 %v4518_v38, %v4515_v46  ;;  %v4586_v49 = vpack.c.b16 %v4569_v18, %v4568_v4  ;;  %v7880_v4 = vld [vmem:[#allocation12_spill] sm:$0xff] }
 0x388   : > { %v5192_v30 = vadd.f32 %v7596_v25, %v5156_v43  ;;  %v4529_v44 = vor.u32 %v4528_v14, %v4524_v19  ;;  %v3787_v43 = vadd.f32 %v7877_v12, %v7876_v3  ;;  %v4534_v39 = vrot.slane %v4532_v32, 5  ;;  %v7878_v14 = vld [vmem:[#allocation11_spill] sm:$0xff] }
 0x389   : > { %v4520_v21 = vrot.slane %v4519_v36, 4 }
 0x38a   : > { %v5096_v2 = vpop.f32.mrf.mxu2  ;;  %v5224_v7 = vmax.f32 %v5192_v30, 0.0  ;;  %v4530_v15 = vrot.slane %v4529_v44, 4 }
 0x38b   : > { %v4684_v20 = vpop.f32.mrf.mxu1 }
 0x38c   : > { %v4748_v17 = vadd.f32 %v4684_v20, %v4083_v26  ;;  %v4085_v20 = vadd.f32 %v7675_v9, %v3787_v43  ;;  %v4535_v53 = vsel %vm6490_vm5, %v4530_v15, %v4534_v39  ;;  %v4088_v43 = vadd.f32 %v4032_v40, %v7450_v52 }
 0x38e   : > { %v5157_v45 = vadd.f32 %v5093_v51, %v4748_v17  ;;  %v7875_v51 = vld [vmem:[#allocation8_spill] sm:$0xff]  ;;  %v4034_v17 = vpop.f32.mrf.mxu0 }
 0x38f   : > { %v4084_v58 = vadd.f32 %v7659_v29, %v7875_v51  ;;  %v4525_v29 = vsel %vm6490_vm5, %v4520_v21, %v4524_v19  ;;  %v4086_v19 = vadd.f32 %v7688_v1, %v7878_v14  ;;  %v7881_v21 = vld [vmem:[#allocation14_spill] sm:$0xff] }
 0x390   : > { %v5193_v61 = vadd.f32 %v7596_v25, %v5157_v45  ;;  %v4570_v30 = vunpack.c.l.b16 %v4525_v29  ;;  %v4571_v45 = vunpack.c.l.b16 %v4535_v53  ;;  %v3791_v15 = vadd.f32 %v7881_v21, %v7459_v42 }
 0x392   : > { %v5225_v48 = vmax.f32 %v5193_v61, 0.0  ;;  %v5098_v57 = vpop.f32.mrf.mxu2  ;;  %v4587_v9 = vpack.c.b16 %v4571_v45, %v4570_v30  ;;  %v7879_v61 = vld [vmem:[#allocation13_spill] sm:$0xff] }
 0x393   : > { %v4687_v47 = vpop.f32.mrf.mxu1  ;;  %v3789_v18 = vadd.f32 %v7880_v4, %v7879_v61 }
 0x394   : > { %v5251_v22 = vpack.c.bf16 %v5225_v48, %v5224_v7  ;;  %v4749_v26 = vadd.f32 %v4687_v47, %v4084_v58 }
 0x396   : > { %6055 = vmatmul.msk.bf16.gmra.mxu1 %vm1672_vm14, %v4586_v49  ;;  %6110 = vmatmul.msk.bf16.gmra.mxu3 %vm1672_vm14, %v5251_v22  ;;  %v5158_v34 = vadd.f32 %v5096_v2, %v4749_v26  ;;  %v4037_v48 = vpop.f32.mrf.mxu0 }
 0x397   : > { %6096 = vmatmul.msk.bf16.gmra.mxu2 %vm1672_vm14, %v4996_v10  ;;  %v4087_v10 = vadd.f32 %v7700_v50, %v3789_v18  ;;  %v4090_v45 = vadd.f32 %v4037_v48, %v7468_v23 }
 0x398   : > { %v5194_v35 = vadd.f32 %v7596_v25, %v5158_v34  ;;  %v4089_v34 = vadd.f32 %v4034_v17, %v3791_v15  ;;  %v7882_v17 = vld [vmem:[#allocation15_spill] sm:$0xff] }
 0x39a   : > { %v5101_v27 = vpop.f32.mrf.mxu2  ;;  %v5226_v2 = vmax.f32 %v5194_v35, 0.0 }
 0x39b   : > { %v4689_v62 = vpop.f32.mrf.mxu1 }
 0x39c   : > { %v4750_v6 = vadd.f32 %v4689_v62, %v4085_v20 }
 0x39e   : > { %v5159_v60 = vadd.f32 %v5098_v57, %v4750_v6  ;;  %v4039_v58 = vpop.f32.mrf.mxu0 }
 0x3a0   : > { %v5195_v33 = vadd.f32 %v7596_v25, %v5159_v60  ;;  %v7742_v60 = vpop.f32.mrf.mxu3 }
 0x3a2   : > { %v5227_v24 = vmax.f32 %v5195_v33, 0.0  ;;  %v5103_v31 = vpop.f32.mrf.mxu2 }
 0x3a3   : > { %v4692_v46 = vpop.f32.mrf.mxu1 }
 0x3a4   : > { %v5252_v38 = vpack.c.bf16 %v5227_v24, %v5226_v2  ;;  %v4751_v7 = vadd.f32 %v4692_v46, %v4086_v19  ;;  %v3793_v24 = vadd.f32 %v7882_v17, %v7475_v54  ;;  %v7751_v46 = vld [vmem:[%s7839_s6] ss:$0 sm:$0xff] }
 0x3a6   : > { %6056 = vmatmul.msk.bf16.gmra.mxu1 %vm1672_vm14, %v4587_v9  ;;  %6111 = vmatmul.msk.bf16.gmra.mxu3 %vm1672_vm14, %v5252_v38  ;;  %v5160_v47 = vadd.f32 %v5101_v27, %v4751_v7  ;;  %v4042_v20 = vpop.f32.mrf.mxu0  ;;  %v4091_v19 = vadd.f32 %v4039_v58, %v3793_v24  ;;  %v7883_v58 = vld [vmem:[#allocation16_spill] sm:$0xff] }
 0x3a8   : > { %v5196_v22 = vadd.f32 %v7596_v25, %v5160_v47 }
 0x3aa   : > { %v5106_v32 = vpop.f32.mrf.mxu2  ;;  %v5228_v49 = vmax.f32 %v5196_v22, 0.0 }
 0x3ab   : > { %v4694_v36 = vpop.f32.mrf.mxu1 }
 0x3ac   : > { %v4752_v44 = vadd.f32 %v4694_v36, %v4087_v10 }
 0x3ae   : > { %v5161_v51 = vadd.f32 %v5103_v31, %v4752_v44  ;;  %v4044_v2 = vpop.f32.mrf.mxu0 }
 0x3b0   : > { %v5197_v1 = vadd.f32 %v7596_v25, %v5161_v51  ;;  %v4092_v51 = vadd.f32 %v4042_v20, %v7486_v11 }
 0x3b2   : > { %v5229_v57 = vmax.f32 %v5197_v1, 0.0  ;;  %v5108_v26 = vpop.f32.mrf.mxu2 }
 0x3b3   : > { %v4697_v3 = vpop.f32.mrf.mxu1 }
 0x3b4   : > { %v5253_v12 = vpack.c.bf16 %v5229_v57, %v5228_v49  ;;  %v4753_v50 = vadd.f32 %v4697_v3, %v4088_v43  ;;  %v3795_v49 = vadd.f32 %v7883_v58, %v7493_v37 }
 0x3b6   : > { %6112 = vmatmul.msk.bf16.gmra.mxu3 %vm1672_vm14, %v5253_v12  ;;  %v5162_v39 = vadd.f32 %v5106_v32, %v4753_v50  ;;  %v4047_v7 = vpop.f32.mrf.mxu0  ;;  %v4093_v21 = vadd.f32 %v4044_v2, %v3795_v49 }
 0x3b8   : > { %v5198_v6 = vadd.f32 %v7596_v25, %v5162_v39 }
 0x3ba   : > { %v5111_v53 = vpop.f32.mrf.mxu2  ;;  %v5230_v52 = vmax.f32 %v5198_v6, 0.0 }
 0x3bb   : > { %v4699_v62 = vpop.f32.mrf.mxu1 }
 0x3bc   : > { %v4754_v29 = vadd.f32 %v4699_v62, %v4089_v34 }
 0x3be   : > { %v5163_v27 = vadd.f32 %v5108_v26, %v4754_v29  ;;  %v4049_v3 = vpop.f32.mrf.mxu0 }
 0x3c0   : > { %v5199_v35 = vadd.f32 %v7596_v25, %v5163_v27 }
 0x3c2   : > { %v5231_v40 = vmax.f32 %v5199_v35, 0.0  ;;  %v5113_v33 = vpop.f32.mrf.mxu2 }
 0x3c3   : > { %v4702_v30 = vpop.f32.mrf.mxu1 }
 0x3c4   : > { %v5254_v42 = vpack.c.bf16 %v5231_v40, %v5230_v52  ;;  %v4755_v9 = vadd.f32 %v4702_v30, %v4090_v45  ;;  %v4094_v52 = vadd.f32 %v4047_v7, %v7504_v16  ;;  %v7884_v30 = vld [vmem:[#allocation17_spill] sm:$0xff] }
 0x3c6   : > { %6113 = vmatmul.msk.bf16.gmra.mxu3 %vm1672_vm14, %v5254_v42  ;;  %v5164_v14 = vadd.f32 %v5111_v53, %v4755_v9  ;;  %v4052_v6 = vpop.f32.mrf.mxu0  ;;  %v3797_v42 = vadd.f32 %v7884_v30, %v7511_v59 }
 0x3c8   : > { %v5200_v18 = vadd.f32 %v7596_v25, %v5164_v14  ;;  %v4095_v24 = vadd.f32 %v4049_v3, %v3797_v42 }
 0x3c9   : > { %v5339_v38 = vpop.f32.mrf.mxu3 }
 0x3ca   : > { %v5340_v31 = vadd.f32 %v7751_v46, %v5339_v38  ;;  %v5116_v4 = vpop.f32.mrf.mxu2  ;;  %v5232_v10 = vmax.f32 %v5200_v18, 0.0 }
 0x3cb   : > { %v4704_v61 = vpop.f32.mrf.mxu1 }
 0x3cc   : > { %v4756_v23 = vadd.f32 %v4704_v61, %v4091_v19  ;;  %5419 = vxpose.xlu0.b32.start [1/16] (narrow) %v5340_v31, 8 }
 0x3ce   : > { %v5165_v54 = vadd.f32 %v5113_v33, %v4756_v23  ;;  %v4054_v19 = vpop.f32.mrf.mxu0 }
 0x3d0   : > { %v5201_v48 = vadd.f32 %v7596_v25, %v5165_v54 }
 0x3d1   : > { %v5341_v47 = vpop.f32.mrf.mxu3 }
 0x3d2   : > { %v5233_v36 = vmax.f32 %v5201_v48, 0.0  ;;  %v5342_v44 = vadd.f32 %v7751_v46, %v5341_v47  ;;  %v5118_v1 = vpop.f32.mrf.mxu2  ;;  %v4096_v48 = vadd.f32 %v4052_v6, %v7522_v5 }
 0x3d3   : > { %v4707_v32 = vpop.f32.mrf.mxu1 }
 0x3d4   : > { %v5255_v22 = vpack.c.bf16 %v5233_v36, %v5232_v10  ;;  %5420 = vxpose.xlu0.b32.cont [2/16] (narrow) %v5342_v44, 8  ;;  %v4757_v57 = vadd.f32 %v4707_v32, %v4092_v51  ;;  %v7885_v10 = vld [vmem:[#allocation18_spill] sm:$0xff] }
 0x3d5   : > { %v3799_v36 = vadd.f32 %v7885_v10, %v7529_v41 }
 0x3d6   : > { %6114 = vmatmul.msk.bf16.gmra.mxu3 %vm1672_vm14, %v5255_v22  ;;  %v5166_v43 = vadd.f32 %v5116_v4, %v4757_v57  ;;  %v4057_v32 = vpop.f32.mrf.mxu0 }
 0x3d7   : > { %v4097_v58 = vadd.f32 %v4054_v19, %v3799_v36 }
 0x3d8   : > { %v5202_v11 = vadd.f32 %v7596_v25, %v5166_v43 }
 0x3d9   : > { %v5344_v12 = vpop.f32.mrf.mxu3 }
 0x3da   : > { %v5345_v26 = vadd.f32 %v7751_v46, %v5344_v12  ;;  %v5121_v39 = vpop.f32.mrf.mxu2  ;;  %v5234_v37 = vmax.f32 %v5202_v11, 0.0 }
 0x3db   : > { %v4709_v15 = vpop.f32.mrf.mxu1 }
 0x3dc   : > { %v4758_v50 = vadd.f32 %v4709_v15, %v4093_v21  ;;  %5421 = vxpose.xlu0.b32.cont [3/16] (narrow) %v5345_v26, 8 }
 0x3de   : > { %v5167_v34 = vadd.f32 %v5118_v1, %v4758_v50  ;;  %v4059_v26 = vpop.f32.mrf.mxu0 }
 0x3e0   : > { %v5203_v20 = vadd.f32 %v7596_v25, %v5167_v34  ;;  %v4098_v34 = vadd.f32 %v4057_v32, %v7540_v28 }
 0x3e1   : > { %v5346_v62 = vpop.f32.mrf.mxu3 }
 0x3e2   : > { %v5235_v29 = vmax.f32 %v5203_v20, 0.0  ;;  %v5347_v53 = vadd.f32 %v7751_v46, %v5346_v62  ;;  %v5123_v40 = vpop.f32.mrf.mxu2  ;;  %v7886_v62 = vld [vmem:[#allocation19_spill] sm:$0xff] }
 0x3e3   : > { %v4712_v27 = vpop.f32.mrf.mxu1 }
 0x3e4   : > { %v5256_v35 = vpack.c.bf16 %v5235_v29, %v5234_v37  ;;  %5422 = vxpose.xlu0.b32.cont [4/16] (narrow) %v5347_v53, 8  ;;  %v4759_v45 = vadd.f32 %v4712_v27, %v4094_v52  ;;  %v3801_v37 = vadd.f32 %v7886_v62, %v7547_v55 }
 0x3e6   : > { %6115 = vmatmul.msk.bf16.gmra.mxu3 %vm1672_vm14, %v5256_v35  ;;  %v5168_v2 = vadd.f32 %v5121_v39, %v4759_v45  ;;  %v4099_v35 = vadd.f32 %v4059_v26, %v3801_v37  ;;  %v4062_v52 = vpop.f32.mrf.mxu0 }
 0x3e8   : > { %v5204_v16 = vadd.f32 %v7596_v25, %v5168_v2 }
 0x3e9   : > { %v5349_v33 = vpop.f32.mrf.mxu3 }
 0x3ea   : > { %v5350_v17 = vadd.f32 %v7751_v46, %v5349_v33  ;;  %v5126_v14 = vpop.f32.mrf.mxu2  ;;  %v5236_v59 = vmax.f32 %v5204_v16, 0.0  ;;  %v3803_v16 = vadd.f32 %v7561_v13, %v7565_v56 }
 0x3eb   : > { %v4714_v9 = vpop.f32.mrf.mxu1 }
 0x3ec   : > { %v4760_v38 = vadd.f32 %v4714_v9, %v4095_v24  ;;  %5423 = vxpose.xlu0.b32.cont [5/16] (narrow) %v5350_v17, 8 }
 0x3ee   : > { %v5169_v31 = vadd.f32 %v5123_v40, %v4760_v38  ;;  %v4064_v19 = vpop.f32.mrf.mxu0 }
 0x3f0   : > { %v5205_v61 = vadd.f32 %v7596_v25, %v5169_v31 }
 0x3f1   : > { %v5351_v23 = vpop.f32.mrf.mxu3 }
 0x3f2   : > { %v5237_v4 = vmax.f32 %v5205_v61, 0.0  ;;  %v5352_v18 = vadd.f32 %v7751_v46, %v5351_v23  ;;  %v5128_v47 = vpop.f32.mrf.mxu2 }
 0x3f3   : > { %v4717_v54 = vpop.f32.mrf.mxu1 }
 0x3f4   : > { %v5257_v7 = vpack.c.bf16 %v5237_v4, %v5236_v59  ;;  %5424 = vxpose.xlu0.b32.cont [6/16] (narrow) %v5352_v18, 8  ;;  %v4761_v44 = vadd.f32 %v4717_v54, %v4096_v48  ;;  %v4101_v18 = vadd.f32 %v4064_v19, %v3803_v16 }
 0x3f6   : > { %6116 = vmatmul.msk.bf16.gmra.mxu3 %vm1672_vm14, %v5257_v7  ;;  %v5170_v51 = vadd.f32 %v5126_v14, %v4761_v44  ;;  %v4100_v14 = vadd.f32 %v4062_v52, %v7558_v63  ;;  %v4067_v48 = vpop.f32.mrf.mxu0 }
 0x3f8   : > { %v5206_v5 = vadd.f32 %v7596_v25, %v5170_v51  ;;  %v4102_v51 = vadd.f32 %v4067_v48, %v7576_v8  ;;  %v6231_v8 = vld [vmem:[%s7837_s4] ss:$0 sm:$0xff] }
 0x3f9   : > { %v5354_v22 = vpop.f32.mrf.mxu3 }
 0x3fa   : > { %v5355_v1 = vadd.f32 %v7751_v46, %v5354_v22  ;;  %v5131_v3 = vpop.f32.mrf.mxu2  ;;  %v5238_v21 = vmax.f32 %v5206_v5, 0.0 }
 0x3fb   : > { %v4719_v49 = vpop.f32.mrf.mxu1 }
 0x3fc   : > { %v4762_v57 = vadd.f32 %v4719_v49, %v4097_v58  ;;  %5425 = vxpose.xlu0.b32.cont [7/16] (narrow) %v5355_v1, 8  ;;  %v3805_v58 = vadd.f32 %v7742_v60, %v7581_v0 }
 0x3fe   : > { %v5171_v12 = vadd.f32 %v5128_v47, %v4762_v57  ;;  %v4069_v57 = vpop.f32.mrf.mxu0 }
 0x400   : > { %v5207_v43 = vadd.f32 %v7596_v25, %v5171_v12 }
 0x401   : > { %v5356_v41 = vpop.f32.mrf.mxu3 }
 0x402   : > { %v5239_v15 = vmax.f32 %v5207_v43, 0.0  ;;  %v5357_v50 = vadd.f32 %v7751_v46, %v5356_v41  ;;  %v5133_v20 = vpop.f32.mrf.mxu2 }
 0x403   : > { %v4722_v39 = vpop.f32.mrf.mxu1 }
 0x404   : > { %v5258_v11 = vpack.c.bf16 %v5239_v15, %v5238_v21  ;;  %5426 = vxpose.xlu0.b32.cont [8/16] (narrow) %v5357_v50, 8  ;;  %v4763_v29 = vadd.f32 %v4722_v39, %v4098_v34 }
 0x406   : > { %6117 = vmatmul.msk.bf16.gmra.mxu3 %vm1672_vm14, %v5258_v11  ;;  %v5172_v6 = vadd.f32 %v5131_v3, %v4763_v29 }
 0x408   : > { %v5208_v42 = vadd.f32 %v7596_v25, %v5172_v6 }
 0x409   : > { %v5359_v53 = vpop.f32.mrf.mxu3 }
 0x40a   : > { %v5360_v27 = vadd.f32 %v7751_v46, %v5359_v53  ;;  %v5136_v45 = vpop.f32.mrf.mxu2  ;;  %v5240_v55 = vmax.f32 %v5208_v42, 0.0 }
 0x40b   : > { %v4724_v40 = vpop.f32.mrf.mxu1 }
 0x40c   : > { %v4764_v30 = vadd.f32 %v4724_v40, %v4099_v35  ;;  %5427 = vxpose.xlu0.b32.cont [9/16] (narrow) %v5360_v27, 8 }
 0x40e   : > { %v5173_v28 = vadd.f32 %v5133_v20, %v4764_v30 }
 0x410   : > { %v5209_v33 = vadd.f32 %v7596_v25, %v5173_v28 }
 0x411   : > { %v5361_v2 = vpop.f32.mrf.mxu3 }
 0x412   : > { %v5241_v17 = vmax.f32 %v5209_v33, 0.0  ;;  %v5362_v24 = vadd.f32 %v7751_v46, %v5361_v2  ;;  %v5138_v61 = vpop.f32.mrf.mxu2 }
 0x413   : > { %v4727_v9 = vpop.f32.mrf.mxu1 }
 0x414   : > { %v5259_v38 = vpack.c.bf16 %v5241_v17, %v5240_v55  ;;  %5428 = vxpose.xlu0.b32.cont [10/16] (narrow) %v5362_v24, 8  ;;  %v4765_v31 = vadd.f32 %v4727_v9, %v4100_v14 }
 0x416   : > { %6118 = vmatmul.msk.bf16.gmra.mxu3 %vm1672_vm14, %v5259_v38  ;;  %v5174_v59 = vadd.f32 %v5136_v45, %v4765_v31 }
 0x418   : > { %v5210_v63 = vadd.f32 %v7596_v25, %v5174_v59 }
 0x419   : > { %v5364_v23 = vpop.f32.mrf.mxu3 }
 0x41a   : > { %v5365_v4 = vadd.f32 %v7751_v46, %v5364_v23  ;;  %v5242_v13 = vmax.f32 %v5210_v63, 0.0  ;;  %v5141_v32 = vpop.f32.mrf.mxu2 }
 0x41b   : > { %v4729_v54 = vpop.f32.mrf.mxu1 }
 0x41c   : > { %v4766_v7 = vadd.f32 %v4729_v54, %v4101_v18  ;;  %5429 = vxpose.xlu0.b32.cont [11/16] (narrow) %v5365_v4, 8 }
 0x41e   : > { %v5175_v47 = vadd.f32 %v5138_v61, %v4766_v7 }
 0x420   : > { %v5211_v10 = vadd.f32 %v7596_v25, %v5175_v47  ;;  %v4103_v25 = vadd.f32 %v4069_v57, %v3805_v58 }
 0x421   : > { %v5366_v36 = vpop.f32.mrf.mxu3 }
 0x422   : > { %v5243_v56 = vmax.f32 %v5211_v10, 0.0  ;;  %v5367_v44 = vadd.f32 %v7751_v46, %v5366_v36  ;;  %v5143_v41 = vpop.f32.mrf.mxu2 }
 0x423   : > { %v4732_v22 = vpop.f32.mrf.mxu1 }
 0x424   : > { %v5260_v1 = vpack.c.bf16 %v5243_v56, %v5242_v13  ;;  %5430 = vxpose.xlu0.b32.cont [12/16] (narrow) %v5367_v44, 8  ;;  %v4767_v49 = vadd.f32 %v4732_v22, %v4102_v51 }
 0x426   : > { %6119 = vmatmul.msk.bf16.gmra.mxu3 %vm1672_vm14, %v5260_v1  ;;  %v5176_v5 = vadd.f32 %v5141_v32, %v4767_v49 }
 0x428   : > { %v5212_v21 = vadd.f32 %v6231_v8, %v5176_v5 }
 0x429   : > { %v5369_v3 = vpop.f32.mrf.mxu3 }
 0x42a   : > { %v5370_v12 = vadd.f32 %v7751_v46, %v5369_v3  ;;  %v5244_v50 = vmax.f32 %v5212_v21, 0.0 }
 0x42b   : > { %v4734_v43 = vpop.f32.mrf.mxu1 }
 0x42c   : > { %v4768_v26 = vadd.f32 %v4734_v43, %v4103_v25  ;;  %5431 = vxpose.xlu0.b32.cont [13/16] (narrow) %v5370_v12, 8 }
 0x42e   : > { %v5177_v15 = vadd.f32 %v5143_v41, %v4768_v26 }
 0x430   : > { %v5213_v0 = vadd.f32 %v6231_v8, %v5177_v15 }
 0x431   : > { %v5371_v60 = vpop.f32.mrf.mxu3 }
 0x432   : > { %v5245_v39 = vmax.f32 %v5213_v0, 0.0  ;;  %v5372_v11 = vadd.f32 %v7751_v46, %v5371_v60 }
 0x434   : > { %v5261_v34 = vpack.c.bf16 %v5245_v39, %v5244_v50  ;;  %5432 = vxpose.xlu0.b32.cont [14/16] (narrow) %v5372_v11, 8 }
 0x436   : > { %6120 = vmatmul.msk.bf16.gmra.mxu3 %vm1672_vm14, %v5261_v34 }
 0x439   : > { %v5374_v20 = vpop.f32.mrf.mxu3 }
 0x43a   : > { %v5375_v62 = vadd.f32 %v7751_v46, %v5374_v20 }
 0x43c   : > { %5433 = vxpose.xlu0.b32.cont [15/16] (narrow) %v5375_v62, 8 }
 0x441   : > { %v5376_v37 = vpop.f32.mrf.mxu3 }
 0x442   : > { %v5377_v29 = vadd.f32 %v7751_v46, %v5376_v37 }
 0x444   : > { %5434 = vxpose.xlu0.b32.end [16/16] (narrow) %v5377_v29, 8 }
 0x449   : > { %v5379_v53 = vpop.f32.mrf.mxu3 }
 0x44a   : > { %v5380_v6 = vadd.f32 %v7751_v46, %v5379_v53 }
 0x44c   : > { %5451 = vxpose.xlu1.b32.start [1/16] (narrow) %v5380_v6, 8 }
 0x451   : > { %v5381_v27 = vpop.f32.mrf.mxu3 }
 0x452   : > { %v5382_v35 = vadd.f32 %v7751_v46, %v5381_v27 }
 0x454   : > { %5452 = vxpose.xlu1.b32.cont [2/16] (narrow) %v5382_v35, 8 }
 0x459   : > { %v5384_v52 = vpop.f32.mrf.mxu3 }
 0x45a   : > { %v5385_v40 = vadd.f32 %v7751_v46, %v5384_v52 }
 0x45c   : > { %5453 = vxpose.xlu1.b32.cont [3/16] (narrow) %v5385_v40, 8 }
 0x461   : > { %v5386_v30 = vpop.f32.mrf.mxu3 }
 0x462   : > { %v5387_v42 = vadd.f32 %v7751_v46, %v5386_v30 }
 0x464   : > { %5454 = vxpose.xlu1.b32.cont [4/16] (narrow) %v5387_v42, 8 }
 0x469   : > { %v5389_v28 = vpop.f32.mrf.mxu3 }
 0x46a   : > { %v5390_v45 = vadd.f32 %v7751_v46, %v5389_v28 }
 0x46c   : > { %5455 = vxpose.xlu1.b32.cont [5/16] (narrow) %v5390_v45, 8 }
 0x470   : > { %v5435_v13 = vpop.trf.xlu0 }
 0x471   : > { %v5391_v33 = vpop.f32.mrf.mxu3 }
 0x472   : > { %v5392_v2 = vadd.f32 %v7751_v46, %v5391_v33 }
 0x474   : > { %5456 = vxpose.xlu1.b32.cont [6/16] (narrow) %v5392_v2, 8 }
 0x479   : > { %v5394_v55 = vpop.f32.mrf.mxu3 }
 0x47a   : > { %v5395_v17 = vadd.f32 %v7751_v46, %v5394_v55 }
 0x47c   : > { %5457 = vxpose.xlu1.b32.cont [7/16] (narrow) %v5395_v17, 8 }
 0x481   : > { %v5396_v24 = vpop.f32.mrf.mxu3 }
 0x482   : > { %v5397_v9 = vadd.f32 %v7751_v46, %v5396_v24 }
 0x484   : > { %5458 = vxpose.xlu1.b32.cont [8/16] (narrow) %v5397_v9, 8 }
 0x489   : > { %v5399_v38 = vpop.f32.mrf.mxu3 }
 0x48a   : > { %v5400_v14 = vadd.f32 %v7751_v46, %v5399_v38 }
 0x48c   : > { %5459 = vxpose.xlu1.b32.cont [9/16] (narrow) %v5400_v14, 8 }
 0x491   : > { %v5401_v19 = vpop.f32.mrf.mxu3 }
 0x492   : > { %v5402_v16 = vadd.f32 %v7751_v46, %v5401_v19 }
 0x494   : > { %5460 = vxpose.xlu1.b32.cont [10/16] (narrow) %v5402_v16, 8 }
 0x499   : > { %v5404_v31 = vpop.f32.mrf.mxu3 }
 0x49a   : > { %v5405_v61 = vadd.f32 %v7751_v46, %v5404_v31 }
 0x49c   : > { %5461 = vxpose.xlu1.b32.cont [11/16] (narrow) %v5405_v61, 8 }
 0x4a1   : > { %v5406_v23 = vpop.f32.mrf.mxu3 }
 0x4a2   : > { %v5407_v59 = vadd.f32 %v7751_v46, %v5406_v23 }
 0x4a4   : > { %5462 = vxpose.xlu1.b32.cont [12/16] (narrow) %v5407_v59, 8 }
 0x4a9   : > { %v5409_v4 = vpop.f32.mrf.mxu3 }
 0x4aa   : > { %v5410_v18 = vadd.f32 %v7751_v46, %v5409_v4 }
 0x4ac   : > { %5463 = vxpose.xlu1.b32.cont [13/16] (narrow) %v5410_v18, 8 }
 0x4b1   : > { %v5411_v54 = vpop.f32.mrf.mxu3 }
 0x4b2   : > { %v5412_v7 = vadd.f32 %v7751_v46, %v5411_v54 }
 0x4b4   : > { %5464 = vxpose.xlu1.b32.cont [14/16] (narrow) %v5412_v7, 8 }
 0x4b9   : > { %v5414_v48 = vpop.f32.mrf.mxu3 }
 0x4ba   : > { %v5415_v63 = vadd.f32 %v7751_v46, %v5414_v48 }
 0x4bc   : > { %5465 = vxpose.xlu1.b32.cont [15/16] (narrow) %v5415_v63, 8 }
 0x4c1   : > { %v5416_v47 = vpop.f32.mrf.mxu3 }
 0x4c2   : > { %v5417_v10 = vadd.f32 %v7751_v46, %v5416_v47 }
 0x4c4   : > { %5466 = vxpose.xlu1.b32.end [16/16] (narrow) %v5417_v10, 8 }
 0x4f0   : > { %v5467_v36 = vpop.trf.xlu1 }
 0x4f1   : > { %v5485_v56 = vrot.slane %v5467_v36, 6 }
 0x4f3   : > { %v5486_v44 = vsel %vm465_vm0, %v5435_v13, %v5485_v56 }
 0x4f4   : > { %5488 = vst [vmem:[%s278_s28] sm:$0xf] %v5486_v44 }
 0x4f5 PF: > { %s17_s24 = sadd.s32 1, %s6238_s24  }
 0x4f6   : > { %p14_p4 = scmp.ge.s32.totalorder %s17_s24, 4  }
 0x4f8   :  { %16 = sbr.rel (!%p14_p4) target bundleno = 1 (0x1), region = 81 }

</bundles_post_ra>
